<compile_context>
chip_gen: v5e
topology: v5e:2x2
jax: 0.10.0
libtpu: 0.0.40
codegen_flags: <defaults>
</compile_context>

<pallas_src>
import functools

import jax
import jax.numpy as jnp
from jax.experimental import pallas as pl
from jax.experimental.pallas import tpu as pltpu


def _round_up(x, m):
    return ((x + m - 1) // m) * m


def _cdiv(a, b):
    return -(-a // b)


@functools.cache
def _lane_concat_ok():
    """Probe: does this Mosaic build lower unaligned lane-dim concatenation?"""
    def k(a_ref, b_ref, o_ref):
        o_ref[...] = jnp.concatenate([a_ref[...], b_ref[...]], axis=-1)

    try:
        a = jnp.zeros((8, 64), jnp.bfloat16)
        out = pl.pallas_call(
            k, out_shape=jax.ShapeDtypeStruct((8, 128), jnp.bfloat16))(a, a)
        jax.block_until_ready(out)
        return True
    except Exception:  # noqa: BLE001  - any lowering failure -> safe fallback
        return False


# ----------------------------------------------------------------------------
# Kernel: one (image, row-block) tile of the flattened conv GEMM.
#   grouped taps -> lane concat -> large-K MXU dot; + folded-BN bias + ReLU.
# ----------------------------------------------------------------------------
def _make_conv_kernel(n_phase, tap_map, groups, tm, cout):
    def kernel(*refs):
        phase_refs = refs[:n_phase]          # each (1, TMB, Cin) bf16 chunk
        w_ref = refs[n_phase]                # (G, Kg, Cout)      bf16
        b_ref = refs[n_phase + 1]            # (1, Cout)          f32
        o_ref = refs[n_phase + 2]            # (1, TM, Cout)

        acc = jnp.zeros((tm, cout), jnp.float32)
        for gi, grp in enumerate(groups):
            parts = []
            for kk in grp:
                p_idx, off = tap_map[kk]     # static Python ints
                parts.append(phase_refs[p_idx][0, off:off + tm, :])
            lhs = parts[0] if len(parts) == 1 else jnp.concatenate(parts, axis=-1)
            acc = acc + jnp.dot(lhs, w_ref[gi],
                                preferred_element_type=jnp.float32)
        o_ref[0] = jnp.maximum(acc + b_ref[...], 0.0).astype(o_ref.dtype)

    return kernel


def _fold_bn(weight_oihw, gamma, beta, mean, var, eps=1e-5):
    """Fold inference BN into (3,3,Cin,Cout) f32 weights and a (Cout,) bias."""
    scale = gamma / jnp.sqrt(var + eps)
    bias = (beta - mean * scale).astype(jnp.float32)
    w = jnp.transpose(weight_oihw.astype(jnp.float32), (2, 3, 1, 0)) * scale
    return w, bias


# ----------------------------------------------------------------------------
# ConvBNReLU: 3x3 conv (pad=1, stride s, bias=False) + BN(eval) + ReLU
# ----------------------------------------------------------------------------
def conv_bn_relu(x_nhwc, weight_oihw, gamma, beta, mean, var, stride,
                 eps=1e-5, out_dtype=jnp.bfloat16):
    N, H, W, Cin0 = x_nhwc.shape
    Cout = weight_oihw.shape[0]
    s = int(stride)
    Hout = (H - 1) // s + 1                  # 3x3 conv, pad=1
    Wout = (W - 1) // s + 1
    max_r = 2 // s                           # max in-phase tap offset

    Cin = _round_up(Cin0, 8)                 # pad tiny channel counts (5 -> 8)

    # Flat-GEMM geometry.  Output pixel (h, w) lives at flat row h*Wph + w of a
    # per-image GEMM; tap (kh, kw) is a contiguous slice of a stride-phase of
    # the padded input at offset (kh//s)*Wph + (kw//s).  Wph is a multiple of 8
    # so the kh component of every offset is sublane-aligned.
    Wph = _round_up(Wout + max_r, 8)
    tm_target = 256 if Cout <= 64 else 128   # keep f32 accumulator <= ~64KB
    TH = max(1, min(Hout, tm_target // Wph))
    TM = TH * Wph
    n_m = _cdiv(Hout, TH)
    Hout_pad = n_m * TH
    Mflat = Hout_pad * Wph
    halo = _round_up(max_r * Wph + max_r, 8)
    TMB = TM + halo                          # per-tile phase block (with halo)
    Lneed = Mflat + halo
    Hph = _cdiv(Lneed, Wph)
    Lp = Hph * Wph
    n_tiles = N * n_m                        # batch folded into the grid

    # Zero-pad (top/left = 1, slack bottom/right), split into s*s stride
    # phases, flatten, and gather per-tile halo chunks.  All of this is layout
    # glue fused by XLA into a single HBM pass per layer.
    xb = x_nhwc.astype(jnp.bfloat16)
    if Cin != Cin0:
        xb = jnp.pad(xb, ((0, 0), (0, 0), (0, 0), (0, Cin - Cin0)))
    xp = jnp.pad(xb, ((0, 0), (1, s * Hph - H - 1), (1, s * Wph - W - 1), (0, 0)))
    gidx = (jnp.arange(n_m) * TM)[:, None] + jnp.arange(TMB)[None, :]  # (n_m,TMB)
    chunks = []
    for ph in range(s):
        for pw in range(s):
            pf = xp[:, ph::s, pw::s, :].reshape(N, Lp, Cin)
            chunks.append(pf[:, gidx, :].reshape(n_tiles, TMB, Cin))

    # Fold BN, pad Cin, and lay the weights out per tap group.
    w_f, bias_f = _fold_bn(weight_oihw, gamma, beta, mean, var, eps)
    if Cin != Cin0:
        w_f = jnp.pad(w_f, ((0, 0), (0, 0), (0, Cin - Cin0), (0, 0)))
    w9 = w_f.reshape(9, Cin, Cout)
    bias = bias_f.reshape(1, Cout)

    tap_map = []
    for kh in range(3):
        for kw in range(3):
            tap_map.append(((kh % s) * s + (kw % s), (kh // s) * Wph + (kw // s)))

    if Cin >= 32 and _lane_concat_ok():
        groups = ((0, 1, 2), (3, 4, 5), (6, 7, 8))      # K = 3*Cin per dot
    else:
        groups = tuple((kk,) for kk in range(9))        # per-tap fallback

    w_g = jnp.stack([jnp.concatenate([w9[kk] for kk in grp], axis=0)
                     for grp in groups]).astype(jnp.bfloat16)   # (G, Kg, Cout)

    kernel = _make_conv_kernel(s * s, tap_map, groups, TM, Cout)

    in_specs = [pl.BlockSpec((1, TMB, Cin), lambda t: (t, 0, 0))
                for _ in range(s * s)]
    in_specs += [
        pl.BlockSpec(w_g.shape, lambda t: (0, 0, 0)),   # VMEM-resident weights
        pl.BlockSpec((1, Cout), lambda t: (0, 0)),      # VMEM-resident bias
    ]
    out_spec = pl.BlockSpec((1, TM, Cout), lambda t: (t, 0, 0))

    out_bytes = 2 if out_dtype == jnp.bfloat16 else 4
    block_bytes = (s * s * TMB * Cin * 2 + int(w_g.size) * 2 + Cout * 4
                   + TM * Cout * out_bytes)
    vmem_limit = int(min(max(3 * block_bytes + (2 << 20), 16 << 20), 48 << 20))
    cost = pl.CostEstimate(
        flops=2 * N * Hout * Wout * Cout * Cin0 * 9,
        transcendentals=0,
        bytes_accessed=(n_tiles * TMB * Cin * s * s * 2 + int(w_g.size) * 2
                        + n_tiles * TM * Cout * out_bytes))

    out_flat = pl.pallas_call(
        kernel,
        out_shape=jax.ShapeDtypeStruct((n_tiles, TM, Cout), out_dtype),
        grid=(n_tiles,),
        in_specs=in_specs,
        out_specs=out_spec,
        compiler_params=pltpu.CompilerParams(
            dimension_semantics=("parallel",),
            vmem_limit_bytes=vmem_limit),
        cost_estimate=cost,
    )(*chunks, w_g, bias)

    # Strip the row/column slack (layout glue, fused by XLA into the next op).
    out = out_flat.reshape(N, Hout_pad, Wph, Cout)[:, :Hout, :Wout, :]
    return out


# ----------------------------------------------------------------------------
# Pure-JAX reference (identical bf16 casts / BN fold) for a tolerance check.
# ----------------------------------------------------------------------------
def conv_bn_relu_ref(x_nhwc, weight_oihw, gamma, beta, mean, var, stride,
                     eps=1e-5, out_dtype=jnp.bfloat16):
    w, bias = _fold_bn(weight_oihw, gamma, beta, mean, var, eps)
    y = jax.lax.conv_general_dilated(
        x_nhwc.astype(jnp.bfloat16), w.astype(jnp.bfloat16),
        window_strides=(stride, stride), padding=((1, 1), (1, 1)),
        dimension_numbers=("NHWC", "HWIO", "NHWC"),
        preferred_element_type=jnp.float32)
    return jnp.maximum(y + bias, 0.0).astype(out_dtype)


# ----------------------------------------------------------------------------
# DetailBranch_pc
# ----------------------------------------------------------------------------
def _layer_cfgs(in_c):
    return [
        (in_c, 64, 2), (64, 64, 1),                       # S1
        (64, 64, 2), (64, 64, 1), (64, 64, 1),            # S2
        (64, 128, 2), (128, 128, 1), (128, 128, 1),       # S3
    ]


def init_detail_branch_params(in_c=5, seed=42):
    base = jax.random.PRNGKey(seed)
    params = []
    for idx, (ci, co, st) in enumerate(_layer_cfgs(in_c)):
        k = jax.random.fold_in(base, idx)
        kw_, kg, kb, km, kv = jax.random.split(k, 5)
        fan_in = ci * 9
        params.append(dict(
            w=jax.random.normal(kw_, (co, ci, 3, 3), jnp.float32)
              * (2.0 / fan_in) ** 0.5,
            gamma=1.0 + 0.1 * jax.random.normal(kg, (co,), jnp.float32),
            beta=0.1 * jax.random.normal(kb, (co,), jnp.float32),
            mean=0.1 * jax.random.normal(km, (co,), jnp.float32),
            var=1.0 + 0.1 * jnp.abs(jax.random.normal(kv, (co,), jnp.float32)),
            stride=st,
        ))
    return params


def detail_branch_pc(x_nchw, params):
    x = jnp.transpose(x_nchw, (0, 2, 3, 1))               # NCHW -> NHWC
    for i, p in enumerate(params):
        out_dtype = jnp.float32 if i == len(params) - 1 else jnp.bfloat16
        x = conv_bn_relu(x, p["w"], p["gamma"], p["beta"], p["mean"], p["var"],
                         p["stride"], out_dtype=out_dtype)
    return jnp.transpose(x, (0, 3, 1, 2)).astype(jnp.float32)


def detail_branch_ref(x_nchw, params):
    x = jnp.transpose(x_nchw, (0, 2, 3, 1))
    for i, p in enumerate(params):
        out_dtype = jnp.float32 if i == len(params) - 1 else jnp.bfloat16
        x = conv_bn_relu_ref(x, p["w"], p["gamma"], p["beta"], p["mean"],
                             p["var"], p["stride"], out_dtype=out_dtype)
    return jnp.transpose(x, (0, 3, 1, 2)).astype(jnp.float32)


if __name__ == "__main__":
    key = jax.random.PRNGKey(0)
    # Small shapes consistent with the module: N=2, in_c=5, H=W=16 (NCHW).
    x = jax.random.normal(key, (2, 5, 16, 16), jnp.float32)
    params = init_detail_branch_params(in_c=5)

    fwd = jax.jit(lambda xx: detail_branch_pc(xx, params))
    out = jax.block_until_ready(fwd(x))

    # 3 stride-2 stages: 16 -> 8 -> 4 -> 2, final channels = 128.
    assert out.shape == (2, 128, 2, 2), out.shape
    assert jnp.all(jnp.isfinite(out))
    assert jnp.all(out >= 0.0)                            # ReLU output

    # Tolerance check against an XLA conv reference with identical bf16 casts.
    ref = jax.block_until_ready(
        jax.jit(lambda xx: detail_branch_ref(xx, params))(x))
    rel_err = float(jnp.max(jnp.abs(out - ref)) / (jnp.max(jnp.abs(ref)) + 1e-6))
    assert rel_err < 5e-2, rel_err

    print("KERNEL_OK")
</pallas_src>

<mosaic_0001>
module attributes {stable_mosaic.version = 11 : i64} {
  func.func @kernel(%arg0: i32, %arg1: memref<1x152x8xbf16, #tpu.memory_space<vmem>>, %arg2: memref<1x152x8xbf16, #tpu.memory_space<vmem>>, %arg3: memref<1x152x8xbf16, #tpu.memory_space<vmem>>, %arg4: memref<1x152x8xbf16, #tpu.memory_space<vmem>>, %arg5: memref<9x8x64xbf16, #tpu.memory_space<vmem>>, %arg6: memref<1x64xf32, #tpu.memory_space<vmem>>, %arg7: memref<1x128x64xbf16, #tpu.memory_space<vmem>>) attributes {dimension_semantics = [#tpu.dimension_semantics<parallel>], iteration_bounds = array<i64: 2>, scalar_prefetch = 0 : i64, scratch_operands = 0 : i64, tpu.core_type = #tpu.core_type<tc>, window_params = [{transform_indices = @transform_0, window_bounds = array<i64: 1, 152, 8>}, {transform_indices = @transform_1, window_bounds = array<i64: 1, 152, 8>}, {transform_indices = @transform_2, window_bounds = array<i64: 1, 152, 8>}, {transform_indices = @transform_3, window_bounds = array<i64: 1, 152, 8>}, {pipeline_mode = #tpu.pipeline_mode<synchronous>, transform_indices = @transform_4, window_bounds = array<i64: 9, 8, 64>}, {pipeline_mode = #tpu.pipeline_mode<synchronous>, transform_indices = @transform_5, window_bounds = array<i64: 1, 64>}, {transform_indices = @transform_6, window_bounds = array<i64: 1, 128, 64>}]} {
    %cst = arith.constant 0.000000e+00 : f32
    %0 = vector.broadcast %cst : f32 to vector<128x64xf32>
    %c0 = arith.constant 0 : index
    %c0_0 = arith.constant 0 : index
    %c0_1 = arith.constant 0 : index
    %1 = vector.load %arg1[%c0, %c0_0, %c0_1] : memref<1x152x8xbf16, #tpu.memory_space<vmem>>, vector<1x128x8xbf16>
    %2 = vector.shape_cast %1 : vector<1x128x8xbf16> to vector<128x8xbf16>
    %c0_2 = arith.constant 0 : index
    %c0_3 = arith.constant 0 : index
    %c0_4 = arith.constant 0 : index
    %3 = vector.load %arg5[%c0_2, %c0_3, %c0_4] : memref<9x8x64xbf16, #tpu.memory_space<vmem>>, vector<1x8x64xbf16>
    %4 = vector.shape_cast %3 : vector<1x8x64xbf16> to vector<8x64xbf16>
    %cst_5 = arith.constant dense<0.000000e+00> : vector<128x64xf32>
    %5 = tpu.matmul %2, %4, %cst_5 {dimension_numbers = #tpu.dot_dimension_numbers<[1], [0], [0], [1], [0, 0, 1, 1], [], []>} : vector<128x8xbf16>, vector<8x64xbf16>, vector<128x64xf32> -> vector<128x64xf32>
    %6 = arith.addf %0, %5 : vector<128x64xf32>
    %c0_6 = arith.constant 0 : index
    %c0_7 = arith.constant 0 : index
    %c0_8 = arith.constant 0 : index
    %7 = vector.load %arg2[%c0_6, %c0_7, %c0_8] : memref<1x152x8xbf16, #tpu.memory_space<vmem>>, vector<1x128x8xbf16>
    %8 = vector.shape_cast %7 : vector<1x128x8xbf16> to vector<128x8xbf16>
    %c1 = arith.constant 1 : index
    %c0_9 = arith.constant 0 : index
    %c0_10 = arith.constant 0 : index
    %9 = vector.load %arg5[%c1, %c0_9, %c0_10] : memref<9x8x64xbf16, #tpu.memory_space<vmem>>, vector<1x8x64xbf16>
    %10 = vector.shape_cast %9 : vector<1x8x64xbf16> to vector<8x64xbf16>
    %cst_11 = arith.constant dense<0.000000e+00> : vector<128x64xf32>
    %11 = tpu.matmul %8, %10, %cst_11 {dimension_numbers = #tpu.dot_dimension_numbers<[1], [0], [0], [1], [0, 0, 1, 1], [], []>} : vector<128x8xbf16>, vector<8x64xbf16>, vector<128x64xf32> -> vector<128x64xf32>
    %12 = arith.addf %6, %11 : vector<128x64xf32>
    %c0_12 = arith.constant 0 : index
    %c1_13 = arith.constant 1 : index
    %c0_14 = arith.constant 0 : index
    %13 = vector.load %arg1[%c0_12, %c1_13, %c0_14] : memref<1x152x8xbf16, #tpu.memory_space<vmem>>, vector<1x128x8xbf16>
    %14 = vector.shape_cast %13 : vector<1x128x8xbf16> to vector<128x8xbf16>
    %c2 = arith.constant 2 : index
    %c0_15 = arith.constant 0 : index
    %c0_16 = arith.constant 0 : index
    %15 = vector.load %arg5[%c2, %c0_15, %c0_16] : memref<9x8x64xbf16, #tpu.memory_space<vmem>>, vector<1x8x64xbf16>
    %16 = vector.shape_cast %15 : vector<1x8x64xbf16> to vector<8x64xbf16>
    %cst_17 = arith.constant dense<0.000000e+00> : vector<128x64xf32>
    %17 = tpu.matmul %14, %16, %cst_17 {dimension_numbers = #tpu.dot_dimension_numbers<[1], [0], [0], [1], [0, 0, 1, 1], [], []>} : vector<128x8xbf16>, vector<8x64xbf16>, vector<128x64xf32> -> vector<128x64xf32>
    %18 = arith.addf %12, %17 : vector<128x64xf32>
    %c0_18 = arith.constant 0 : index
    %c0_19 = arith.constant 0 : index
    %c0_20 = arith.constant 0 : index
    %19 = vector.load %arg3[%c0_18, %c0_19, %c0_20] : memref<1x152x8xbf16, #tpu.memory_space<vmem>>, vector<1x128x8xbf16>
    %20 = vector.shape_cast %19 : vector<1x128x8xbf16> to vector<128x8xbf16>
    %c3 = arith.constant 3 : index
    %c0_21 = arith.constant 0 : index
    %c0_22 = arith.constant 0 : index
    %21 = vector.load %arg5[%c3, %c0_21, %c0_22] : memref<9x8x64xbf16, #tpu.memory_space<vmem>>, vector<1x8x64xbf16>
    %22 = vector.shape_cast %21 : vector<1x8x64xbf16> to vector<8x64xbf16>
    %cst_23 = arith.constant dense<0.000000e+00> : vector<128x64xf32>
    %23 = tpu.matmul %20, %22, %cst_23 {dimension_numbers = #tpu.dot_dimension_numbers<[1], [0], [0], [1], [0, 0, 1, 1], [], []>} : vector<128x8xbf16>, vector<8x64xbf16>, vector<128x64xf32> -> vector<128x64xf32>
    %24 = arith.addf %18, %23 : vector<128x64xf32>
    %c0_24 = arith.constant 0 : index
    %c0_25 = arith.constant 0 : index
    %c0_26 = arith.constant 0 : index
    %25 = vector.load %arg4[%c0_24, %c0_25, %c0_26] : memref<1x152x8xbf16, #tpu.memory_space<vmem>>, vector<1x128x8xbf16>
    %26 = vector.shape_cast %25 : vector<1x128x8xbf16> to vector<128x8xbf16>
    %c4 = arith.constant 4 : index
    %c0_27 = arith.constant 0 : index
    %c0_28 = arith.constant 0 : index
    %27 = vector.load %arg5[%c4, %c0_27, %c0_28] : memref<9x8x64xbf16, #tpu.memory_space<vmem>>, vector<1x8x64xbf16>
    %28 = vector.shape_cast %27 : vector<1x8x64xbf16> to vector<8x64xbf16>
    %cst_29 = arith.constant dense<0.000000e+00> : vector<128x64xf32>
    %29 = tpu.matmul %26, %28, %cst_29 {dimension_numbers = #tpu.dot_dimension_numbers<[1], [0], [0], [1], [0, 0, 1, 1], [], []>} : vector<128x8xbf16>, vector<8x64xbf16>, vector<128x64xf32> -> vector<128x64xf32>
    %30 = arith.addf %24, %29 : vector<128x64xf32>
    %c0_30 = arith.constant 0 : index
    %c1_31 = arith.constant 1 : index
    %c0_32 = arith.constant 0 : index
    %31 = vector.load %arg3[%c0_30, %c1_31, %c0_32] : memref<1x152x8xbf16, #tpu.memory_space<vmem>>, vector<1x128x8xbf16>
    %32 = vector.shape_cast %31 : vector<1x128x8xbf16> to vector<128x8xbf16>
    %c5 = arith.constant 5 : index
    %c0_33 = arith.constant 0 : index
    %c0_34 = arith.constant 0 : index
    %33 = vector.load %arg5[%c5, %c0_33, %c0_34] : memref<9x8x64xbf16, #tpu.memory_space<vmem>>, vector<1x8x64xbf16>
    %34 = vector.shape_cast %33 : vector<1x8x64xbf16> to vector<8x64xbf16>
    %cst_35 = arith.constant dense<0.000000e+00> : vector<128x64xf32>
    %35 = tpu.matmul %32, %34, %cst_35 {dimension_numbers = #tpu.dot_dimension_numbers<[1], [0], [0], [1], [0, 0, 1, 1], [], []>} : vector<128x8xbf16>, vector<8x64xbf16>, vector<128x64xf32> -> vector<128x64xf32>
    %36 = arith.addf %30, %35 : vector<128x64xf32>
    %c0_36 = arith.constant 0 : index
    %c16 = arith.constant 16 : index
    %c0_37 = arith.constant 0 : index
    %37 = vector.load %arg1[%c0_36, %c16, %c0_37] : memref<1x152x8xbf16, #tpu.memory_space<vmem>>, vector<1x128x8xbf16>
    %38 = vector.shape_cast %37 : vector<1x128x8xbf16> to vector<128x8xbf16>
    %c6 = arith.constant 6 : index
    %c0_38 = arith.constant 0 : index
    %c0_39 = arith.constant 0 : index
    %39 = vector.load %arg5[%c6, %c0_38, %c0_39] : memref<9x8x64xbf16, #tpu.memory_space<vmem>>, vector<1x8x64xbf16>
    %40 = vector.shape_cast %39 : vector<1x8x64xbf16> to vector<8x64xbf16>
    %cst_40 = arith.constant dense<0.000000e+00> : vector<128x64xf32>
    %41 = tpu.matmul %38, %40, %cst_40 {dimension_numbers = #tpu.dot_dimension_numbers<[1], [0], [0], [1], [0, 0, 1, 1], [], []>} : vector<128x8xbf16>, vector<8x64xbf16>, vector<128x64xf32> -> vector<128x64xf32>
    %42 = arith.addf %36, %41 : vector<128x64xf32>
    %c0_41 = arith.constant 0 : index
    %c16_42 = arith.constant 16 : index
    %c0_43 = arith.constant 0 : index
    %43 = vector.load %arg2[%c0_41, %c16_42, %c0_43] : memref<1x152x8xbf16, #tpu.memory_space<vmem>>, vector<1x128x8xbf16>
    %44 = vector.shape_cast %43 : vector<1x128x8xbf16> to vector<128x8xbf16>
    %c7 = arith.constant 7 : index
    %c0_44 = arith.constant 0 : index
    %c0_45 = arith.constant 0 : index
    %45 = vector.load %arg5[%c7, %c0_44, %c0_45] : memref<9x8x64xbf16, #tpu.memory_space<vmem>>, vector<1x8x64xbf16>
    %46 = vector.shape_cast %45 : vector<1x8x64xbf16> to vector<8x64xbf16>
    %cst_46 = arith.constant dense<0.000000e+00> : vector<128x64xf32>
    %47 = tpu.matmul %44, %46, %cst_46 {dimension_numbers = #tpu.dot_dimension_numbers<[1], [0], [0], [1], [0, 0, 1, 1], [], []>} : vector<128x8xbf16>, vector<8x64xbf16>, vector<128x64xf32> -> vector<128x64xf32>
    %48 = arith.addf %42, %47 : vector<128x64xf32>
    %c0_47 = arith.constant 0 : index
    %c17 = arith.constant 17 : index
    %c0_48 = arith.constant 0 : index
    %49 = vector.load %arg1[%c0_47, %c17, %c0_48] : memref<1x152x8xbf16, #tpu.memory_space<vmem>>, vector<1x128x8xbf16>
    %50 = vector.shape_cast %49 : vector<1x128x8xbf16> to vector<128x8xbf16>
    %c8 = arith.constant 8 : index
    %c0_49 = arith.constant 0 : index
    %c0_50 = arith.constant 0 : index
    %51 = vector.load %arg5[%c8, %c0_49, %c0_50] : memref<9x8x64xbf16, #tpu.memory_space<vmem>>, vector<1x8x64xbf16>
    %52 = vector.shape_cast %51 : vector<1x8x64xbf16> to vector<8x64xbf16>
    %cst_51 = arith.constant dense<0.000000e+00> : vector<128x64xf32>
    %53 = tpu.matmul %50, %52, %cst_51 {dimension_numbers = #tpu.dot_dimension_numbers<[1], [0], [0], [1], [0, 0, 1, 1], [], []>} : vector<128x8xbf16>, vector<8x64xbf16>, vector<128x64xf32> -> vector<128x64xf32>
    %54 = arith.addf %48, %53 : vector<128x64xf32>
    %c0_52 = arith.constant 0 : index
    %c0_53 = arith.constant 0 : index
    %55 = vector.load %arg6[%c0_52, %c0_53] : memref<1x64xf32, #tpu.memory_space<vmem>>, vector<1x64xf32>
    %56 = vector.broadcast %55 : vector<1x64xf32> to vector<128x64xf32>
    %57 = arith.addf %54, %56 : vector<128x64xf32>
    %cst_54 = arith.constant 0.000000e+00 : f32
    %58 = vector.broadcast %cst_54 : f32 to vector<128x64xf32>
    %59 = arith.maximumf %57, %58 : vector<128x64xf32>
    %60 = arith.truncf %59 : vector<128x64xf32> to vector<128x64xbf16>
    %c0_55 = arith.constant 0 : index
    %c0_56 = arith.constant 0 : index
    %c0_57 = arith.constant 0 : index
    %61 = vector.load %arg7[%c0_55, %c0_56, %c0_57] : memref<1x128x64xbf16, #tpu.memory_space<vmem>>, vector<1x128x64xbf16>
    %62 = vector.shape_cast %61 : vector<1x128x64xbf16> to vector<128x64xbf16>
    %63 = vector.shape_cast %60 : vector<128x64xbf16> to vector<1x128x64xbf16>
    tpu.vector_store %arg7[%c0_55, %c0_56, %c0_57], %63 {strides = array<i32>} : memref<1x128x64xbf16, #tpu.memory_space<vmem>>, vector<1x128x64xbf16>,
    return
  }
  func.func @transform_0(%arg0: i32) -> (i32, i32, i32) {
    %c0_i32 = arith.constant 0 : i32
    %c0_i32_0 = arith.constant 0 : i32
    %c0_i32_1 = arith.constant 0 : i32
    return %arg0, %c0_i32, %c0_i32_0 : i32, i32, i32
  }
  func.func @transform_1(%arg0: i32) -> (i32, i32, i32) {
    %c0_i32 = arith.constant 0 : i32
    %c0_i32_0 = arith.constant 0 : i32
    %c0_i32_1 = arith.constant 0 : i32
    return %arg0, %c0_i32, %c0_i32_0 : i32, i32, i32
  }
  func.func @transform_2(%arg0: i32) -> (i32, i32, i32) {
    %c0_i32 = arith.constant 0 : i32
    %c0_i32_0 = arith.constant 0 : i32
    %c0_i32_1 = arith.constant 0 : i32
    return %arg0, %c0_i32, %c0_i32_0 : i32, i32, i32
  }
  func.func @transform_3(%arg0: i32) -> (i32, i32, i32) {
    %c0_i32 = arith.constant 0 : i32
    %c0_i32_0 = arith.constant 0 : i32
    %c0_i32_1 = arith.constant 0 : i32
    return %arg0, %c0_i32, %c0_i32_0 : i32, i32, i32
  }
  func.func @transform_4(%arg0: i32) -> (i32, i32, i32) {
    %c0_i32 = arith.constant 0 : i32
    %c0_i32_0 = arith.constant 0 : i32
    %c0_i32_1 = arith.constant 0 : i32
    %c0_i32_2 = arith.constant 0 : i32
    return %c0_i32, %c0_i32_0, %c0_i32_1 : i32, i32, i32
  }
  func.func @transform_5(%arg0: i32) -> (i32, i32) {
    %c0_i32 = arith.constant 0 : i32
    %c0_i32_0 = arith.constant 0 : i32
    %c0_i32_1 = arith.constant 0 : i32
    return %c0_i32, %c0_i32_0 : i32, i32
  }
  func.func @transform_6(%arg0: i32) -> (i32, i32, i32) {
    %c0_i32 = arith.constant 0 : i32
    %c0_i32_0 = arith.constant 0 : i32
    %c0_i32_1 = arith.constant 0 : i32
    return %arg0, %c0_i32, %c0_i32_0 : i32, i32, i32
  }
}

module attributes {stable_mosaic.version = 11 : i64} {
  func.func @kernel(%arg0: i32, %arg1: memref<1x168x64xbf16, #tpu.memory_space<vmem>>, %arg2: memref<3x192x64xbf16, #tpu.memory_space<vmem>>, %arg3: memref<1x64xf32, #tpu.memory_space<vmem>>, %arg4: memref<1x128x64xbf16, #tpu.memory_space<vmem>>) attributes {dimension_semantics = [#tpu.dimension_semantics<parallel>], iteration_bounds = array<i64: 2>, scalar_prefetch = 0 : i64, scratch_operands = 0 : i64, tpu.core_type = #tpu.core_type<tc>, window_params = [{transform_indices = @transform_0, window_bounds = array<i64: 1, 168, 64>}, {pipeline_mode = #tpu.pipeline_mode<synchronous>, transform_indices = @transform_1, window_bounds = array<i64: 3, 192, 64>}, {pipeline_mode = #tpu.pipeline_mode<synchronous>, transform_indices = @transform_2, window_bounds = array<i64: 1, 64>}, {transform_indices = @transform_3, window_bounds = array<i64: 1, 128, 64>}]} {
    %cst = arith.constant 0.000000e+00 : f32
    %0 = vector.broadcast %cst : f32 to vector<128x64xf32>
    %c0 = arith.constant 0 : index
    %c0_0 = arith.constant 0 : index
    %c0_1 = arith.constant 0 : index
    %1 = vector.load %arg1[%c0, %c0_0, %c0_1] : memref<1x168x64xbf16, #tpu.memory_space<vmem>>, vector<1x128x64xbf16>
    %2 = vector.shape_cast %1 : vector<1x128x64xbf16> to vector<128x64xbf16>
    %c0_2 = arith.constant 0 : index
    %c1 = arith.constant 1 : index
    %c0_3 = arith.constant 0 : index
    %3 = vector.load %arg1[%c0_2, %c1, %c0_3] : memref<1x168x64xbf16, #tpu.memory_space<vmem>>, vector<1x128x64xbf16>
    %4 = vector.shape_cast %3 : vector<1x128x64xbf16> to vector<128x64xbf16>
    %c0_4 = arith.constant 0 : index
    %c2 = arith.constant 2 : index
    %c0_5 = arith.constant 0 : index
    %5 = vector.load %arg1[%c0_4, %c2, %c0_5] : memref<1x168x64xbf16, #tpu.memory_space<vmem>>, vector<1x128x64xbf16>
    %6 = vector.shape_cast %5 : vector<1x128x64xbf16> to vector<128x64xbf16>
    %7 = tpu.concatenate %2, %4, %6 in 1 : vector<128x64xbf16>, vector<128x64xbf16>, vector<128x64xbf16> -> vector<128x192xbf16>
    %c0_6 = arith.constant 0 : index
    %c0_7 = arith.constant 0 : index
    %c0_8 = arith.constant 0 : index
    %8 = vector.load %arg2[%c0_6, %c0_7, %c0_8] : memref<3x192x64xbf16, #tpu.memory_space<vmem>>, vector<1x192x64xbf16>
    %9 = vector.shape_cast %8 : vector<1x192x64xbf16> to vector<192x64xbf16>
    %cst_9 = arith.constant dense<0.000000e+00> : vector<128x64xf32>
    %10 = tpu.matmul %7, %9, %cst_9 {dimension_numbers = #tpu.dot_dimension_numbers<[1], [0], [0], [1], [0, 0, 1, 1], [], []>} : vector<128x192xbf16>, vector<192x64xbf16>, vector<128x64xf32> -> vector<128x64xf32>
    %11 = arith.addf %0, %10 : vector<128x64xf32>
    %c0_10 = arith.constant 0 : index
    %c16 = arith.constant 16 : index
    %c0_11 = arith.constant 0 : index
    %12 = vector.load %arg1[%c0_10, %c16, %c0_11] : memref<1x168x64xbf16, #tpu.memory_space<vmem>>, vector<1x128x64xbf16>
    %13 = vector.shape_cast %12 : vector<1x128x64xbf16> to vector<128x64xbf16>
    %c0_12 = arith.constant 0 : index
    %c17 = arith.constant 17 : index
    %c0_13 = arith.constant 0 : index
    %14 = vector.load %arg1[%c0_12, %c17, %c0_13] : memref<1x168x64xbf16, #tpu.memory_space<vmem>>, vector<1x128x64xbf16>
    %15 = vector.shape_cast %14 : vector<1x128x64xbf16> to vector<128x64xbf16>
    %c0_14 = arith.constant 0 : index
    %c18 = arith.constant 18 : index
    %c0_15 = arith.constant 0 : index
    %16 = vector.load %arg1[%c0_14, %c18, %c0_15] : memref<1x168x64xbf16, #tpu.memory_space<vmem>>, vector<1x128x64xbf16>
    %17 = vector.shape_cast %16 : vector<1x128x64xbf16> to vector<128x64xbf16>
    %18 = tpu.concatenate %13, %15, %17 in 1 : vector<128x64xbf16>, vector<128x64xbf16>, vector<128x64xbf16> -> vector<128x192xbf16>
    %c1_16 = arith.constant 1 : index
    %c0_17 = arith.constant 0 : index
    %c0_18 = arith.constant 0 : index
    %19 = vector.load %arg2[%c1_16, %c0_17, %c0_18] : memref<3x192x64xbf16, #tpu.memory_space<vmem>>, vector<1x192x64xbf16>
    %20 = vector.shape_cast %19 : vector<1x192x64xbf16> to vector<192x64xbf16>
    %cst_19 = arith.constant dense<0.000000e+00> : vector<128x64xf32>
    %21 = tpu.matmul %18, %20, %cst_19 {dimension_numbers = #tpu.dot_dimension_numbers<[1], [0], [0], [1], [0, 0, 1, 1], [], []>} : vector<128x192xbf16>, vector<192x64xbf16>, vector<128x64xf32> -> vector<128x64xf32>
    %22 = arith.addf %11, %21 : vector<128x64xf32>
    %c0_20 = arith.constant 0 : index
    %c32 = arith.constant 32 : index
    %c0_21 = arith.constant 0 : index
    %23 = vector.load %arg1[%c0_20, %c32, %c0_21] : memref<1x168x64xbf16, #tpu.memory_space<vmem>>, vector<1x128x64xbf16>
    %24 = vector.shape_cast %23 : vector<1x128x64xbf16> to vector<128x64xbf16>
    %c0_22 = arith.constant 0 : index
    %c33 = arith.constant 33 : index
    %c0_23 = arith.constant 0 : index
    %25 = vector.load %arg1[%c0_22, %c33, %c0_23] : memref<1x168x64xbf16, #tpu.memory_space<vmem>>, vector<1x128x64xbf16>
    %26 = vector.shape_cast %25 : vector<1x128x64xbf16> to vector<128x64xbf16>
    %c0_24 = arith.constant 0 : index
    %c34 = arith.constant 34 : index
    %c0_25 = arith.constant 0 : index
    %27 = vector.load %arg1[%c0_24, %c34, %c0_25] : memref<1x168x64xbf16, #tpu.memory_space<vmem>>, vector<1x128x64xbf16>
    %28 = vector.shape_cast %27 : vector<1x128x64xbf16> to vector<128x64xbf16>
    %29 = tpu.concatenate %24, %26, %28 in 1 : vector<128x64xbf16>, vector<128x64xbf16>, vector<128x64xbf16> -> vector<128x192xbf16>
    %c2_26 = arith.constant 2 : index
    %c0_27 = arith.constant 0 : index
    %c0_28 = arith.constant 0 : index
    %30 = vector.load %arg2[%c2_26, %c0_27, %c0_28] : memref<3x192x64xbf16, #tpu.memory_space<vmem>>, vector<1x192x64xbf16>
    %31 = vector.shape_cast %30 : vector<1x192x64xbf16> to vector<192x64xbf16>
    %cst_29 = arith.constant dense<0.000000e+00> : vector<128x64xf32>
    %32 = tpu.matmul %29, %31, %cst_29 {dimension_numbers = #tpu.dot_dimension_numbers<[1], [0], [0], [1], [0, 0, 1, 1], [], []>} : vector<128x192xbf16>, vector<192x64xbf16>, vector<128x64xf32> -> vector<128x64xf32>
    %33 = arith.addf %22, %32 : vector<128x64xf32>
    %c0_30 = arith.constant 0 : index
    %c0_31 = arith.constant 0 : index
    %34 = vector.load %arg3[%c0_30, %c0_31] : memref<1x64xf32, #tpu.memory_space<vmem>>, vector<1x64xf32>
    %35 = vector.broadcast %34 : vector<1x64xf32> to vector<128x64xf32>
    %36 = arith.addf %33, %35 : vector<128x64xf32>
    %cst_32 = arith.constant 0.000000e+00 : f32
    %37 = vector.broadcast %cst_32 : f32 to vector<128x64xf32>
    %38 = arith.maximumf %36, %37 : vector<128x64xf32>
    %39 = arith.truncf %38 : vector<128x64xf32> to vector<128x64xbf16>
    %c0_33 = arith.constant 0 : index
    %c0_34 = arith.constant 0 : index
    %c0_35 = arith.constant 0 : index
    %40 = vector.load %arg4[%c0_33, %c0_34, %c0_35] : memref<1x128x64xbf16, #tpu.memory_space<vmem>>, vector<1x128x64xbf16>
    %41 = vector.shape_cast %40 : vector<1x128x64xbf16> to vector<128x64xbf16>
    %42 = vector.shape_cast %39 : vector<128x64xbf16> to vector<1x128x64xbf16>
    tpu.vector_store %arg4[%c0_33, %c0_34, %c0_35], %42 {strides = array<i32>} : memref<1x128x64xbf16, #tpu.memory_space<vmem>>, vector<1x128x64xbf16>,
    return
  }
  func.func @transform_0(%arg0: i32) -> (i32, i32, i32) {
    %c0_i32 = arith.constant 0 : i32
    %c0_i32_0 = arith.constant 0 : i32
    %c0_i32_1 = arith.constant 0 : i32
    return %arg0, %c0_i32, %c0_i32_0 : i32, i32, i32
  }
  func.func @transform_1(%arg0: i32) -> (i32, i32, i32) {
    %c0_i32 = arith.constant 0 : i32
    %c0_i32_0 = arith.constant 0 : i32
    %c0_i32_1 = arith.constant 0 : i32
    %c0_i32_2 = arith.constant 0 : i32
    return %c0_i32, %c0_i32_0, %c0_i32_1 : i32, i32, i32
  }
  func.func @transform_2(%arg0: i32) -> (i32, i32) {
    %c0_i32 = arith.constant 0 : i32
    %c0_i32_0 = arith.constant 0 : i32
    %c0_i32_1 = arith.constant 0 : i32
    return %c0_i32, %c0_i32_0 : i32, i32
  }
  func.func @transform_3(%arg0: i32) -> (i32, i32, i32) {
    %c0_i32 = arith.constant 0 : i32
    %c0_i32_0 = arith.constant 0 : i32
    %c0_i32_1 = arith.constant 0 : i32
    return %arg0, %c0_i32, %c0_i32_0 : i32, i32, i32
  }
}

module attributes {stable_mosaic.version = 11 : i64} {
  func.func @kernel(%arg0: i32, %arg1: memref<1x48x64xbf16, #tpu.memory_space<vmem>>, %arg2: memref<1x48x64xbf16, #tpu.memory_space<vmem>>, %arg3: memref<1x48x64xbf16, #tpu.memory_space<vmem>>, %arg4: memref<1x48x64xbf16, #tpu.memory_space<vmem>>, %arg5: memref<3x192x64xbf16, #tpu.memory_space<vmem>>, %arg6: memref<1x64xf32, #tpu.memory_space<vmem>>, %arg7: memref<1x32x64xbf16, #tpu.memory_space<vmem>>) attributes {dimension_semantics = [#tpu.dimension_semantics<parallel>], iteration_bounds = array<i64: 2>, scalar_prefetch = 0 : i64, scratch_operands = 0 : i64, tpu.core_type = #tpu.core_type<tc>, window_params = [{transform_indices = @transform_0, window_bounds = array<i64: 1, 48, 64>}, {transform_indices = @transform_1, window_bounds = array<i64: 1, 48, 64>}, {transform_indices = @transform_2, window_bounds = array<i64: 1, 48, 64>}, {transform_indices = @transform_3, window_bounds = array<i64: 1, 48, 64>}, {pipeline_mode = #tpu.pipeline_mode<synchronous>, transform_indices = @transform_4, window_bounds = array<i64: 3, 192, 64>}, {pipeline_mode = #tpu.pipeline_mode<synchronous>, transform_indices = @transform_5, window_bounds = array<i64: 1, 64>}, {transform_indices = @transform_6, window_bounds = array<i64: 1, 32, 64>}]} {
    %cst = arith.constant 0.000000e+00 : f32
    %0 = vector.broadcast %cst : f32 to vector<32x64xf32>
    %c0 = arith.constant 0 : index
    %c0_0 = arith.constant 0 : index
    %c0_1 = arith.constant 0 : index
    %1 = vector.load %arg1[%c0, %c0_0, %c0_1] : memref<1x48x64xbf16, #tpu.memory_space<vmem>>, vector<1x32x64xbf16>
    %2 = vector.shape_cast %1 : vector<1x32x64xbf16> to vector<32x64xbf16>
    %c0_2 = arith.constant 0 : index
    %c0_3 = arith.constant 0 : index
    %c0_4 = arith.constant 0 : index
    %3 = vector.load %arg2[%c0_2, %c0_3, %c0_4] : memref<1x48x64xbf16, #tpu.memory_space<vmem>>, vector<1x32x64xbf16>
    %4 = vector.shape_cast %3 : vector<1x32x64xbf16> to vector<32x64xbf16>
    %c0_5 = arith.constant 0 : index
    %c1 = arith.constant 1 : index
    %c0_6 = arith.constant 0 : index
    %5 = vector.load %arg1[%c0_5, %c1, %c0_6] : memref<1x48x64xbf16, #tpu.memory_space<vmem>>, vector<1x32x64xbf16>
    %6 = vector.shape_cast %5 : vector<1x32x64xbf16> to vector<32x64xbf16>
    %7 = tpu.concatenate %2, %4, %6 in 1 : vector<32x64xbf16>, vector<32x64xbf16>, vector<32x64xbf16> -> vector<32x192xbf16>
    %c0_7 = arith.constant 0 : index
    %c0_8 = arith.constant 0 : index
    %c0_9 = arith.constant 0 : index
    %8 = vector.load %arg5[%c0_7, %c0_8, %c0_9] : memref<3x192x64xbf16, #tpu.memory_space<vmem>>, vector<1x192x64xbf16>
    %9 = vector.shape_cast %8 : vector<1x192x64xbf16> to vector<192x64xbf16>
    %cst_10 = arith.constant dense<0.000000e+00> : vector<32x64xf32>
    %10 = tpu.matmul %7, %9, %cst_10 {dimension_numbers = #tpu.dot_dimension_numbers<[1], [0], [0], [1], [0, 0, 1, 1], [], []>} : vector<32x192xbf16>, vector<192x64xbf16>, vector<32x64xf32> -> vector<32x64xf32>
    %11 = arith.addf %0, %10 : vector<32x64xf32>
    %c0_11 = arith.constant 0 : index
    %c0_12 = arith.constant 0 : index
    %c0_13 = arith.constant 0 : index
    %12 = vector.load %arg3[%c0_11, %c0_12, %c0_13] : memref<1x48x64xbf16, #tpu.memory_space<vmem>>, vector<1x32x64xbf16>
    %13 = vector.shape_cast %12 : vector<1x32x64xbf16> to vector<32x64xbf16>
    %c0_14 = arith.constant 0 : index
    %c0_15 = arith.constant 0 : index
    %c0_16 = arith.constant 0 : index
    %14 = vector.load %arg4[%c0_14, %c0_15, %c0_16] : memref<1x48x64xbf16, #tpu.memory_space<vmem>>, vector<1x32x64xbf16>
    %15 = vector.shape_cast %14 : vector<1x32x64xbf16> to vector<32x64xbf16>
    %c0_17 = arith.constant 0 : index
    %c1_18 = arith.constant 1 : index
    %c0_19 = arith.constant 0 : index
    %16 = vector.load %arg3[%c0_17, %c1_18, %c0_19] : memref<1x48x64xbf16, #tpu.memory_space<vmem>>, vector<1x32x64xbf16>
    %17 = vector.shape_cast %16 : vector<1x32x64xbf16> to vector<32x64xbf16>
    %18 = tpu.concatenate %13, %15, %17 in 1 : vector<32x64xbf16>, vector<32x64xbf16>, vector<32x64xbf16> -> vector<32x192xbf16>
    %c1_20 = arith.constant 1 : index
    %c0_21 = arith.constant 0 : index
    %c0_22 = arith.constant 0 : index
    %19 = vector.load %arg5[%c1_20, %c0_21, %c0_22] : memref<3x192x64xbf16, #tpu.memory_space<vmem>>, vector<1x192x64xbf16>
    %20 = vector.shape_cast %19 : vector<1x192x64xbf16> to vector<192x64xbf16>
    %cst_23 = arith.constant dense<0.000000e+00> : vector<32x64xf32>
    %21 = tpu.matmul %18, %20, %cst_23 {dimension_numbers = #tpu.dot_dimension_numbers<[1], [0], [0], [1], [0, 0, 1, 1], [], []>} : vector<32x192xbf16>, vector<192x64xbf16>, vector<32x64xf32> -> vector<32x64xf32>
    %22 = arith.addf %11, %21 : vector<32x64xf32>
    %c0_24 = arith.constant 0 : index
    %c8 = arith.constant 8 : index
    %c0_25 = arith.constant 0 : index
    %23 = vector.load %arg1[%c0_24, %c8, %c0_25] : memref<1x48x64xbf16, #tpu.memory_space<vmem>>, vector<1x32x64xbf16>
    %24 = vector.shape_cast %23 : vector<1x32x64xbf16> to vector<32x64xbf16>
    %c0_26 = arith.constant 0 : index
    %c8_27 = arith.constant 8 : index
    %c0_28 = arith.constant 0 : index
    %25 = vector.load %arg2[%c0_26, %c8_27, %c0_28] : memref<1x48x64xbf16, #tpu.memory_space<vmem>>, vector<1x32x64xbf16>
    %26 = vector.shape_cast %25 : vector<1x32x64xbf16> to vector<32x64xbf16>
    %c0_29 = arith.constant 0 : index
    %c9 = arith.constant 9 : index
    %c0_30 = arith.constant 0 : index
    %27 = vector.load %arg1[%c0_29, %c9, %c0_30] : memref<1x48x64xbf16, #tpu.memory_space<vmem>>, vector<1x32x64xbf16>
    %28 = vector.shape_cast %27 : vector<1x32x64xbf16> to vector<32x64xbf16>
    %29 = tpu.concatenate %24, %26, %28 in 1 : vector<32x64xbf16>, vector<32x64xbf16>, vector<32x64xbf16> -> vector<32x192xbf16>
    %c2 = arith.constant 2 : index
    %c0_31 = arith.constant 0 : index
    %c0_32 = arith.constant 0 : index
    %30 = vector.load %arg5[%c2, %c0_31, %c0_32] : memref<3x192x64xbf16, #tpu.memory_space<vmem>>, vector<1x192x64xbf16>
    %31 = vector.shape_cast %30 : vector<1x192x64xbf16> to vector<192x64xbf16>
    %cst_33 = arith.constant dense<0.000000e+00> : vector<32x64xf32>
    %32 = tpu.matmul %29, %31, %cst_33 {dimension_numbers = #tpu.dot_dimension_numbers<[1], [0], [0], [1], [0, 0, 1, 1], [], []>} : vector<32x192xbf16>, vector<192x64xbf16>, vector<32x64xf32> -> vector<32x64xf32>
    %33 = arith.addf %22, %32 : vector<32x64xf32>
    %c0_34 = arith.constant 0 : index
    %c0_35 = arith.constant 0 : index
    %34 = vector.load %arg6[%c0_34, %c0_35] : memref<1x64xf32, #tpu.memory_space<vmem>>, vector<1x64xf32>
    %35 = vector.broadcast %34 : vector<1x64xf32> to vector<32x64xf32>
    %36 = arith.addf %33, %35 : vector<32x64xf32>
    %cst_36 = arith.constant 0.000000e+00 : f32
    %37 = vector.broadcast %cst_36 : f32 to vector<32x64xf32>
    %38 = arith.maximumf %36, %37 : vector<32x64xf32>
    %39 = arith.truncf %38 : vector<32x64xf32> to vector<32x64xbf16>
    %c0_37 = arith.constant 0 : index
    %c0_38 = arith.constant 0 : index
    %c0_39 = arith.constant 0 : index
    %40 = vector.load %arg7[%c0_37, %c0_38, %c0_39] : memref<1x32x64xbf16, #tpu.memory_space<vmem>>, vector<1x32x64xbf16>
    %41 = vector.shape_cast %40 : vector<1x32x64xbf16> to vector<32x64xbf16>
    %42 = vector.shape_cast %39 : vector<32x64xbf16> to vector<1x32x64xbf16>
    tpu.vector_store %arg7[%c0_37, %c0_38, %c0_39], %42 {strides = array<i32>} : memref<1x32x64xbf16, #tpu.memory_space<vmem>>, vector<1x32x64xbf16>,
    return
  }
  func.func @transform_0(%arg0: i32) -> (i32, i32, i32) {
    %c0_i32 = arith.constant 0 : i32
    %c0_i32_0 = arith.constant 0 : i32
    %c0_i32_1 = arith.constant 0 : i32
    return %arg0, %c0_i32, %c0_i32_0 : i32, i32, i32
  }
  func.func @transform_1(%arg0: i32) -> (i32, i32, i32) {
    %c0_i32 = arith.constant 0 : i32
    %c0_i32_0 = arith.constant 0 : i32
    %c0_i32_1 = arith.constant 0 : i32
    return %arg0, %c0_i32, %c0_i32_0 : i32, i32, i32
  }
  func.func @transform_2(%arg0: i32) -> (i32, i32, i32) {
    %c0_i32 = arith.constant 0 : i32
    %c0_i32_0 = arith.constant 0 : i32
    %c0_i32_1 = arith.constant 0 : i32
    return %arg0, %c0_i32, %c0_i32_0 : i32, i32, i32
  }
  func.func @transform_3(%arg0: i32) -> (i32, i32, i32) {
    %c0_i32 = arith.constant 0 : i32
    %c0_i32_0 = arith.constant 0 : i32
    %c0_i32_1 = arith.constant 0 : i32
    return %arg0, %c0_i32, %c0_i32_0 : i32, i32, i32
  }
  func.func @transform_4(%arg0: i32) -> (i32, i32, i32) {
    %c0_i32 = arith.constant 0 : i32
    %c0_i32_0 = arith.constant 0 : i32
    %c0_i32_1 = arith.constant 0 : i32
    %c0_i32_2 = arith.constant 0 : i32
    return %c0_i32, %c0_i32_0, %c0_i32_1 : i32, i32, i32
  }
  func.func @transform_5(%arg0: i32) -> (i32, i32) {
    %c0_i32 = arith.constant 0 : i32
    %c0_i32_0 = arith.constant 0 : i32
    %c0_i32_1 = arith.constant 0 : i32
    return %c0_i32, %c0_i32_0 : i32, i32
  }
  func.func @transform_6(%arg0: i32) -> (i32, i32, i32) {
    %c0_i32 = arith.constant 0 : i32
    %c0_i32_0 = arith.constant 0 : i32
    %c0_i32_1 = arith.constant 0 : i32
    return %arg0, %c0_i32, %c0_i32_0 : i32, i32, i32
  }
}

module attributes {stable_mosaic.version = 11 : i64} {
  func.func @kernel(%arg0: i32, %arg1: memref<1x56x64xbf16, #tpu.memory_space<vmem>>, %arg2: memref<3x192x64xbf16, #tpu.memory_space<vmem>>, %arg3: memref<1x64xf32, #tpu.memory_space<vmem>>, %arg4: memref<1x32x64xbf16, #tpu.memory_space<vmem>>) attributes {dimension_semantics = [#tpu.dimension_semantics<parallel>], iteration_bounds = array<i64: 2>, scalar_prefetch = 0 : i64, scratch_operands = 0 : i64, tpu.core_type = #tpu.core_type<tc>, window_params = [{transform_indices = @transform_0, window_bounds = array<i64: 1, 56, 64>}, {pipeline_mode = #tpu.pipeline_mode<synchronous>, transform_indices = @transform_1, window_bounds = array<i64: 3, 192, 64>}, {pipeline_mode = #tpu.pipeline_mode<synchronous>, transform_indices = @transform_2, window_bounds = array<i64: 1, 64>}, {transform_indices = @transform_3, window_bounds = array<i64: 1, 32, 64>}]} {
    %cst = arith.constant 0.000000e+00 : f32
    %0 = vector.broadcast %cst : f32 to vector<32x64xf32>
    %c0 = arith.constant 0 : index
    %c0_0 = arith.constant 0 : index
    %c0_1 = arith.constant 0 : index
    %1 = vector.load %arg1[%c0, %c0_0, %c0_1] : memref<1x56x64xbf16, #tpu.memory_space<vmem>>, vector<1x32x64xbf16>
    %2 = vector.shape_cast %1 : vector<1x32x64xbf16> to vector<32x64xbf16>
    %c0_2 = arith.constant 0 : index
    %c1 = arith.constant 1 : index
    %c0_3 = arith.constant 0 : index
    %3 = vector.load %arg1[%c0_2, %c1, %c0_3] : memref<1x56x64xbf16, #tpu.memory_space<vmem>>, vector<1x32x64xbf16>
    %4 = vector.shape_cast %3 : vector<1x32x64xbf16> to vector<32x64xbf16>
    %c0_4 = arith.constant 0 : index
    %c2 = arith.constant 2 : index
    %c0_5 = arith.constant 0 : index
    %5 = vector.load %arg1[%c0_4, %c2, %c0_5] : memref<1x56x64xbf16, #tpu.memory_space<vmem>>, vector<1x32x64xbf16>
    %6 = vector.shape_cast %5 : vector<1x32x64xbf16> to vector<32x64xbf16>
    %7 = tpu.concatenate %2, %4, %6 in 1 : vector<32x64xbf16>, vector<32x64xbf16>, vector<32x64xbf16> -> vector<32x192xbf16>
    %c0_6 = arith.constant 0 : index
    %c0_7 = arith.constant 0 : index
    %c0_8 = arith.constant 0 : index
    %8 = vector.load %arg2[%c0_6, %c0_7, %c0_8] : memref<3x192x64xbf16, #tpu.memory_space<vmem>>, vector<1x192x64xbf16>
    %9 = vector.shape_cast %8 : vector<1x192x64xbf16> to vector<192x64xbf16>
    %cst_9 = arith.constant dense<0.000000e+00> : vector<32x64xf32>
    %10 = tpu.matmul %7, %9, %cst_9 {dimension_numbers = #tpu.dot_dimension_numbers<[1], [0], [0], [1], [0, 0, 1, 1], [], []>} : vector<32x192xbf16>, vector<192x64xbf16>, vector<32x64xf32> -> vector<32x64xf32>
    %11 = arith.addf %0, %10 : vector<32x64xf32>
    %c0_10 = arith.constant 0 : index
    %c8 = arith.constant 8 : index
    %c0_11 = arith.constant 0 : index
    %12 = vector.load %arg1[%c0_10, %c8, %c0_11] : memref<1x56x64xbf16, #tpu.memory_space<vmem>>, vector<1x32x64xbf16>
    %13 = vector.shape_cast %12 : vector<1x32x64xbf16> to vector<32x64xbf16>
    %c0_12 = arith.constant 0 : index
    %c9 = arith.constant 9 : index
    %c0_13 = arith.constant 0 : index
    %14 = vector.load %arg1[%c0_12, %c9, %c0_13] : memref<1x56x64xbf16, #tpu.memory_space<vmem>>, vector<1x32x64xbf16>
    %15 = vector.shape_cast %14 : vector<1x32x64xbf16> to vector<32x64xbf16>
    %c0_14 = arith.constant 0 : index
    %c10 = arith.constant 10 : index
    %c0_15 = arith.constant 0 : index
    %16 = vector.load %arg1[%c0_14, %c10, %c0_15] : memref<1x56x64xbf16, #tpu.memory_space<vmem>>, vector<1x32x64xbf16>
    %17 = vector.shape_cast %16 : vector<1x32x64xbf16> to vector<32x64xbf16>
    %18 = tpu.concatenate %13, %15, %17 in 1 : vector<32x64xbf16>, vector<32x64xbf16>, vector<32x64xbf16> -> vector<32x192xbf16>
    %c1_16 = arith.constant 1 : index
    %c0_17 = arith.constant 0 : index
    %c0_18 = arith.constant 0 : index
    %19 = vector.load %arg2[%c1_16, %c0_17, %c0_18] : memref<3x192x64xbf16, #tpu.memory_space<vmem>>, vector<1x192x64xbf16>
    %20 = vector.shape_cast %19 : vector<1x192x64xbf16> to vector<192x64xbf16>
    %cst_19 = arith.constant dense<0.000000e+00> : vector<32x64xf32>
    %21 = tpu.matmul %18, %20, %cst_19 {dimension_numbers = #tpu.dot_dimension_numbers<[1], [0], [0], [1], [0, 0, 1, 1], [], []>} : vector<32x192xbf16>, vector<192x64xbf16>, vector<32x64xf32> -> vector<32x64xf32>
    %22 = arith.addf %11, %21 : vector<32x64xf32>
    %c0_20 = arith.constant 0 : index
    %c16 = arith.constant 16 : index
    %c0_21 = arith.constant 0 : index
    %23 = vector.load %arg1[%c0_20, %c16, %c0_21] : memref<1x56x64xbf16, #tpu.memory_space<vmem>>, vector<1x32x64xbf16>
    %24 = vector.shape_cast %23 : vector<1x32x64xbf16> to vector<32x64xbf16>
    %c0_22 = arith.constant 0 : index
    %c17 = arith.constant 17 : index
    %c0_23 = arith.constant 0 : index
    %25 = vector.load %arg1[%c0_22, %c17, %c0_23] : memref<1x56x64xbf16, #tpu.memory_space<vmem>>, vector<1x32x64xbf16>
    %26 = vector.shape_cast %25 : vector<1x32x64xbf16> to vector<32x64xbf16>
    %c0_24 = arith.constant 0 : index
    %c18 = arith.constant 18 : index
    %c0_25 = arith.constant 0 : index
    %27 = vector.load %arg1[%c0_24, %c18, %c0_25] : memref<1x56x64xbf16, #tpu.memory_space<vmem>>, vector<1x32x64xbf16>
    %28 = vector.shape_cast %27 : vector<1x32x64xbf16> to vector<32x64xbf16>
    %29 = tpu.concatenate %24, %26, %28 in 1 : vector<32x64xbf16>, vector<32x64xbf16>, vector<32x64xbf16> -> vector<32x192xbf16>
    %c2_26 = arith.constant 2 : index
    %c0_27 = arith.constant 0 : index
    %c0_28 = arith.constant 0 : index
    %30 = vector.load %arg2[%c2_26, %c0_27, %c0_28] : memref<3x192x64xbf16, #tpu.memory_space<vmem>>, vector<1x192x64xbf16>
    %31 = vector.shape_cast %30 : vector<1x192x64xbf16> to vector<192x64xbf16>
    %cst_29 = arith.constant dense<0.000000e+00> : vector<32x64xf32>
    %32 = tpu.matmul %29, %31, %cst_29 {dimension_numbers = #tpu.dot_dimension_numbers<[1], [0], [0], [1], [0, 0, 1, 1], [], []>} : vector<32x192xbf16>, vector<192x64xbf16>, vector<32x64xf32> -> vector<32x64xf32>
    %33 = arith.addf %22, %32 : vector<32x64xf32>
    %c0_30 = arith.constant 0 : index
    %c0_31 = arith.constant 0 : index
    %34 = vector.load %arg3[%c0_30, %c0_31] : memref<1x64xf32, #tpu.memory_space<vmem>>, vector<1x64xf32>
    %35 = vector.broadcast %34 : vector<1x64xf32> to vector<32x64xf32>
    %36 = arith.addf %33, %35 : vector<32x64xf32>
    %cst_32 = arith.constant 0.000000e+00 : f32
    %37 = vector.broadcast %cst_32 : f32 to vector<32x64xf32>
    %38 = arith.maximumf %36, %37 : vector<32x64xf32>
    %39 = arith.truncf %38 : vector<32x64xf32> to vector<32x64xbf16>
    %c0_33 = arith.constant 0 : index
    %c0_34 = arith.constant 0 : index
    %c0_35 = arith.constant 0 : index
    %40 = vector.load %arg4[%c0_33, %c0_34, %c0_35] : memref<1x32x64xbf16, #tpu.memory_space<vmem>>, vector<1x32x64xbf16>
    %41 = vector.shape_cast %40 : vector<1x32x64xbf16> to vector<32x64xbf16>
    %42 = vector.shape_cast %39 : vector<32x64xbf16> to vector<1x32x64xbf16>
    tpu.vector_store %arg4[%c0_33, %c0_34, %c0_35], %42 {strides = array<i32>} : memref<1x32x64xbf16, #tpu.memory_space<vmem>>, vector<1x32x64xbf16>,
    return
  }
  func.func @transform_0(%arg0: i32) -> (i32, i32, i32) {
    %c0_i32 = arith.constant 0 : i32
    %c0_i32_0 = arith.constant 0 : i32
    %c0_i32_1 = arith.constant 0 : i32
    return %arg0, %c0_i32, %c0_i32_0 : i32, i32, i32
  }
  func.func @transform_1(%arg0: i32) -> (i32, i32, i32) {
    %c0_i32 = arith.constant 0 : i32
    %c0_i32_0 = arith.constant 0 : i32
    %c0_i32_1 = arith.constant 0 : i32
    %c0_i32_2 = arith.constant 0 : i32
    return %c0_i32, %c0_i32_0, %c0_i32_1 : i32, i32, i32
  }
  func.func @transform_2(%arg0: i32) -> (i32, i32) {
    %c0_i32 = arith.constant 0 : i32
    %c0_i32_0 = arith.constant 0 : i32
    %c0_i32_1 = arith.constant 0 : i32
    return %c0_i32, %c0_i32_0 : i32, i32
  }
  func.func @transform_3(%arg0: i32) -> (i32, i32, i32) {
    %c0_i32 = arith.constant 0 : i32
    %c0_i32_0 = arith.constant 0 : i32
    %c0_i32_1 = arith.constant 0 : i32
    return %arg0, %c0_i32, %c0_i32_0 : i32, i32, i32
  }
}

module attributes {stable_mosaic.version = 11 : i64} {
  func.func @kernel(%arg0: i32, %arg1: memref<1x32x64xbf16, #tpu.memory_space<vmem>>, %arg2: memref<1x32x64xbf16, #tpu.memory_space<vmem>>, %arg3: memref<1x32x64xbf16, #tpu.memory_space<vmem>>, %arg4: memref<1x32x64xbf16, #tpu.memory_space<vmem>>, %arg5: memref<3x192x128xbf16, #tpu.memory_space<vmem>>, %arg6: memref<1x128xf32, #tpu.memory_space<vmem>>, %arg7: memref<1x16x128xbf16, #tpu.memory_space<vmem>>) attributes {dimension_semantics = [#tpu.dimension_semantics<parallel>], iteration_bounds = array<i64: 2>, scalar_prefetch = 0 : i64, scratch_operands = 0 : i64, tpu.core_type = #tpu.core_type<tc>, window_params = [{transform_indices = @transform_0, window_bounds = array<i64: 1, 32, 64>}, {transform_indices = @transform_1, window_bounds = array<i64: 1, 32, 64>}, {transform_indices = @transform_2, window_bounds = array<i64: 1, 32, 64>}, {transform_indices = @transform_3, window_bounds = array<i64: 1, 32, 64>}, {pipeline_mode = #tpu.pipeline_mode<synchronous>, transform_indices = @transform_4, window_bounds = array<i64: 3, 192, 128>}, {pipeline_mode = #tpu.pipeline_mode<synchronous>, transform_indices = @transform_5, window_bounds = array<i64: 1, 128>}, {transform_indices = @transform_6, window_bounds = array<i64: 1, 16, 128>}]} {
    %cst = arith.constant 0.000000e+00 : f32
    %0 = vector.broadcast %cst : f32 to vector<16x128xf32>
    %c0 = arith.constant 0 : index
    %c0_0 = arith.constant 0 : index
    %c0_1 = arith.constant 0 : index
    %1 = vector.load %arg1[%c0, %c0_0, %c0_1] : memref<1x32x64xbf16, #tpu.memory_space<vmem>>, vector<1x16x64xbf16>
    %2 = vector.shape_cast %1 : vector<1x16x64xbf16> to vector<16x64xbf16>
    %c0_2 = arith.constant 0 : index
    %c0_3 = arith.constant 0 : index
    %c0_4 = arith.constant 0 : index
    %3 = vector.load %arg2[%c0_2, %c0_3, %c0_4] : memref<1x32x64xbf16, #tpu.memory_space<vmem>>, vector<1x16x64xbf16>
    %4 = vector.shape_cast %3 : vector<1x16x64xbf16> to vector<16x64xbf16>
    %c0_5 = arith.constant 0 : index
    %c1 = arith.constant 1 : index
    %c0_6 = arith.constant 0 : index
    %5 = vector.load %arg1[%c0_5, %c1, %c0_6] : memref<1x32x64xbf16, #tpu.memory_space<vmem>>, vector<1x16x64xbf16>
    %6 = vector.shape_cast %5 : vector<1x16x64xbf16> to vector<16x64xbf16>
    %7 = tpu.concatenate %2, %4, %6 in 1 : vector<16x64xbf16>, vector<16x64xbf16>, vector<16x64xbf16> -> vector<16x192xbf16>
    %c0_7 = arith.constant 0 : index
    %c0_8 = arith.constant 0 : index
    %c0_9 = arith.constant 0 : index
    %8 = vector.load %arg5[%c0_7, %c0_8, %c0_9] : memref<3x192x128xbf16, #tpu.memory_space<vmem>>, vector<1x192x128xbf16>
    %9 = vector.shape_cast %8 : vector<1x192x128xbf16> to vector<192x128xbf16>
    %cst_10 = arith.constant dense<0.000000e+00> : vector<16x128xf32>
    %10 = tpu.matmul %7, %9, %cst_10 {dimension_numbers = #tpu.dot_dimension_numbers<[1], [0], [0], [1], [0, 0, 1, 1], [], []>} : vector<16x192xbf16>, vector<192x128xbf16>, vector<16x128xf32> -> vector<16x128xf32>
    %11 = arith.addf %0, %10 : vector<16x128xf32>
    %c0_11 = arith.constant 0 : index
    %c0_12 = arith.constant 0 : index
    %c0_13 = arith.constant 0 : index
    %12 = vector.load %arg3[%c0_11, %c0_12, %c0_13] : memref<1x32x64xbf16, #tpu.memory_space<vmem>>, vector<1x16x64xbf16>
    %13 = vector.shape_cast %12 : vector<1x16x64xbf16> to vector<16x64xbf16>
    %c0_14 = arith.constant 0 : index
    %c0_15 = arith.constant 0 : index
    %c0_16 = arith.constant 0 : index
    %14 = vector.load %arg4[%c0_14, %c0_15, %c0_16] : memref<1x32x64xbf16, #tpu.memory_space<vmem>>, vector<1x16x64xbf16>
    %15 = vector.shape_cast %14 : vector<1x16x64xbf16> to vector<16x64xbf16>
    %c0_17 = arith.constant 0 : index
    %c1_18 = arith.constant 1 : index
    %c0_19 = arith.constant 0 : index
    %16 = vector.load %arg3[%c0_17, %c1_18, %c0_19] : memref<1x32x64xbf16, #tpu.memory_space<vmem>>, vector<1x16x64xbf16>
    %17 = vector.shape_cast %16 : vector<1x16x64xbf16> to vector<16x64xbf16>
    %18 = tpu.concatenate %13, %15, %17 in 1 : vector<16x64xbf16>, vector<16x64xbf16>, vector<16x64xbf16> -> vector<16x192xbf16>
    %c1_20 = arith.constant 1 : index
    %c0_21 = arith.constant 0 : index
    %c0_22 = arith.constant 0 : index
    %19 = vector.load %arg5[%c1_20, %c0_21, %c0_22] : memref<3x192x128xbf16, #tpu.memory_space<vmem>>, vector<1x192x128xbf16>
    %20 = vector.shape_cast %19 : vector<1x192x128xbf16> to vector<192x128xbf16>
    %cst_23 = arith.constant dense<0.000000e+00> : vector<16x128xf32>
    %21 = tpu.matmul %18, %20, %cst_23 {dimension_numbers = #tpu.dot_dimension_numbers<[1], [0], [0], [1], [0, 0, 1, 1], [], []>} : vector<16x192xbf16>, vector<192x128xbf16>, vector<16x128xf32> -> vector<16x128xf32>
    %22 = arith.addf %11, %21 : vector<16x128xf32>
    %c0_24 = arith.constant 0 : index
    %c8 = arith.constant 8 : index
    %c0_25 = arith.constant 0 : index
    %23 = vector.load %arg1[%c0_24, %c8, %c0_25] : memref<1x32x64xbf16, #tpu.memory_space<vmem>>, vector<1x16x64xbf16>
    %24 = vector.shape_cast %23 : vector<1x16x64xbf16> to vector<16x64xbf16>
    %c0_26 = arith.constant 0 : index
    %c8_27 = arith.constant 8 : index
    %c0_28 = arith.constant 0 : index
    %25 = vector.load %arg2[%c0_26, %c8_27, %c0_28] : memref<1x32x64xbf16, #tpu.memory_space<vmem>>, vector<1x16x64xbf16>
    %26 = vector.shape_cast %25 : vector<1x16x64xbf16> to vector<16x64xbf16>
    %c0_29 = arith.constant 0 : index
    %c9 = arith.constant 9 : index
    %c0_30 = arith.constant 0 : index
    %27 = vector.load %arg1[%c0_29, %c9, %c0_30] : memref<1x32x64xbf16, #tpu.memory_space<vmem>>, vector<1x16x64xbf16>
    %28 = vector.shape_cast %27 : vector<1x16x64xbf16> to vector<16x64xbf16>
    %29 = tpu.concatenate %24, %26, %28 in 1 : vector<16x64xbf16>, vector<16x64xbf16>, vector<16x64xbf16> -> vector<16x192xbf16>
    %c2 = arith.constant 2 : index
    %c0_31 = arith.constant 0 : index
    %c0_32 = arith.constant 0 : index
    %30 = vector.load %arg5[%c2, %c0_31, %c0_32] : memref<3x192x128xbf16, #tpu.memory_space<vmem>>, vector<1x192x128xbf16>
    %31 = vector.shape_cast %30 : vector<1x192x128xbf16> to vector<192x128xbf16>
    %cst_33 = arith.constant dense<0.000000e+00> : vector<16x128xf32>
    %32 = tpu.matmul %29, %31, %cst_33 {dimension_numbers = #tpu.dot_dimension_numbers<[1], [0], [0], [1], [0, 0, 1, 1], [], []>} : vector<16x192xbf16>, vector<192x128xbf16>, vector<16x128xf32> -> vector<16x128xf32>
    %33 = arith.addf %22, %32 : vector<16x128xf32>
    %c0_34 = arith.constant 0 : index
    %c0_35 = arith.constant 0 : index
    %34 = vector.load %arg6[%c0_34, %c0_35] : memref<1x128xf32, #tpu.memory_space<vmem>>, vector<1x128xf32>
    %35 = vector.broadcast %34 : vector<1x128xf32> to vector<16x128xf32>
    %36 = arith.addf %33, %35 : vector<16x128xf32>
    %cst_36 = arith.constant 0.000000e+00 : f32
    %37 = vector.broadcast %cst_36 : f32 to vector<16x128xf32>
    %38 = arith.maximumf %36, %37 : vector<16x128xf32>
    %39 = arith.truncf %38 : vector<16x128xf32> to vector<16x128xbf16>
    %c0_37 = arith.constant 0 : index
    %c0_38 = arith.constant 0 : index
    %c0_39 = arith.constant 0 : index
    %40 = vector.load %arg7[%c0_37, %c0_38, %c0_39] : memref<1x16x128xbf16, #tpu.memory_space<vmem>>, vector<1x16x128xbf16>
    %41 = vector.shape_cast %40 : vector<1x16x128xbf16> to vector<16x128xbf16>
    %42 = vector.shape_cast %39 : vector<16x128xbf16> to vector<1x16x128xbf16>
    tpu.vector_store %arg7[%c0_37, %c0_38, %c0_39], %42 {strides = array<i32>} : memref<1x16x128xbf16, #tpu.memory_space<vmem>>, vector<1x16x128xbf16>,
    return
  }
  func.func @transform_0(%arg0: i32) -> (i32, i32, i32) {
    %c0_i32 = arith.constant 0 : i32
    %c0_i32_0 = arith.constant 0 : i32
    %c0_i32_1 = arith.constant 0 : i32
    return %arg0, %c0_i32, %c0_i32_0 : i32, i32, i32
  }
  func.func @transform_1(%arg0: i32) -> (i32, i32, i32) {
    %c0_i32 = arith.constant 0 : i32
    %c0_i32_0 = arith.constant 0 : i32
    %c0_i32_1 = arith.constant 0 : i32
    return %arg0, %c0_i32, %c0_i32_0 : i32, i32, i32
  }
  func.func @transform_2(%arg0: i32) -> (i32, i32, i32) {
    %c0_i32 = arith.constant 0 : i32
    %c0_i32_0 = arith.constant 0 : i32
    %c0_i32_1 = arith.constant 0 : i32
    return %arg0, %c0_i32, %c0_i32_0 : i32, i32, i32
  }
  func.func @transform_3(%arg0: i32) -> (i32, i32, i32) {
    %c0_i32 = arith.constant 0 : i32
    %c0_i32_0 = arith.constant 0 : i32
    %c0_i32_1 = arith.constant 0 : i32
    return %arg0, %c0_i32, %c0_i32_0 : i32, i32, i32
  }
  func.func @transform_4(%arg0: i32) -> (i32, i32, i32) {
    %c0_i32 = arith.constant 0 : i32
    %c0_i32_0 = arith.constant 0 : i32
    %c0_i32_1 = arith.constant 0 : i32
    %c0_i32_2 = arith.constant 0 : i32
    return %c0_i32, %c0_i32_0, %c0_i32_1 : i32, i32, i32
  }
  func.func @transform_5(%arg0: i32) -> (i32, i32) {
    %c0_i32 = arith.constant 0 : i32
    %c0_i32_0 = arith.constant 0 : i32
    %c0_i32_1 = arith.constant 0 : i32
    return %c0_i32, %c0_i32_0 : i32, i32
  }
  func.func @transform_6(%arg0: i32) -> (i32, i32, i32) {
    %c0_i32 = arith.constant 0 : i32
    %c0_i32_0 = arith.constant 0 : i32
    %c0_i32_1 = arith.constant 0 : i32
    return %arg0, %c0_i32, %c0_i32_0 : i32, i32, i32
  }
}

module attributes {stable_mosaic.version = 11 : i64} {
  func.func @kernel(%arg0: i32, %arg1: memref<1x40x128xbf16, #tpu.memory_space<vmem>>, %arg2: memref<3x384x128xbf16, #tpu.memory_space<vmem>>, %arg3: memref<1x128xf32, #tpu.memory_space<vmem>>, %arg4: memref<1x16x128xbf16, #tpu.memory_space<vmem>>) attributes {dimension_semantics = [#tpu.dimension_semantics<parallel>], iteration_bounds = array<i64: 2>, scalar_prefetch = 0 : i64, scratch_operands = 0 : i64, tpu.core_type = #tpu.core_type<tc>, window_params = [{transform_indices = @transform_0, window_bounds = array<i64: 1, 40, 128>}, {pipeline_mode = #tpu.pipeline_mode<synchronous>, transform_indices = @transform_1, window_bounds = array<i64: 3, 384, 128>}, {pipeline_mode = #tpu.pipeline_mode<synchronous>, transform_indices = @transform_2, window_bounds = array<i64: 1, 128>}, {transform_indices = @transform_3, window_bounds = array<i64: 1, 16, 128>}]} {
    %cst = arith.constant 0.000000e+00 : f32
    %0 = vector.broadcast %cst : f32 to vector<16x128xf32>
    %c0 = arith.constant 0 : index
    %c0_0 = arith.constant 0 : index
    %c0_1 = arith.constant 0 : index
    %1 = vector.load %arg1[%c0, %c0_0, %c0_1] : memref<1x40x128xbf16, #tpu.memory_space<vmem>>, vector<1x16x128xbf16>
    %2 = vector.shape_cast %1 : vector<1x16x128xbf16> to vector<16x128xbf16>
    %c0_2 = arith.constant 0 : index
    %c1 = arith.constant 1 : index
    %c0_3 = arith.constant 0 : index
    %3 = vector.load %arg1[%c0_2, %c1, %c0_3] : memref<1x40x128xbf16, #tpu.memory_space<vmem>>, vector<1x16x128xbf16>
    %4 = vector.shape_cast %3 : vector<1x16x128xbf16> to vector<16x128xbf16>
    %c0_4 = arith.constant 0 : index
    %c2 = arith.constant 2 : index
    %c0_5 = arith.constant 0 : index
    %5 = vector.load %arg1[%c0_4, %c2, %c0_5] : memref<1x40x128xbf16, #tpu.memory_space<vmem>>, vector<1x16x128xbf16>
    %6 = vector.shape_cast %5 : vector<1x16x128xbf16> to vector<16x128xbf16>
    %7 = tpu.concatenate %2, %4, %6 in 1 : vector<16x128xbf16>, vector<16x128xbf16>, vector<16x128xbf16> -> vector<16x384xbf16>
    %c0_6 = arith.constant 0 : index
    %c0_7 = arith.constant 0 : index
    %c0_8 = arith.constant 0 : index
    %8 = vector.load %arg2[%c0_6, %c0_7, %c0_8] : memref<3x384x128xbf16, #tpu.memory_space<vmem>>, vector<1x384x128xbf16>
    %9 = vector.shape_cast %8 : vector<1x384x128xbf16> to vector<384x128xbf16>
    %cst_9 = arith.constant dense<0.000000e+00> : vector<16x128xf32>
    %10 = tpu.matmul %7, %9, %cst_9 {dimension_numbers = #tpu.dot_dimension_numbers<[1], [0], [0], [1], [0, 0, 1, 1], [], []>} : vector<16x384xbf16>, vector<384x128xbf16>, vector<16x128xf32> -> vector<16x128xf32>
    %11 = arith.addf %0, %10 : vector<16x128xf32>
    %c0_10 = arith.constant 0 : index
    %c8 = arith.constant 8 : index
    %c0_11 = arith.constant 0 : index
    %12 = vector.load %arg1[%c0_10, %c8, %c0_11] : memref<1x40x128xbf16, #tpu.memory_space<vmem>>, vector<1x16x128xbf16>
    %13 = vector.shape_cast %12 : vector<1x16x128xbf16> to vector<16x128xbf16>
    %c0_12 = arith.constant 0 : index
    %c9 = arith.constant 9 : index
    %c0_13 = arith.constant 0 : index
    %14 = vector.load %arg1[%c0_12, %c9, %c0_13] : memref<1x40x128xbf16, #tpu.memory_space<vmem>>, vector<1x16x128xbf16>
    %15 = vector.shape_cast %14 : vector<1x16x128xbf16> to vector<16x128xbf16>
    %c0_14 = arith.constant 0 : index
    %c10 = arith.constant 10 : index
    %c0_15 = arith.constant 0 : index
    %16 = vector.load %arg1[%c0_14, %c10, %c0_15] : memref<1x40x128xbf16, #tpu.memory_space<vmem>>, vector<1x16x128xbf16>
    %17 = vector.shape_cast %16 : vector<1x16x128xbf16> to vector<16x128xbf16>
    %18 = tpu.concatenate %13, %15, %17 in 1 : vector<16x128xbf16>, vector<16x128xbf16>, vector<16x128xbf16> -> vector<16x384xbf16>
    %c1_16 = arith.constant 1 : index
    %c0_17 = arith.constant 0 : index
    %c0_18 = arith.constant 0 : index
    %19 = vector.load %arg2[%c1_16, %c0_17, %c0_18] : memref<3x384x128xbf16, #tpu.memory_space<vmem>>, vector<1x384x128xbf16>
    %20 = vector.shape_cast %19 : vector<1x384x128xbf16> to vector<384x128xbf16>
    %cst_19 = arith.constant dense<0.000000e+00> : vector<16x128xf32>
    %21 = tpu.matmul %18, %20, %cst_19 {dimension_numbers = #tpu.dot_dimension_numbers<[1], [0], [0], [1], [0, 0, 1, 1], [], []>} : vector<16x384xbf16>, vector<384x128xbf16>, vector<16x128xf32> -> vector<16x128xf32>
    %22 = arith.addf %11, %21 : vector<16x128xf32>
    %c0_20 = arith.constant 0 : index
    %c16 = arith.constant 16 : index
    %c0_21 = arith.constant 0 : index
    %23 = vector.load %arg1[%c0_20, %c16, %c0_21] : memref<1x40x128xbf16, #tpu.memory_space<vmem>>, vector<1x16x128xbf16>
    %24 = vector.shape_cast %23 : vector<1x16x128xbf16> to vector<16x128xbf16>
    %c0_22 = arith.constant 0 : index
    %c17 = arith.constant 17 : index
    %c0_23 = arith.constant 0 : index
    %25 = vector.load %arg1[%c0_22, %c17, %c0_23] : memref<1x40x128xbf16, #tpu.memory_space<vmem>>, vector<1x16x128xbf16>
    %26 = vector.shape_cast %25 : vector<1x16x128xbf16> to vector<16x128xbf16>
    %c0_24 = arith.constant 0 : index
    %c18 = arith.constant 18 : index
    %c0_25 = arith.constant 0 : index
    %27 = vector.load %arg1[%c0_24, %c18, %c0_25] : memref<1x40x128xbf16, #tpu.memory_space<vmem>>, vector<1x16x128xbf16>
    %28 = vector.shape_cast %27 : vector<1x16x128xbf16> to vector<16x128xbf16>
    %29 = tpu.concatenate %24, %26, %28 in 1 : vector<16x128xbf16>, vector<16x128xbf16>, vector<16x128xbf16> -> vector<16x384xbf16>
    %c2_26 = arith.constant 2 : index
    %c0_27 = arith.constant 0 : index
    %c0_28 = arith.constant 0 : index
    %30 = vector.load %arg2[%c2_26, %c0_27, %c0_28] : memref<3x384x128xbf16, #tpu.memory_space<vmem>>, vector<1x384x128xbf16>
    %31 = vector.shape_cast %30 : vector<1x384x128xbf16> to vector<384x128xbf16>
    %cst_29 = arith.constant dense<0.000000e+00> : vector<16x128xf32>
    %32 = tpu.matmul %29, %31, %cst_29 {dimension_numbers = #tpu.dot_dimension_numbers<[1], [0], [0], [1], [0, 0, 1, 1], [], []>} : vector<16x384xbf16>, vector<384x128xbf16>, vector<16x128xf32> -> vector<16x128xf32>
    %33 = arith.addf %22, %32 : vector<16x128xf32>
    %c0_30 = arith.constant 0 : index
    %c0_31 = arith.constant 0 : index
    %34 = vector.load %arg3[%c0_30, %c0_31] : memref<1x128xf32, #tpu.memory_space<vmem>>, vector<1x128xf32>
    %35 = vector.broadcast %34 : vector<1x128xf32> to vector<16x128xf32>
    %36 = arith.addf %33, %35 : vector<16x128xf32>
    %cst_32 = arith.constant 0.000000e+00 : f32
    %37 = vector.broadcast %cst_32 : f32 to vector<16x128xf32>
    %38 = arith.maximumf %36, %37 : vector<16x128xf32>
    %39 = arith.truncf %38 : vector<16x128xf32> to vector<16x128xbf16>
    %c0_33 = arith.constant 0 : index
    %c0_34 = arith.constant 0 : index
    %c0_35 = arith.constant 0 : index
    %40 = vector.load %arg4[%c0_33, %c0_34, %c0_35] : memref<1x16x128xbf16, #tpu.memory_space<vmem>>, vector<1x16x128xbf16>
    %41 = vector.shape_cast %40 : vector<1x16x128xbf16> to vector<16x128xbf16>
    %42 = vector.shape_cast %39 : vector<16x128xbf16> to vector<1x16x128xbf16>
    tpu.vector_store %arg4[%c0_33, %c0_34, %c0_35], %42 {strides = array<i32>} : memref<1x16x128xbf16, #tpu.memory_space<vmem>>, vector<1x16x128xbf16>,
    return
  }
  func.func @transform_0(%arg0: i32) -> (i32, i32, i32) {
    %c0_i32 = arith.constant 0 : i32
    %c0_i32_0 = arith.constant 0 : i32
    %c0_i32_1 = arith.constant 0 : i32
    return %arg0, %c0_i32, %c0_i32_0 : i32, i32, i32
  }
  func.func @transform_1(%arg0: i32) -> (i32, i32, i32) {
    %c0_i32 = arith.constant 0 : i32
    %c0_i32_0 = arith.constant 0 : i32
    %c0_i32_1 = arith.constant 0 : i32
    %c0_i32_2 = arith.constant 0 : i32
    return %c0_i32, %c0_i32_0, %c0_i32_1 : i32, i32, i32
  }
  func.func @transform_2(%arg0: i32) -> (i32, i32) {
    %c0_i32 = arith.constant 0 : i32
    %c0_i32_0 = arith.constant 0 : i32
    %c0_i32_1 = arith.constant 0 : i32
    return %c0_i32, %c0_i32_0 : i32, i32
  }
  func.func @transform_3(%arg0: i32) -> (i32, i32, i32) {
    %c0_i32 = arith.constant 0 : i32
    %c0_i32_0 = arith.constant 0 : i32
    %c0_i32_1 = arith.constant 0 : i32
    return %arg0, %c0_i32, %c0_i32_0 : i32, i32, i32
  }
}

module attributes {stable_mosaic.version = 11 : i64} {
  func.func @kernel(%arg0: i32, %arg1: memref<1x40x128xbf16, #tpu.memory_space<vmem>>, %arg2: memref<3x384x128xbf16, #tpu.memory_space<vmem>>, %arg3: memref<1x128xf32, #tpu.memory_space<vmem>>, %arg4: memref<1x16x128xf32, #tpu.memory_space<vmem>>) attributes {dimension_semantics = [#tpu.dimension_semantics<parallel>], iteration_bounds = array<i64: 2>, scalar_prefetch = 0 : i64, scratch_operands = 0 : i64, tpu.core_type = #tpu.core_type<tc>, window_params = [{transform_indices = @transform_0, window_bounds = array<i64: 1, 40, 128>}, {pipeline_mode = #tpu.pipeline_mode<synchronous>, transform_indices = @transform_1, window_bounds = array<i64: 3, 384, 128>}, {pipeline_mode = #tpu.pipeline_mode<synchronous>, transform_indices = @transform_2, window_bounds = array<i64: 1, 128>}, {transform_indices = @transform_3, window_bounds = array<i64: 1, 16, 128>}]} {
    %cst = arith.constant 0.000000e+00 : f32
    %0 = vector.broadcast %cst : f32 to vector<16x128xf32>
    %c0 = arith.constant 0 : index
    %c0_0 = arith.constant 0 : index
    %c0_1 = arith.constant 0 : index
    %1 = vector.load %arg1[%c0, %c0_0, %c0_1] : memref<1x40x128xbf16, #tpu.memory_space<vmem>>, vector<1x16x128xbf16>
    %2 = vector.shape_cast %1 : vector<1x16x128xbf16> to vector<16x128xbf16>
    %c0_2 = arith.constant 0 : index
    %c1 = arith.constant 1 : index
    %c0_3 = arith.constant 0 : index
    %3 = vector.load %arg1[%c0_2, %c1, %c0_3] : memref<1x40x128xbf16, #tpu.memory_space<vmem>>, vector<1x16x128xbf16>
    %4 = vector.shape_cast %3 : vector<1x16x128xbf16> to vector<16x128xbf16>
    %c0_4 = arith.constant 0 : index
    %c2 = arith.constant 2 : index
    %c0_5 = arith.constant 0 : index
    %5 = vector.load %arg1[%c0_4, %c2, %c0_5] : memref<1x40x128xbf16, #tpu.memory_space<vmem>>, vector<1x16x128xbf16>
    %6 = vector.shape_cast %5 : vector<1x16x128xbf16> to vector<16x128xbf16>
    %7 = tpu.concatenate %2, %4, %6 in 1 : vector<16x128xbf16>, vector<16x128xbf16>, vector<16x128xbf16> -> vector<16x384xbf16>
    %c0_6 = arith.constant 0 : index
    %c0_7 = arith.constant 0 : index
    %c0_8 = arith.constant 0 : index
    %8 = vector.load %arg2[%c0_6, %c0_7, %c0_8] : memref<3x384x128xbf16, #tpu.memory_space<vmem>>, vector<1x384x128xbf16>
    %9 = vector.shape_cast %8 : vector<1x384x128xbf16> to vector<384x128xbf16>
    %cst_9 = arith.constant dense<0.000000e+00> : vector<16x128xf32>
    %10 = tpu.matmul %7, %9, %cst_9 {dimension_numbers = #tpu.dot_dimension_numbers<[1], [0], [0], [1], [0, 0, 1, 1], [], []>} : vector<16x384xbf16>, vector<384x128xbf16>, vector<16x128xf32> -> vector<16x128xf32>
    %11 = arith.addf %0, %10 : vector<16x128xf32>
    %c0_10 = arith.constant 0 : index
    %c8 = arith.constant 8 : index
    %c0_11 = arith.constant 0 : index
    %12 = vector.load %arg1[%c0_10, %c8, %c0_11] : memref<1x40x128xbf16, #tpu.memory_space<vmem>>, vector<1x16x128xbf16>
    %13 = vector.shape_cast %12 : vector<1x16x128xbf16> to vector<16x128xbf16>
    %c0_12 = arith.constant 0 : index
    %c9 = arith.constant 9 : index
    %c0_13 = arith.constant 0 : index
    %14 = vector.load %arg1[%c0_12, %c9, %c0_13] : memref<1x40x128xbf16, #tpu.memory_space<vmem>>, vector<1x16x128xbf16>
    %15 = vector.shape_cast %14 : vector<1x16x128xbf16> to vector<16x128xbf16>
    %c0_14 = arith.constant 0 : index
    %c10 = arith.constant 10 : index
    %c0_15 = arith.constant 0 : index
    %16 = vector.load %arg1[%c0_14, %c10, %c0_15] : memref<1x40x128xbf16, #tpu.memory_space<vmem>>, vector<1x16x128xbf16>
    %17 = vector.shape_cast %16 : vector<1x16x128xbf16> to vector<16x128xbf16>
    %18 = tpu.concatenate %13, %15, %17 in 1 : vector<16x128xbf16>, vector<16x128xbf16>, vector<16x128xbf16> -> vector<16x384xbf16>
    %c1_16 = arith.constant 1 : index
    %c0_17 = arith.constant 0 : index
    %c0_18 = arith.constant 0 : index
    %19 = vector.load %arg2[%c1_16, %c0_17, %c0_18] : memref<3x384x128xbf16, #tpu.memory_space<vmem>>, vector<1x384x128xbf16>
    %20 = vector.shape_cast %19 : vector<1x384x128xbf16> to vector<384x128xbf16>
    %cst_19 = arith.constant dense<0.000000e+00> : vector<16x128xf32>
    %21 = tpu.matmul %18, %20, %cst_19 {dimension_numbers = #tpu.dot_dimension_numbers<[1], [0], [0], [1], [0, 0, 1, 1], [], []>} : vector<16x384xbf16>, vector<384x128xbf16>, vector<16x128xf32> -> vector<16x128xf32>
    %22 = arith.addf %11, %21 : vector<16x128xf32>
    %c0_20 = arith.constant 0 : index
    %c16 = arith.constant 16 : index
    %c0_21 = arith.constant 0 : index
    %23 = vector.load %arg1[%c0_20, %c16, %c0_21] : memref<1x40x128xbf16, #tpu.memory_space<vmem>>, vector<1x16x128xbf16>
    %24 = vector.shape_cast %23 : vector<1x16x128xbf16> to vector<16x128xbf16>
    %c0_22 = arith.constant 0 : index
    %c17 = arith.constant 17 : index
    %c0_23 = arith.constant 0 : index
    %25 = vector.load %arg1[%c0_22, %c17, %c0_23] : memref<1x40x128xbf16, #tpu.memory_space<vmem>>, vector<1x16x128xbf16>
    %26 = vector.shape_cast %25 : vector<1x16x128xbf16> to vector<16x128xbf16>
    %c0_24 = arith.constant 0 : index
    %c18 = arith.constant 18 : index
    %c0_25 = arith.constant 0 : index
    %27 = vector.load %arg1[%c0_24, %c18, %c0_25] : memref<1x40x128xbf16, #tpu.memory_space<vmem>>, vector<1x16x128xbf16>
    %28 = vector.shape_cast %27 : vector<1x16x128xbf16> to vector<16x128xbf16>
    %29 = tpu.concatenate %24, %26, %28 in 1 : vector<16x128xbf16>, vector<16x128xbf16>, vector<16x128xbf16> -> vector<16x384xbf16>
    %c2_26 = arith.constant 2 : index
    %c0_27 = arith.constant 0 : index
    %c0_28 = arith.constant 0 : index
    %30 = vector.load %arg2[%c2_26, %c0_27, %c0_28] : memref<3x384x128xbf16, #tpu.memory_space<vmem>>, vector<1x384x128xbf16>
    %31 = vector.shape_cast %30 : vector<1x384x128xbf16> to vector<384x128xbf16>
    %cst_29 = arith.constant dense<0.000000e+00> : vector<16x128xf32>
    %32 = tpu.matmul %29, %31, %cst_29 {dimension_numbers = #tpu.dot_dimension_numbers<[1], [0], [0], [1], [0, 0, 1, 1], [], []>} : vector<16x384xbf16>, vector<384x128xbf16>, vector<16x128xf32> -> vector<16x128xf32>
    %33 = arith.addf %22, %32 : vector<16x128xf32>
    %c0_30 = arith.constant 0 : index
    %c0_31 = arith.constant 0 : index
    %34 = vector.load %arg3[%c0_30, %c0_31] : memref<1x128xf32, #tpu.memory_space<vmem>>, vector<1x128xf32>
    %35 = vector.broadcast %34 : vector<1x128xf32> to vector<16x128xf32>
    %36 = arith.addf %33, %35 : vector<16x128xf32>
    %cst_32 = arith.constant 0.000000e+00 : f32
    %37 = vector.broadcast %cst_32 : f32 to vector<16x128xf32>
    %38 = arith.maximumf %36, %37 : vector<16x128xf32>
    %c0_33 = arith.constant 0 : index
    %c0_34 = arith.constant 0 : index
    %c0_35 = arith.constant 0 : index
    %39 = vector.load %arg4[%c0_33, %c0_34, %c0_35] : memref<1x16x128xf32, #tpu.memory_space<vmem>>, vector<1x16x128xf32>
    %40 = vector.shape_cast %39 : vector<1x16x128xf32> to vector<16x128xf32>
    %41 = vector.shape_cast %38 : vector<16x128xf32> to vector<1x16x128xf32>
    tpu.vector_store %arg4[%c0_33, %c0_34, %c0_35], %41 {strides = array<i32>} : memref<1x16x128xf32, #tpu.memory_space<vmem>>, vector<1x16x128xf32>,
    return
  }
  func.func @transform_0(%arg0: i32) -> (i32, i32, i32) {
    %c0_i32 = arith.constant 0 : i32
    %c0_i32_0 = arith.constant 0 : i32
    %c0_i32_1 = arith.constant 0 : i32
    return %arg0, %c0_i32, %c0_i32_0 : i32, i32, i32
  }
  func.func @transform_1(%arg0: i32) -> (i32, i32, i32) {
    %c0_i32 = arith.constant 0 : i32
    %c0_i32_0 = arith.constant 0 : i32
    %c0_i32_1 = arith.constant 0 : i32
    %c0_i32_2 = arith.constant 0 : i32
    return %c0_i32, %c0_i32_0, %c0_i32_1 : i32, i32, i32
  }
  func.func @transform_2(%arg0: i32) -> (i32, i32) {
    %c0_i32 = arith.constant 0 : i32
    %c0_i32_0 = arith.constant 0 : i32
    %c0_i32_1 = arith.constant 0 : i32
    return %c0_i32, %c0_i32_0 : i32, i32
  }
  func.func @transform_3(%arg0: i32) -> (i32, i32, i32) {
    %c0_i32 = arith.constant 0 : i32
    %c0_i32_0 = arith.constant 0 : i32
    %c0_i32_1 = arith.constant 0 : i32
    return %arg0, %c0_i32, %c0_i32_0 : i32, i32, i32
  }
}

</mosaic_0001>

<bundles_post_ra>
// kernel: _lambda_.8
= control target key start
LH: loop header
LB: loop body
LE: loop exit
PB: predicated region body
PF: predicated region fallthrough
CT: control target
= control target key end

     0   :  { %s2519_s21 = smov 0   ;;  %s2915_s0 = inlined_call_operand.vmem [shape: bf16[2,152,8], index: 0, kind: input, shape index: {}]   ;;  %s2916_s1 = inlined_call_operand.vmem [shape: bf16[2,152,8], index: 1, kind: input, shape index: {}]   ;;  %s2917_s2 = inlined_call_operand.vmem [shape: bf16[2,152,8], index: 2, kind: input, shape index: {}]   ;;  %s2918_s3 = inlined_call_operand.vmem [shape: bf16[2,152,8], index: 3, kind: input, shape index: {}]   ;;  %s2919_s4 = inlined_call_operand.vmem [shape: bf16[9,8,64], index: 4, kind: input, shape index: {}]   ;;  %s2920_s5 = inlined_call_operand.vmem [shape: f32[1,64], index: 5, kind: input, shape index: {}]   ;;  %s2921_s6 = inlined_call_operand.vmem [shape: bf16[2,128,64], index: 6, kind: output, shape index: {}]  }
   0x1 LB: > { %s2009_s22 = sadd.s32 4294967295, %s2482_s21   ;;  %p2013_p0 = scmp.ge.s32.totalorder %s2482_s21, 1  ;;  %s2482_s21 = sphi %s2519_s21, %s16_s21  }
   0x2   : > { %p242_p1 = scmp.lt.s32.totalorder %s2482_s21, 3 }
   0x4   : > { %p243_p2 = pnand %p2013_p0, %p242_p1 }
   0x5   : > { %p287_p3 = scmp.lt.s32.totalorder (!%p243_p2), %s2009_s22, 1 }
   0x6   : > { %246 = sbr.rel (%p243_p2) target bundleno = 444 (0x1bc), region = 44 }
   0xb   : > { %v2020_v0 = vld [vmem:[%s2919_s4 + $0x4] sm:$0xf]  ;;  %vm413_vm0 = vcmask 1043456   ;;  %v2101_v2 = vld [vmem:[%s2919_s4 + $0x8] sm:$0xf]  ;;  %s2923_s22 = smov (!%p287_p3, %s2009_s22), 1 }
   0xc   : > { %v415_v1 = vsel %vm413_vm0, %v2020_v0, 0  ;;  %v2142_v3 = vld [vmem:[%s2919_s4 + $0xc] sm:$0xf]  ;;  %v738_v4 = vsel %vm413_vm0, %v2101_v2, 0  ;;  %v329_v6 = vld [vmem:[%s2919_s4] sm:$0xf] }
   0xd   : > { %2463 = vmatpush.bf16.msra.mxu1 %v415_v1  ;;  %2464 = vmatpush.bf16.msra.mxu2 %v415_v1  ;;  %v888_v5 = vsel %vm413_vm0, %v2142_v3, 0  ;;  %v531_v7 = vsel %vm413_vm0, %v329_v6, 0  ;;  %v2183_v8 = vld [vmem:[%s2919_s4 + $0x10] sm:$0xf]  ;;  %s2549_s9 = smul.u32 76, %s2923_s22  ;;  %vm388_vm1 = vcmask 64512  }
   0xe   : > { %2465 = vmatpush.bf16.msra.mxu3 %v415_v1  ;;  %424 = vmatpush.bf16.msra.mxu0 %v415_v1  ;;  %v1038_v9 = vsel %vm413_vm0, %v2183_v8, 0  ;;  %v2265_v14 = vld [vmem:[%s2919_s4 + $0x18] sm:$0xf]  ;;  %v2306_v15 = vld [vmem:[%s2919_s4 + $0x1c] sm:$0xf]  ;;  %s2390_s10 = sshll.u32 %s2923_s22, 6 }
   0xf   : > { %s2556_s12 = scalar_lea.vmem %s2916_s1, %s2549_s9  ;;  %v1410_v16 = vsel %vm413_vm0, %v2265_v14, 0  ;;  %v2224_v17 = vld [vmem:[%s2919_s4 + $0x14] sm:$0xf]  ;;  %v1560_v18 = vsel %vm413_vm0, %v2306_v15, 0  ;;  %v2347_v20 = vld [vmem:[%s2919_s4 + $0x20] sm:$0xf]  ;;  %s2586_s25 = scalar_lea.vmem %s2915_s0, %s2549_s9 }
  0x10   : > { %v2401_v10 = vld [vmem:[%s2556_s12 + $0x10] sm:$0xff]  ;;  %v2403_v11 = vld [vmem:[%s2556_s12 + $0x20] sm:$0xff]  ;;  %v1260_v19 = vsel %vm413_vm0, %v2224_v17, 0  ;;  %v1782_v21 = vsel %vm413_vm0, %v2347_v20, 0  ;;  %v2402_v22 = vld [vmem:[%s2556_s12 + $0x18] sm:$0xff]  ;;  %s2602_s28 = scalar_lea.vmem %s2917_s2, %s2549_s9  ;;  %s2608_s7 = scalar_lea.vmem %s2918_s3, %s2549_s9  ;;  %vm1901_vm3 = vcmask 519168  }
  0x11   : > { %747 = vmatpush.bf16.msrb.mxu2 %v738_v4  ;;  %540 = vmatpush.bf16.msrb.mxu1 %v531_v7  ;;  %v2405_v12 = vld [vmem:[%s2556_s12 + $0x30] sm:$0xff]  ;;  %v2399_v13 = vld [vmem:[%s2556_s12] sm:$0xff]  ;;  %v2404_v23 = vld [vmem:[%s2556_s12 + $0x28] sm:$0xff]  ;;  %vm644_vm2 = vsmask.f32 7424  ;;  %s2849_s13 = scalar_lea.vmem %s2921_s6, %s2390_s10 }
  0x12   : > { %897 = vmatpush.bf16.msrb.mxu3 %v888_v5  ;;  %1047 = vmatpush.bf16.msrb.mxu0 %v1038_v9  ;;  %v2406_v24 = vld [vmem:[%s2556_s12 + $0x38] sm:$0xff]  ;;  %v2400_v25 = vld [vmem:[%s2556_s12 + $0x8] sm:$0xff]  ;;  %v2407_v26 = vld [vmem:[%s2586_s25] sm:$0xff] }
  0x13   : > { %2055 = vmatmul.msk.bf16.vlgmr.msra.gmra.mxu1 %vm388_vm1, %v2401_v10  ;;  %2057 = vmatmul.msk.bf16.vlgmr.msra.gmra.mxu2 %vm388_vm1, %v2403_v11  ;;  %v2408_v27 = vld [vmem:[%s2586_s25 + $0x8] sm:$0xff]  ;;  %v648_v28 = vshll.u32 %v2407_v26, 16  ;;  %v646_v29 = vshrl.u32 %v2407_v26, 16  ;;  %v2391_v34 = vld [vmem:[%s2586_s25] sm:$0xff]  ;;  %v2409_v38 = vld [vmem:[%s2586_s25 + $0x10] sm:$0xff] }
  0x14   : > { %2059 = vmatmul.msk.bf16.vlgmr.msra.gmra.mxu3 %vm388_vm1, %v2405_v12  ;;  %2053 = vmatmul.msk.bf16.vlgmr.msra.gmra.mxu0 %vm388_vm1, %v2399_v13  ;;  %v653_v31 = vshll.u32 %v2408_v27, 16  ;;  %v2415_v36 = vld [vmem:[%s2602_s28] sm:$0xff]  ;;  %v657_v39 = vshrl.u32 %v2408_v27, 16  ;;  %v661_v40 = vshll.u32 %v2409_v38, 16  ;;  %v2392_v43 = vld [vmem:[%s2586_s25 + $0x8] sm:$0xff]  ;;  %v2410_v47 = vld [vmem:[%s2586_s25 + $0x18] sm:$0xff] }
  0x15   : > { %1419 = vmatpush.bf16.msra.mxu2 %v1410_v16  ;;  %1269 = vmatpush.bf16.msra.mxu1 %v1260_v19  ;;  %v650_v30 = vrot.slane %v648_v28, 1  ;;  %v2423_v37 = vld [vmem:[%s2608_s7] sm:$0xff]  ;;  %v2416_v45 = vld [vmem:[%s2602_s28 + $0x8] sm:$0xff]  ;;  %v665_v48 = vshrl.u32 %v2409_v38, 16  ;;  %v669_v49 = vshll.u32 %v2410_v47, 16  ;;  %v2393_v52 = vld [vmem:[%s2586_s25 + $0x10] sm:$0xff] }
  0x16   : > { %1569 = vmatpush.bf16.msra.mxu3 %v1560_v18  ;;  %1791 = vmatpush.bf16.msra.mxu0 %v1782_v21  ;;  %v655_v33 = vrot.slane %v653_v31, 1  ;;  %v663_v42 = vrot.slane %v661_v40, 1  ;;  %v2424_v46 = vld [vmem:[%s2608_s7 + $0x8] sm:$0xff]  ;;  %v2417_v54 = vld [vmem:[%s2602_s28 + $0x10] sm:$0xff]  ;;  %v2411_v56 = vld [vmem:[%s2586_s25 + $0x20] sm:$0xff]  ;;  %v673_v57 = vshrl.u32 %v2410_v47, 16 }
  0x17   : > { %v651_v32 = vor.u32 %v650_v30, %v646_v29  ;;  %v671_v51 = vrot.slane %v669_v49, 1  ;;  %v2425_v55 = vld [vmem:[%s2608_s7 + $0x10] sm:$0xff]  ;;  %v677_v58 = vshll.u32 %v2411_v56, 16  ;;  %v2394_v61 = vld [vmem:[%s2586_s25 + $0x18] sm:$0xff]  ;;  %v2412_v1 = vld [vmem:[%s2586_s25 + $0x28] sm:$0xff]  ;;  %v681_v2 = vshrl.u32 %v2411_v56, 16 }
  0x18   : > { %v659_v41 = vor.u32 %v657_v39, %v655_v33  ;;  %v667_v50 = vor.u32 %v665_v48, %v663_v42  ;;  %v2418_v63 = vld [vmem:[%s2602_s28 + $0x18] sm:$0xff]  ;;  %v685_v3 = vshll.u32 %v2412_v1, 16  ;;  %v2395_v6 = vld [vmem:[%s2586_s25 + $0x20] sm:$0xff]  ;;  %v2413_v10 = vld [vmem:[%s2586_s25 + $0x30] sm:$0xff]  ;;  %v689_v11 = vshrl.u32 %v2412_v1, 16 }
  0x19   : > { %v656_v35 = vsel %vm644_vm2, %v651_v32, %v655_v33  ;;  %v675_v59 = vor.u32 %v673_v57, %v671_v51  ;;  %v679_v60 = vrot.slane %v677_v58, 1  ;;  %v2426_v0 = vld [vmem:[%s2608_s7 + $0x18] sm:$0xff]  ;;  %v2419_v8 = vld [vmem:[%s2602_s28 + $0x20] sm:$0xff]  ;;  %v693_v12 = vshll.u32 %v2413_v10, 16  ;;  %v2396_v15 = vld [vmem:[%s2586_s25 + $0x28] sm:$0xff] }
  0x1a   : > { %v664_v44 = vsel %vm644_vm2, %v659_v41, %v663_v42  ;;  %v672_v53 = vsel %vm644_vm2, %v667_v50, %v671_v51  ;;  %v687_v5 = vrot.slane %v685_v3, 1  ;;  %v2427_v9 = vld [vmem:[%s2608_s7 + $0x20] sm:$0xff]  ;;  %v2420_v17 = vld [vmem:[%s2602_s28 + $0x28] sm:$0xff]  ;;  %v2414_v19 = vld [vmem:[%s2586_s25 + $0x38] sm:$0xff]  ;;  %v697_v20 = vshrl.u32 %v2413_v10, 16 }
  0x1b   : > { %v680_v62 = vsel %vm644_vm2, %v675_v59, %v679_v60  ;;  %v683_v4 = vor.u32 %v681_v2, %v679_v60  ;;  %v695_v14 = vrot.slane %v693_v12, 1  ;;  %v2428_v18 = vld [vmem:[%s2608_s7 + $0x28] sm:$0xff]  ;;  %v701_v21 = vshll.u32 %v2414_v19, 16  ;;  %v2421_v28 = vld [vmem:[%s2602_s28 + $0x30] sm:$0xff]  ;;  %v2430_v47 = vld [vmem:[%s2608_s7 + $0x38] sm:$0xff] }
  0x1c   : > { %v691_v13 = vor.u32 %v689_v11, %v687_v5  ;;  %v2429_v29 = vld [vmem:[%s2608_s7 + $0x30] sm:$0xff]  ;;  %v2431_v48 = vld [vmem:[%s2602_s28] sm:$0xff]  ;;  %v2455_v50 = vld [vmem:[%s2586_s25 + $0x8] sm:$0xff] }
  0x1d   : > { %v688_v7 = vsel %vm644_vm2, %v683_v4, %v687_v5  ;;  %v2432_v51 = vld [vmem:[%s2602_s28 + $0x8] sm:$0xff]  ;;  %v1168_v58 = vshrl.u32 %v2431_v48, 16 }
  0x1e   : > { %v696_v16 = vsel %vm644_vm2, %v691_v13, %v695_v14  ;;  %v1175_v60 = vshll.u32 %v2432_v51, 16  ;;  %v2447_v10 = vld [vmem:[%s2556_s12 + $0x8] sm:$0xff] }
  0x20   : > { %v1177_v2 = vrot.slane %v1175_v60, 1 }
  0x23   : > { %2056 = vmatmul.msk.bf16.gmra.mxu1 %vm388_vm1, %v2402_v22  ;;  %2058 = vmatmul.msk.bf16.gmra.mxu2 %vm388_vm1, %v2404_v23  ;;  %v699_v22 = vor.u32 %v697_v20, %v695_v14  ;;  %v703_v23 = vrot.slane %v701_v21, 1  ;;  %v2433_v14 = vld [vmem:[%s2602_s28 + $0x10] sm:$0xff]  ;;  %v1179_v20 = vshrl.u32 %v2432_v51, 16 }
  0x24   : > { %2060 = vmatmul.msk.bf16.gmra.mxu3 %vm388_vm1, %v2406_v24  ;;  %2054 = vmatmul.msk.bf16.gmra.mxu0 %vm388_vm1, %v2400_v25  ;;  %v598_v24 = vld [vmem:[%s2586_s25 + $0x40] sm:$0x1]  ;;  %v2397_v25 = vld [vmem:[%s2586_s25 + $0x30] sm:$0xff]  ;;  %v1183_v21 = vshll.u32 %v2433_v14, 16 }
  0x25   : > { %v704_v27 = vsel %vm644_vm2, %v699_v22, %v703_v23  ;;  %v634_v30 = vunpack.c.l.b16 %v598_v24 }
  0x27   : > { %v643_v32 = vpack.c.b16 %v634_v30, %v634_v30  ;;  %v1185_v30 = vrot.slane %v1183_v21, 1 }
  0x33   : > { %2093 = vmatmul.msk.bf16.vlgmr.msrb.gmra.mxu1 %vm388_vm1, %v2391_v34  ;;  %2134 = vmatmul.msk.bf16.vlgmr.msrb.gmra.mxu2 %vm388_vm1, %v656_v35 }
  0x34   : > { %2175 = vmatmul.msk.bf16.vlgmr.msrb.gmra.mxu3 %vm388_vm1, %v2415_v36  ;;  %2216 = vmatmul.msk.bf16.vlgmr.msrb.gmra.mxu0 %vm388_vm1, %v2423_v37  ;;  %v705_v36 = vshrl.u32 %v2414_v19, 16  ;;  %v709_v37 = vshll.u32 %v643_v32, 16 }
  0x36   : > { %v707_v39 = vor.u32 %v705_v36, %v703_v23  ;;  %v711_v40 = vrot.slane %v709_v37, 1 }
  0x43   : > { %2094 = vmatmul.msk.bf16.gmra.mxu1 %vm388_vm1, %v2392_v43  ;;  %2135 = vmatmul.msk.bf16.gmra.mxu2 %vm388_vm1, %v664_v44  ;;  %v2398_v43 = vld [vmem:[%s2586_s25 + $0x38] sm:$0xff] }
  0x44   : > { %2176 = vmatmul.msk.bf16.gmra.mxu3 %vm388_vm1, %v2416_v45  ;;  %2217 = vmatmul.msk.bf16.gmra.mxu0 %vm388_vm1, %v2424_v46  ;;  %v712_v45 = vsel %vm644_vm2, %v707_v39, %v711_v40  ;;  %v2422_v46 = vld [vmem:[%s2602_s28 + $0x38] sm:$0xff]  ;;  %v2440_v40 = vld [vmem:[%s2586_s25 + $0x10] sm:$0xff] }
  0x53   : > { %2095 = vmatmul.msk.bf16.gmra.mxu1 %vm388_vm1, %v2393_v52  ;;  %2136 = vmatmul.msk.bf16.gmra.mxu2 %vm388_vm1, %v672_v53  ;;  %v1170_v52 = vshll.u32 %v2431_v48, 16  ;;  %v2456_v53 = vld [vmem:[%s2586_s25 + $0x10] sm:$0xff] }
  0x54   : > { %2177 = vmatmul.msk.bf16.gmra.mxu3 %vm388_vm1, %v2417_v54  ;;  %2218 = vmatmul.msk.bf16.gmra.mxu0 %vm388_vm1, %v2425_v55  ;;  %v1692_v54 = vshll.u32 %v2455_v50, 16 }
  0x55   : > { %v1172_v59 = vrot.slane %v1170_v52, 1  ;;  %v2434_v52 = vld [vmem:[%s2602_s28 + $0x18] sm:$0xff] }
  0x57   : > { %v1173_v1 = vor.u32 %v1172_v59, %v1168_v58 }
  0x63   : > { %2096 = vmatmul.msk.bf16.gmra.mxu1 %vm388_vm1, %v2394_v61  ;;  %2137 = vmatmul.msk.bf16.gmra.mxu2 %vm388_vm1, %v680_v62  ;;  %v1690_v62 = vshrl.u32 %v2455_v50, 16 }
  0x64   : > { %2178 = vmatmul.msk.bf16.gmra.mxu3 %vm388_vm1, %v2418_v63  ;;  %2219 = vmatmul.msk.bf16.gmra.mxu0 %vm388_vm1, %v2426_v0  ;;  %v1694_v63 = vrot.slane %v1692_v54, 1  ;;  %v1697_v0 = vshll.u32 %v2456_v53, 16 }
  0x66   : > { %v1695_v3 = vor.u32 %v1694_v63, %v1690_v62  ;;  %v1699_v4 = vrot.slane %v1697_v0, 1  ;;  %v1191_v62 = vshll.u32 %v2434_v52, 16 }
  0x68   : > { %v1700_v13 = vsel %vm644_vm2, %v1695_v3, %v1699_v4 }
  0x73   : > { %2097 = vmatmul.msk.bf16.gmra.mxu1 %vm388_vm1, %v2395_v6  ;;  %2138 = vmatmul.msk.bf16.gmra.mxu2 %vm388_vm1, %v688_v7  ;;  %v2439_v7 = vld [vmem:[%s2586_s25 + $0x8] sm:$0xff] }
  0x74   : > { %2179 = vmatmul.msk.bf16.gmra.mxu3 %vm388_vm1, %v2419_v8  ;;  %2220 = vmatmul.msk.bf16.gmra.mxu0 %vm388_vm1, %v2427_v9  ;;  %v1178_v9 = vsel %vm644_vm2, %v1173_v1, %v1177_v2 }
  0x83   : > { %2098 = vmatmul.msk.bf16.gmra.mxu1 %vm388_vm1, %v2396_v15  ;;  %2139 = vmatmul.msk.bf16.gmra.mxu2 %vm388_vm1, %v696_v16  ;;  %v2457_v15 = vld [vmem:[%s2586_s25 + $0x18] sm:$0xff] }
  0x84   : > { %2180 = vmatmul.msk.bf16.gmra.mxu3 %vm388_vm1, %v2420_v17  ;;  %2221 = vmatmul.msk.bf16.gmra.mxu0 %vm388_vm1, %v2428_v18 }
  0x90   : > { %v2666_v26 = vpop.f32.mrf.mxu1 }
  0x91   : > { %v426_v31 = vpop.f32.mrf.mxu0 }
  0x93   : > { %2099 = vmatmul.msk.bf16.gmra.mxu1 %vm388_vm1, %v2397_v25  ;;  %2140 = vmatmul.msk.bf16.gmra.mxu2 %vm388_vm1, %v704_v27  ;;  %v1701_v25 = vshrl.u32 %v2456_v53, 16  ;;  %v1705_v27 = vshll.u32 %v2457_v15, 16  ;;  %v2458_v53 = vld [vmem:[%s2586_s25 + $0x20] sm:$0xff] }
  0x94   : > { %2181 = vmatmul.msk.bf16.gmra.mxu3 %vm388_vm1, %v2421_v28  ;;  %2222 = vmatmul.msk.bf16.gmra.mxu0 %vm388_vm1, %v2429_v29  ;;  %v1181_v29 = vor.u32 %v1179_v20, %v1177_v2  ;;  %v1709_v2 = vshrl.u32 %v2457_v15, 16  ;;  %v1713_v3 = vshll.u32 %v2458_v53, 16 }
  0x95   : > { %v1707_v32 = vrot.slane %v1705_v27, 1 }
  0x96   : > { %v2675_v33 = vpop.f32.mrf.mxu2 }
  0x97   : > { %v2677_v34 = vpop.f32.mrf.mxu3 }
  0x98   : > { %v2679_v35 = vpop.f32.mrf.mxu1 }
  0x99   : > { %v428_v38 = vpop.f32.mrf.mxu0 }
  0x9e   : > { %v2681_v41 = vpop.f32.mrf.mxu2 }
  0x9f   : > { %v2683_v42 = vpop.f32.mrf.mxu3 }
  0xa0   : > { %v2686_v44 = vpop.f32.mrf.mxu1 }
  0xa1   : > { %v2692_v49 = vpop.f32.mrf.mxu0 }
  0xa3   : > { %2100 = vmatmul.msk.bf16.gmra.mxu1 %vm388_vm1, %v2398_v43  ;;  %2141 = vmatmul.msk.bf16.gmra.mxu2 %vm388_vm1, %v712_v45  ;;  %v1186_v45 = vsel %vm644_vm2, %v1181_v29, %v1185_v30 }
  0xa4   : > { %2182 = vmatmul.msk.bf16.gmra.mxu3 %vm388_vm1, %v2422_v46  ;;  %2223 = vmatmul.msk.bf16.gmra.mxu0 %vm388_vm1, %v2430_v47  ;;  %v2448_v46 = vld [vmem:[%s2556_s12 + $0x10] sm:$0xff] }
  0xa6   : > { %v2701_v55 = vpop.f32.mrf.mxu2 }
  0xa7   : > { %v2703_v56 = vpop.f32.mrf.mxu3 }
  0xa8   : > { %v2705_v57 = vpop.f32.mrf.mxu1 }
  0xa9   : > { %v2707_v61 = vpop.f32.mrf.mxu0 }
  0xae   : > { %v2709_v5 = vpop.f32.mrf.mxu2 }
  0xaf   : > { %v2711_v6 = vpop.f32.mrf.mxu3 }
  0xb0   : > { %v542_v8 = vpop.f32.mrf.mxu1 }
  0xb1   : > { %v543_v11 = vadd.f32 %v542_v8, %v426_v31  ;;  %v1049_v12 = vpop.f32.mrf.mxu0  ;;  %v1703_v31 = vor.u32 %v1701_v25, %v1699_v4  ;;  %v1193_v8 = vrot.slane %v1191_v62, 1 }
  0xb3   : > { %2257 = vmatmul.msk.bf16.vlgmr.msra.gmra.mxu1 %vm388_vm1, %v1178_v9  ;;  %2298 = vmatmul.msk.bf16.vlgmr.msra.gmra.mxu2 %vm388_vm1, %v2439_v7  ;;  %v1708_v50 = vsel %vm644_vm2, %v1703_v31, %v1707_v32  ;;  %v1711_v9 = vor.u32 %v1709_v2, %v1707_v32 }
  0xb4   : > { %2339 = vmatmul.msk.bf16.vlgmr.msra.gmra.mxu3 %vm388_vm1, %v2447_v10  ;;  %2380 = vmatmul.msk.bf16.vlgmr.msra.gmra.mxu0 %vm388_vm1, %v1700_v13  ;;  %v1715_v10 = vrot.slane %v1713_v3, 1 }
  0xb6   : > { %v749_v16 = vpop.f32.mrf.mxu2  ;;  %v1716_v20 = vsel %vm644_vm2, %v1711_v9, %v1715_v10 }
  0xb7   : > { %v789_v17 = vadd.f32 %v749_v16, %v543_v11  ;;  %v899_v18 = vpop.f32.mrf.mxu3 }
  0xb8   : > { %v544_v19 = vpop.f32.mrf.mxu1 }
  0xb9   : > { %v939_v22 = vadd.f32 %v899_v18, %v789_v17  ;;  %v545_v23 = vadd.f32 %v544_v19, %v428_v38  ;;  %v1051_v24 = vpop.f32.mrf.mxu0  ;;  %v2449_v18 = vld [vmem:[%s2556_s12 + $0x18] sm:$0xff] }
  0xbb   : > { %v2723_v28 = vadd.f32 %v1049_v12, %v939_v22  ;;  %v2435_v22 = vld [vmem:[%s2602_s28 + $0x20] sm:$0xff] }
  0xbe   : > { %v751_v36 = vpop.f32.mrf.mxu2 }
  0xbf   : > { %v790_v37 = vadd.f32 %v751_v36, %v545_v23  ;;  %v901_v39 = vpop.f32.mrf.mxu3  ;;  %v2459_v23 = vld [vmem:[%s2586_s25 + $0x28] sm:$0xff] }
  0xc0   : > { %v547_v43 = vpop.f32.mrf.mxu1 }
  0xc1   : > { %v940_v38 = vadd.f32 %v901_v39, %v790_v37  ;;  %v548_v47 = vadd.f32 %v547_v43, %v2692_v49  ;;  %v1054_v48 = vpop.f32.mrf.mxu0  ;;  %v1187_v49 = vshrl.u32 %v2433_v14, 16  ;;  %v2441_v14 = vld [vmem:[%s2586_s25 + $0x18] sm:$0xff]  ;;  %v1717_v37 = vshrl.u32 %v2458_v53, 16 }
  0xc2   : > { %v1721_v39 = vshll.u32 %v2459_v23, 16 }
  0xc3   : > { %2258 = vmatmul.msk.bf16.gmra.mxu1 %vm388_vm1, %v1186_v45  ;;  %2299 = vmatmul.msk.bf16.gmra.mxu2 %vm388_vm1, %v2440_v40  ;;  %v2732_v51 = vadd.f32 %v1051_v24, %v940_v38  ;;  %v1189_v7 = vor.u32 %v1187_v49, %v1185_v30  ;;  %v1199_v30 = vshll.u32 %v2435_v22, 16 }
  0xc4   : > { %2340 = vmatmul.msk.bf16.gmra.mxu3 %vm388_vm1, %v2448_v46  ;;  %2381 = vmatmul.msk.bf16.gmra.mxu0 %vm388_vm1, %v1708_v50  ;;  %v1719_v46 = vor.u32 %v1717_v37, %v1715_v10  ;;  %v1723_v38 = vrot.slane %v1721_v39, 1 }
  0xc5   : > { %v1194_v17 = vsel %vm644_vm2, %v1189_v7, %v1193_v8  ;;  %v1201_v45 = vrot.slane %v1199_v30, 1  ;;  %v2437_v30 = vld [vmem:[%s2602_s28 + $0x30] sm:$0xff] }
  0xc6   : > { %v754_v54 = vpop.f32.mrf.mxu2  ;;  %v1724_v49 = vsel %vm644_vm2, %v1719_v46, %v1723_v38  ;;  %v1215_v46 = vshll.u32 %v2437_v30, 16 }
  0xc7   : > { %v791_v58 = vadd.f32 %v754_v54, %v548_v47  ;;  %v904_v59 = vpop.f32.mrf.mxu3 }
  0xc8   : > { %v549_v60 = vpop.f32.mrf.mxu1 }
  0xc9   : > { %v941_v63 = vadd.f32 %v904_v59, %v791_v58  ;;  %v550_v0 = vadd.f32 %v549_v60, %v2707_v61  ;;  %v1056_v1 = vpop.f32.mrf.mxu0  ;;  %v2450_v59 = vld [vmem:[%s2556_s12 + $0x20] sm:$0xff] }
  0xcb   : > { %v2739_v4 = vadd.f32 %v1054_v48, %v941_v63  ;;  %v2436_v63 = vld [vmem:[%s2602_s28 + $0x28] sm:$0xff] }
  0xce   : > { %v756_v11 = vpop.f32.mrf.mxu2 }
  0xcf   : > { %v792_v12 = vadd.f32 %v756_v11, %v550_v0  ;;  %v906_v13 = vpop.f32.mrf.mxu3  ;;  %v2460_v0 = vld [vmem:[%s2586_s25 + $0x30] sm:$0xff] }
  0xd0   : > { %v552_v16 = vpop.f32.mrf.mxu1 }
  0xd1   : > { %v942_v61 = vadd.f32 %v906_v13, %v792_v12  ;;  %v553_v15 = vadd.f32 %v552_v16, %v2666_v26  ;;  %v1059_v19 = vpop.f32.mrf.mxu0  ;;  %v1195_v26 = vshrl.u32 %v2434_v52, 16  ;;  %v2442_v52 = vld [vmem:[%s2586_s25 + $0x20] sm:$0xff]  ;;  %v1725_v12 = vshrl.u32 %v2459_v23, 16 }
  0xd2   : > { %v1729_v13 = vshll.u32 %v2460_v0, 16 }
  0xd3   : > { %2259 = vmatmul.msk.bf16.gmra.mxu1 %vm388_vm1, %v1194_v17  ;;  %2300 = vmatmul.msk.bf16.gmra.mxu2 %vm388_vm1, %v2441_v14  ;;  %v2748_v21 = vadd.f32 %v1056_v1, %v942_v61  ;;  %v1197_v43 = vor.u32 %v1195_v26, %v1193_v8  ;;  %v1207_v8 = vshll.u32 %v2436_v63, 16 }
  0xd4   : > { %2341 = vmatmul.msk.bf16.gmra.mxu3 %vm388_vm1, %v2449_v18  ;;  %2382 = vmatmul.msk.bf16.gmra.mxu0 %vm388_vm1, %v1716_v20  ;;  %v1727_v18 = vor.u32 %v1725_v12, %v1723_v38  ;;  %v1731_v61 = vrot.slane %v1729_v13, 1 }
  0xd5   : > { %v1202_v58 = vsel %vm644_vm2, %v1197_v43, %v1201_v45  ;;  %v1209_v17 = vrot.slane %v1207_v8, 1  ;;  %v2438_v8 = vld [vmem:[%s2602_s28 + $0x38] sm:$0xff] }
  0xd6   : > { %v759_v24 = vpop.f32.mrf.mxu2  ;;  %v1732_v23 = vsel %vm644_vm2, %v1727_v18, %v1731_v61  ;;  %v1223_v18 = vshll.u32 %v2438_v8, 16 }
  0xd7   : > { %v793_v25 = vadd.f32 %v759_v24, %v553_v15  ;;  %v909_v27 = vpop.f32.mrf.mxu3 }
  0xd8   : > { %v554_v29 = vpop.f32.mrf.mxu1 }
  0xd9   : > { %v943_v31 = vadd.f32 %v909_v27, %v793_v25  ;;  %v555_v32 = vadd.f32 %v554_v29, %v2679_v35  ;;  %v1061_v36 = vpop.f32.mrf.mxu0  ;;  %v2451_v27 = vld [vmem:[%s2556_s12 + $0x28] sm:$0xff] }
  0xdb   : > { %v2755_v40 = vadd.f32 %v1059_v19, %v943_v31 }
  0xde   : > { %v761_v47 = vpop.f32.mrf.mxu2 }
  0xdf   : > { %v794_v48 = vadd.f32 %v761_v47, %v555_v32  ;;  %v911_v50 = vpop.f32.mrf.mxu3  ;;  %v2461_v32 = vld [vmem:[%s2586_s25 + $0x38] sm:$0xff] }
  0xe0   : > { %v557_v54 = vpop.f32.mrf.mxu1 }
  0xe1   : > { %v944_v35 = vadd.f32 %v911_v50, %v794_v48  ;;  %v558_v53 = vadd.f32 %v557_v54, %v2686_v44  ;;  %v1064_v60 = vpop.f32.mrf.mxu0  ;;  %v1203_v44 = vshrl.u32 %v2435_v22, 16  ;;  %v2443_v22 = vld [vmem:[%s2586_s25 + $0x28] sm:$0xff]  ;;  %v1733_v48 = vshrl.u32 %v2460_v0, 16 }
  0xe2   : > { %v1737_v50 = vshll.u32 %v2461_v32, 16 }
  0xe3   : > { %2260 = vmatmul.msk.bf16.gmra.mxu1 %vm388_vm1, %v1202_v58  ;;  %2301 = vmatmul.msk.bf16.gmra.mxu2 %vm388_vm1, %v2442_v52  ;;  %v2764_v62 = vadd.f32 %v1061_v36, %v944_v35  ;;  %v1205_v16 = vor.u32 %v1203_v44, %v1201_v45  ;;  %v1211_v45 = vshrl.u32 %v2436_v63, 16  ;;  %v1217_v58 = vrot.slane %v1215_v46, 1  ;;  %v2444_v63 = vld [vmem:[%s2586_s25 + $0x30] sm:$0xff] }
  0xe4   : > { %2342 = vmatmul.msk.bf16.gmra.mxu3 %vm388_vm1, %v2450_v59  ;;  %2383 = vmatmul.msk.bf16.gmra.mxu0 %vm388_vm1, %v1724_v49  ;;  %v1739_v35 = vrot.slane %v1737_v50, 1 }
  0xe5   : > { %v1210_v25 = vsel %vm644_vm2, %v1205_v16, %v1209_v17  ;;  %v1213_v54 = vor.u32 %v1211_v45, %v1209_v17  ;;  %v1219_v17 = vshrl.u32 %v2437_v30, 16 }
  0xe6   : > { %v764_v1 = vpop.f32.mrf.mxu2 }
  0xe7   : > { %v795_v2 = vadd.f32 %v764_v1, %v558_v53  ;;  %v914_v3 = vpop.f32.mrf.mxu3 }
  0xe8   : > { %v559_v7 = vpop.f32.mrf.mxu1 }
  0xe9   : > { %v945_v9 = vadd.f32 %v914_v3, %v795_v2  ;;  %v560_v10 = vadd.f32 %v559_v7, %v2705_v57  ;;  %v1066_v11 = vpop.f32.mrf.mxu0  ;;  %v1218_v2 = vsel %vm644_vm2, %v1213_v54, %v1217_v58  ;;  %v2452_v3 = vld [vmem:[%s2556_s12 + $0x30] sm:$0xff] }
  0xeb   : > { %v2771_v14 = vadd.f32 %v1064_v60, %v945_v9 }
  0xee   : > { %v766_v15 = vpop.f32.mrf.mxu2 }
  0xef   : > { %v796_v19 = vadd.f32 %v766_v15, %v560_v10  ;;  %v916_v20 = vpop.f32.mrf.mxu3  ;;  %v2462_v10 = vld [vmem:[%s2586_s25 + $0x40] sm:$0xff] }
  0xf0   : > { %v562_v24 = vpop.f32.mrf.mxu1 }
  0xf1   : > { %v946_v57 = vadd.f32 %v916_v20, %v796_v19  ;;  %v1069_v29 = vpop.f32.mrf.mxu0  ;;  %v563_v31 = vadd.f32 %v562_v24, %v2675_v33  ;;  %v1735_v33 = vor.u32 %v1733_v48, %v1731_v61  ;;  %v1741_v19 = vshrl.u32 %v2461_v32, 16  ;;  %v2453_v32 = vld [vmem:[%s2556_s12 + $0x38] sm:$0xff] }
  0xf2   : > { %v1745_v20 = vshll.u32 %v2462_v10, 16  ;;  %v1221_v24 = vor.u32 %v1219_v17, %v1217_v58  ;;  %v2446_v17 = vld [vmem:[%s2586_s25 + $0x40] sm:$0xff] }
  0xf3   : > { %2261 = vmatmul.msk.bf16.gmra.mxu1 %vm388_vm1, %v1210_v25  ;;  %2302 = vmatmul.msk.bf16.gmra.mxu2 %vm388_vm1, %v2443_v22  ;;  %v2779_v26 = vadd.f32 %v1066_v11, %v946_v57  ;;  %v1740_v44 = vsel %vm644_vm2, %v1735_v33, %v1739_v35  ;;  %v1225_v25 = vrot.slane %v1223_v18, 1 }
  0xf4   : > { %2343 = vmatmul.msk.bf16.gmra.mxu3 %vm388_vm1, %v2451_v27  ;;  %2384 = vmatmul.msk.bf16.gmra.mxu0 %vm388_vm1, %v1732_v23  ;;  %v1743_v27 = vor.u32 %v1741_v19, %v1739_v35  ;;  %v1747_v57 = vrot.slane %v1745_v20, 1 }
  0xf6   : > { %v769_v36 = vpop.f32.mrf.mxu2 }
  0xf7   : > { %v797_v37 = vadd.f32 %v769_v36, %v563_v31  ;;  %v919_v39 = vpop.f32.mrf.mxu3  ;;  %v1643_v31 = vld [vmem:[%s2586_s25 + $0x48] sm:$0x1] }
  0xf8   : > { %v564_v43 = vpop.f32.mrf.mxu1  ;;  %v1679_v48 = vunpack.c.l.b16 %v1643_v31 }
  0xf9   : > { %v947_v38 = vadd.f32 %v919_v39, %v797_v37  ;;  %v1071_v47 = vpop.f32.mrf.mxu0  ;;  %v565_v59 = vadd.f32 %v564_v43, %v2681_v41  ;;  %v2445_v37 = vld [vmem:[%s2586_s25 + $0x38] sm:$0xff]  ;;  %v1226_v43 = vsel %vm644_vm2, %v1221_v24, %v1225_v25 }
  0xfa   : > { %v1688_v58 = vpack.c.b16 %v1679_v48, %v1679_v48 }
  0xfb   : > { %v2786_v52 = vadd.f32 %v1069_v29, %v947_v38  ;;  %v1121_v29 = vld [vmem:[%s2602_s28 + $0x40] sm:$0x1] }
  0xfc   : > { %v1157_v45 = vunpack.c.l.b16 %v1121_v29 }
  0xfe   : > { %v771_v53 = vpop.f32.mrf.mxu2  ;;  %v1166_v50 = vpack.c.b16 %v1157_v45, %v1157_v45 }
  0xff   : > { %v798_v60 = vadd.f32 %v771_v53, %v565_v59  ;;  %v921_v49 = vpop.f32.mrf.mxu3 }
 0x100   : > { %v567_v1 = vpop.f32.mrf.mxu1 }
 0x101   : > { %v948_v0 = vadd.f32 %v921_v49, %v798_v60  ;;  %v1074_v7 = vpop.f32.mrf.mxu0  ;;  %v568_v9 = vadd.f32 %v567_v1, %v2701_v55  ;;  %v1227_v60 = vshrl.u32 %v2438_v8, 16  ;;  %v1231_v49 = vshll.u32 %v1166_v50, 16 }
 0x103   : > { %2262 = vmatmul.msk.bf16.gmra.mxu1 %vm388_vm1, %v1218_v2  ;;  %2303 = vmatmul.msk.bf16.gmra.mxu2 %vm388_vm1, %v2444_v63  ;;  %v2795_v41 = vadd.f32 %v1071_v47, %v948_v0  ;;  %v1748_v47 = vsel %vm644_vm2, %v1743_v27, %v1747_v57  ;;  %v1749_v2 = vshrl.u32 %v2462_v10, 16 }
 0x104   : > { %2344 = vmatmul.msk.bf16.gmra.mxu3 %vm388_vm1, %v2452_v3  ;;  %2385 = vmatmul.msk.bf16.gmra.mxu0 %vm388_vm1, %v1740_v44  ;;  %v1753_v3 = vshll.u32 %v1688_v58, 16  ;;  %v1233_v44 = vrot.slane %v1231_v49, 1 }
 0x106   : > { %v774_v11 = vpop.f32.mrf.mxu2 }
 0x107   : > { %v799_v12 = vadd.f32 %v774_v11, %v568_v9  ;;  %v924_v13 = vpop.f32.mrf.mxu3  ;;  %v1755_v11 = vrot.slane %v1753_v3, 1 }
 0x108   : > { %v569_v16 = vpop.f32.mrf.mxu1 }
 0x109   : > { %v949_v61 = vadd.f32 %v924_v13, %v799_v12  ;;  %v1076_v15 = vpop.f32.mrf.mxu0  ;;  %v570_v55 = vadd.f32 %v569_v16, %v2709_v5 }
 0x10b   : > { %v2802_v22 = vadd.f32 %v1074_v7, %v949_v61  ;;  %v1229_v7 = vor.u32 %v1227_v60, %v1225_v25  ;;  %v2454_v61 = vld [vmem:[%s2556_s12 + $0x40] sm:$0xff] }
 0x10d   : > { %v1234_v8 = vsel %vm644_vm2, %v1229_v7, %v1233_v44 }
 0x10e   : > { %v776_v23 = vpop.f32.mrf.mxu2 }
 0x10f   : > { %v800_v36 = vadd.f32 %v776_v23, %v570_v55  ;;  %v926_v30 = vpop.f32.mrf.mxu3 }
 0x110   : > { %v572_v39 = vpop.f32.mrf.mxu1 }
 0x111   : > { %v950_v46 = vadd.f32 %v926_v30, %v800_v36  ;;  %v1079_v38 = vpop.f32.mrf.mxu0  ;;  %v573_v54 = vadd.f32 %v572_v39, %v2677_v34  ;;  %v1751_v34 = vor.u32 %v1749_v2, %v1747_v57 }
 0x113   : > { %2263 = vmatmul.msk.bf16.gmra.mxu1 %vm388_vm1, %v1226_v43  ;;  %2304 = vmatmul.msk.bf16.gmra.mxu2 %vm388_vm1, %v2445_v37  ;;  %v2813_v5 = vadd.f32 %v1076_v15, %v950_v46  ;;  %v1756_v10 = vsel %vm644_vm2, %v1751_v34, %v1755_v11 }
 0x114   : > { %2345 = vmatmul.msk.bf16.gmra.mxu3 %vm388_vm1, %v2453_v32  ;;  %2386 = vmatmul.msk.bf16.gmra.mxu0 %vm388_vm1, %v1748_v47 }
 0x116   : > { %v779_v59 = vpop.f32.mrf.mxu2 }
 0x117   : > { %v801_v33 = vadd.f32 %v779_v59, %v573_v54  ;;  %v929_v35 = vpop.f32.mrf.mxu3 }
 0x118   : > { %v574_v53 = vpop.f32.mrf.mxu1 }
 0x119   : > { %v951_v63 = vadd.f32 %v929_v35, %v801_v33  ;;  %v1081_v1 = vpop.f32.mrf.mxu0  ;;  %v575_v9 = vadd.f32 %v574_v53, %v2683_v42 }
 0x11b   : > { %v2818_v0 = vadd.f32 %v1079_v38, %v951_v63 }
 0x11e   : > { %v781_v12 = vpop.f32.mrf.mxu2 }
 0x11f   : > { %v802_v13 = vadd.f32 %v781_v12, %v575_v9  ;;  %v931_v16 = vpop.f32.mrf.mxu3 }
 0x120   : > { %v577_v18 = vpop.f32.mrf.mxu1 }
 0x121   : > { %v952_v15 = vadd.f32 %v931_v16, %v802_v13  ;;  %v1084_v19 = vpop.f32.mrf.mxu0  ;;  %v578_v42 = vadd.f32 %v577_v18, %v2703_v56 }
 0x123   : > { %2264 = vmatmul.msk.bf16.gmra.mxu1 %vm388_vm1, %v1234_v8  ;;  %2305 = vmatmul.msk.bf16.gmra.mxu2 %vm388_vm1, %v2446_v17  ;;  %v2827_v20 = vadd.f32 %v1081_v1, %v952_v15 }
 0x124   : > { %2346 = vmatmul.msk.bf16.gmra.mxu3 %vm388_vm1, %v2454_v61  ;;  %2387 = vmatmul.msk.bf16.gmra.mxu0 %vm388_vm1, %v1756_v10 }
 0x126   : > { %v784_v24 = vpop.f32.mrf.mxu2 }
 0x127   : > { %v803_v25 = vadd.f32 %v784_v24, %v578_v42  ;;  %v934_v55 = vpop.f32.mrf.mxu3 }
 0x128   : > { %v579_v27 = vpop.f32.mrf.mxu1 }
 0x129   : > { %v953_v57 = vadd.f32 %v934_v55, %v803_v25  ;;  %v1086_v29 = vpop.f32.mrf.mxu0  ;;  %v580_v31 = vadd.f32 %v579_v27, %v2711_v6  ;;  %v2841_v6 = vld [vmem:[%s2920_s5] ss:$0 sm:$0xff] }
 0x12b   : > { %v2832_v23 = vadd.f32 %v1084_v19, %v953_v57 }
 0x12e   : > { %v786_v36 = vpop.f32.mrf.mxu2 }
 0x12f   : > { %v804_v30 = vadd.f32 %v786_v36, %v580_v31  ;;  %v936_v37 = vpop.f32.mrf.mxu3 }
 0x130   : > { %v1271_v39 = vpop.f32.mrf.mxu1 }
 0x131   : > { %v954_v43 = vadd.f32 %v936_v37, %v804_v30  ;;  %v1793_v32 = vpop.f32.mrf.mxu0  ;;  %v1311_v56 = vadd.f32 %v1271_v39, %v2723_v28 }
 0x133   : > { %v2835_v45 = vadd.f32 %v1086_v29, %v954_v43 }
 0x136   : > { %v1421_v46 = vpop.f32.mrf.mxu2 }
 0x137   : > { %v1461_v38 = vadd.f32 %v1421_v46, %v1311_v56  ;;  %v1571_v47 = vpop.f32.mrf.mxu3 }
 0x138   : > { %v1273_v48 = vpop.f32.mrf.mxu1 }
 0x139   : > { %v1611_v50 = vadd.f32 %v1571_v47, %v1461_v38  ;;  %v1795_v54 = vpop.f32.mrf.mxu0  ;;  %v1312_v33 = vadd.f32 %v1273_v48, %v2732_v51 }
 0x13b   : > { %v1833_v58 = vadd.f32 %v1793_v32, %v1611_v50 }
 0x13d   : > { %v1853_v59 = vadd.f32 %v2841_v6, %v1833_v58 }
 0x13e   : > { %v1423_v35 = vpop.f32.mrf.mxu2 }
 0x13f   : > { %v1869_v53 = vmax.f32 %v1853_v59, 0.0  ;;  %v1462_v28 = vadd.f32 %v1423_v35, %v1312_v33  ;;  %v1573_v60 = vpop.f32.mrf.mxu3 }
 0x140   : > { %v1276_v49 = vpop.f32.mrf.mxu1 }
 0x141   : > { %v1885_v63 = vpack.c.bf16 %v1869_v53, %v1869_v53  ;;  %v1612_v1 = vadd.f32 %v1573_v60, %v1462_v28  ;;  %v1798_v2 = vpop.f32.mrf.mxu0  ;;  %v1313_v7 = vadd.f32 %v1276_v49, %v2739_v4 }
 0x143   : > { %1902 = vst.msk [vmem:[%s2849_s13] sm:$0xf] %vm1901_vm3, %v1885_v63  ;;  %v1834_v3 = vadd.f32 %v1795_v54, %v1612_v1 }
 0x145   : > { %v1854_v51 = vadd.f32 %v2841_v6, %v1834_v3 }
 0x146   : > { %v1426_v44 = vpop.f32.mrf.mxu2 }
 0x147   : > { %v1870_v9 = vmax.f32 %v1854_v51, 0.0  ;;  %v1463_v34 = vadd.f32 %v1426_v44, %v1313_v7  ;;  %v1576_v11 = vpop.f32.mrf.mxu3 }
 0x148   : > { %v1278_v12 = vpop.f32.mrf.mxu1 }
 0x149   : > { %v1886_v13 = vpack.c.bf16 %v1870_v9, %v1870_v9  ;;  %v1613_v16 = vadd.f32 %v1576_v11, %v1463_v34  ;;  %v1800_v17 = vpop.f32.mrf.mxu0  ;;  %v1314_v61 = vadd.f32 %v1278_v12, %v2748_v21 }
 0x14b   : > { %1903 = vst.msk [vmem:[%s2849_s13 + $0x4] sm:$0xf] %vm1901_vm3, %v1886_v13  ;;  %v1835_v18 = vadd.f32 %v1798_v2, %v1613_v16 }
 0x14d   : > { %v1855_v8 = vadd.f32 %v2841_v6, %v1835_v18 }
 0x14e   : > { %v1428_v15 = vpop.f32.mrf.mxu2 }
 0x14f   : > { %v1871_v19 = vmax.f32 %v1855_v8, 0.0  ;;  %v1464_v10 = vadd.f32 %v1428_v15, %v1314_v61  ;;  %v1578_v4 = vpop.f32.mrf.mxu3 }
 0x150   : > { %v1281_v42 = vpop.f32.mrf.mxu1 }
 0x151   : > { %v1887_v24 = vpack.c.bf16 %v1871_v19, %v1871_v19  ;;  %v1614_v25 = vadd.f32 %v1578_v4, %v1464_v10  ;;  %v1803_v55 = vpop.f32.mrf.mxu0  ;;  %v1315_v29 = vadd.f32 %v1281_v42, %v2755_v40 }
 0x153   : > { %1904 = vst.msk [vmem:[%s2849_s13 + $0x8] sm:$0xf] %vm1901_vm3, %v1887_v24  ;;  %v1836_v27 = vadd.f32 %v1800_v17, %v1614_v25 }
 0x155   : > { %v1856_v57 = vadd.f32 %v2841_v6, %v1836_v27 }
 0x156   : > { %v1431_v31 = vpop.f32.mrf.mxu2 }
 0x157   : > { %v1872_v36 = vmax.f32 %v1856_v57, 0.0  ;;  %v1465_v30 = vadd.f32 %v1431_v31, %v1315_v29  ;;  %v1581_v21 = vpop.f32.mrf.mxu3 }
 0x158   : > { %v1283_v37 = vpop.f32.mrf.mxu1 }
 0x159   : > { %v1888_v39 = vpack.c.bf16 %v1872_v36, %v1872_v36  ;;  %v1615_v43 = vadd.f32 %v1581_v21, %v1465_v30  ;;  %v1805_v32 = vpop.f32.mrf.mxu0  ;;  %v1316_v38 = vadd.f32 %v1283_v37, %v2764_v62 }
 0x15b   : > { %1905 = vst.msk [vmem:[%s2849_s13 + $0xc] sm:$0xf] %vm1901_vm3, %v1888_v39  ;;  %v1837_v56 = vadd.f32 %v1803_v55, %v1615_v43 }
 0x15d   : > { %v1857_v46 = vadd.f32 %v2841_v6, %v1837_v56 }
 0x15e   : > { %v1433_v47 = vpop.f32.mrf.mxu2 }
 0x15f   : > { %v1873_v48 = vmax.f32 %v1857_v46, 0.0  ;;  %v1466_v50 = vadd.f32 %v1433_v47, %v1316_v38  ;;  %v1583_v40 = vpop.f32.mrf.mxu3 }
 0x160   : > { %v1286_v54 = vpop.f32.mrf.mxu1 }
 0x161   : > { %v1889_v58 = vpack.c.bf16 %v1873_v48, %v1873_v48  ;;  %v1616_v59 = vadd.f32 %v1583_v40, %v1466_v50  ;;  %v1808_v33 = vpop.f32.mrf.mxu0  ;;  %v1317_v28 = vadd.f32 %v1286_v54, %v2771_v14 }
 0x163   : > { %1906 = vst.msk [vmem:[%s2849_s13 + $0x10] sm:$0xf] %vm1901_vm3, %v1889_v58  ;;  %v1838_v35 = vadd.f32 %v1805_v32, %v1616_v59 }
 0x165   : > { %v1858_v53 = vadd.f32 %v2841_v6, %v1838_v35 }
 0x166   : > { %v1436_v60 = vpop.f32.mrf.mxu2 }
 0x167   : > { %v1874_v49 = vmax.f32 %v1858_v53, 0.0  ;;  %v1467_v63 = vadd.f32 %v1436_v60, %v1317_v28  ;;  %v1586_v62 = vpop.f32.mrf.mxu3 }
 0x168   : > { %v1288_v1 = vpop.f32.mrf.mxu1 }
 0x169   : > { %v1890_v2 = vpack.c.bf16 %v1874_v49, %v1874_v49  ;;  %v1617_v3 = vadd.f32 %v1586_v62, %v1467_v63  ;;  %v1810_v51 = vpop.f32.mrf.mxu0  ;;  %v1318_v9 = vadd.f32 %v1288_v1, %v2779_v26 }
 0x16b   : > { %1907 = vst.msk [vmem:[%s2849_s13 + $0x14] sm:$0xf] %vm1901_vm3, %v1890_v2  ;;  %v1839_v7 = vadd.f32 %v1808_v33, %v1617_v3 }
 0x16d   : > { %v1859_v44 = vadd.f32 %v2841_v6, %v1839_v7 }
 0x16e   : > { %v1438_v34 = vpop.f32.mrf.mxu2 }
 0x16f   : > { %v1875_v11 = vmax.f32 %v1859_v44, 0.0  ;;  %v1468_v12 = vadd.f32 %v1438_v34, %v1318_v9  ;;  %v1588_v14 = vpop.f32.mrf.mxu3 }
 0x170   : > { %v1291_v13 = vpop.f32.mrf.mxu1 }
 0x171   : > { %v1891_v16 = vpack.c.bf16 %v1875_v11, %v1875_v11  ;;  %v1618_v17 = vadd.f32 %v1588_v14, %v1468_v12  ;;  %v1813_v18 = vpop.f32.mrf.mxu0  ;;  %v1319_v15 = vadd.f32 %v1291_v13, %v2786_v52 }
 0x173   : > { %1908 = vst.msk [vmem:[%s2849_s13 + $0x18] sm:$0xf] %vm1901_vm3, %v1891_v16  ;;  %v1840_v8 = vadd.f32 %v1810_v51, %v1618_v17 }
 0x175   : > { %v1860_v61 = vadd.f32 %v2841_v6, %v1840_v8 }
 0x176   : > { %v1441_v19 = vpop.f32.mrf.mxu2 }
 0x177   : > { %v1876_v10 = vmax.f32 %v1860_v61, 0.0  ;;  %v1469_v4 = vadd.f32 %v1441_v19, %v1319_v15  ;;  %v1591_v26 = vpop.f32.mrf.mxu3 }
 0x178   : > { %v1293_v42 = vpop.f32.mrf.mxu1 }
 0x179   : > { %v1892_v24 = vpack.c.bf16 %v1876_v10, %v1876_v10  ;;  %v1619_v25 = vadd.f32 %v1591_v26, %v1469_v4  ;;  %v1815_v55 = vpop.f32.mrf.mxu0  ;;  %v1320_v29 = vadd.f32 %v1293_v42, %v2795_v41 }
 0x17b   : > { %1909 = vst.msk [vmem:[%s2849_s13 + $0x1c] sm:$0xf] %vm1901_vm3, %v1892_v24  ;;  %v1841_v27 = vadd.f32 %v1813_v18, %v1619_v25 }
 0x17d   : > { %v1861_v57 = vadd.f32 %v2841_v6, %v1841_v27 }
 0x17e   : > { %v1443_v31 = vpop.f32.mrf.mxu2 }
 0x17f   : > { %v1877_v36 = vmax.f32 %v1861_v57, 0.0  ;;  %v1470_v30 = vadd.f32 %v1443_v31, %v1320_v29  ;;  %v1593_v52 = vpop.f32.mrf.mxu3 }
 0x180   : > { %v1296_v21 = vpop.f32.mrf.mxu1 }
 0x181   : > { %v1893_v37 = vpack.c.bf16 %v1877_v36, %v1877_v36  ;;  %v1620_v39 = vadd.f32 %v1593_v52, %v1470_v30  ;;  %v1818_v43 = vpop.f32.mrf.mxu0  ;;  %v1321_v46 = vadd.f32 %v1296_v21, %v2802_v22 }
 0x183   : > { %1910 = vst.msk [vmem:[%s2849_s13 + $0x20] sm:$0xf] %vm1901_vm3, %v1893_v37  ;;  %v1842_v32 = vadd.f32 %v1815_v55, %v1620_v39 }
 0x185   : > { %v1862_v56 = vadd.f32 %v2841_v6, %v1842_v32 }
 0x186   : > { %v1446_v38 = vpop.f32.mrf.mxu2 }
 0x187   : > { %v1878_v47 = vmax.f32 %v1862_v56, 0.0  ;;  %v1471_v48 = vadd.f32 %v1446_v38, %v1321_v46  ;;  %v1596_v41 = vpop.f32.mrf.mxu3 }
 0x188   : > { %v1298_v50 = vpop.f32.mrf.mxu1 }
 0x189   : > { %v1894_v40 = vpack.c.bf16 %v1878_v47, %v1878_v47  ;;  %v1621_v54 = vadd.f32 %v1596_v41, %v1471_v48  ;;  %v1820_v58 = vpop.f32.mrf.mxu0  ;;  %v1322_v35 = vadd.f32 %v1298_v50, %v2813_v5 }
 0x18b   : > { %1911 = vst.msk [vmem:[%s2849_s13 + $0x24] sm:$0xf] %vm1901_vm3, %v1894_v40  ;;  %v1843_v59 = vadd.f32 %v1818_v43, %v1621_v54 }
 0x18d   : > { %v1863_v33 = vadd.f32 %v2841_v6, %v1843_v59 }
 0x18e   : > { %v1448_v53 = vpop.f32.mrf.mxu2 }
 0x18f   : > { %v1879_v28 = vmax.f32 %v1863_v33, 0.0  ;;  %v1472_v60 = vadd.f32 %v1448_v53, %v1322_v35  ;;  %v1598_v22 = vpop.f32.mrf.mxu3 }
 0x190   : > { %v1301_v49 = vpop.f32.mrf.mxu1 }
 0x191   : > { %v1895_v63 = vpack.c.bf16 %v1879_v28, %v1879_v28  ;;  %v1622_v62 = vadd.f32 %v1598_v22, %v1472_v60  ;;  %v1823_v2 = vpop.f32.mrf.mxu0  ;;  %v1323_v51 = vadd.f32 %v1301_v49, %v2818_v0 }
 0x193   : > { %1912 = vst.msk [vmem:[%s2849_s13 + $0x28] sm:$0xf] %vm1901_vm3, %v1895_v63  ;;  %v1844_v1 = vadd.f32 %v1820_v58, %v1622_v62 }
 0x195   : > { %v1864_v3 = vadd.f32 %v2841_v6, %v1844_v1 }
 0x196   : > { %v1451_v7 = vpop.f32.mrf.mxu2 }
 0x197   : > { %v1880_v44 = vmax.f32 %v1864_v3, 0.0  ;;  %v1473_v9 = vadd.f32 %v1451_v7, %v1323_v51  ;;  %v1601_v5 = vpop.f32.mrf.mxu3 }
 0x198   : > { %v1303_v34 = vpop.f32.mrf.mxu1 }
 0x199   : > { %v1896_v11 = vpack.c.bf16 %v1880_v44, %v1880_v44  ;;  %v1623_v12 = vadd.f32 %v1601_v5, %v1473_v9  ;;  %v1324_v16 = vadd.f32 %v1303_v34, %v2827_v20  ;;  %v1825_v17 = vpop.f32.mrf.mxu0 }
 0x19b   : > { %1913 = vst.msk [vmem:[%s2849_s13 + $0x2c] sm:$0xf] %vm1901_vm3, %v1896_v11  ;;  %v1845_v14 = vadd.f32 %v1823_v2, %v1623_v12 }
 0x19d   : > { %v1865_v13 = vadd.f32 %v2841_v6, %v1845_v14 }
 0x19e   : > { %v1453_v18 = vpop.f32.mrf.mxu2 }
 0x19f   : > { %v1881_v8 = vmax.f32 %v1865_v13, 0.0  ;;  %v1474_v61 = vadd.f32 %v1453_v18, %v1324_v16  ;;  %v1603_v0 = vpop.f32.mrf.mxu3 }
 0x1a0   : > { %v1306_v15 = vpop.f32.mrf.mxu1 }
 0x1a1   : > { %v1897_v19 = vpack.c.bf16 %v1881_v8, %v1881_v8  ;;  %v1624_v10 = vadd.f32 %v1603_v0, %v1474_v61  ;;  %v1325_v42 = vadd.f32 %v1306_v15, %v2832_v23  ;;  %v1828_v27 = vpop.f32.mrf.mxu0 }
 0x1a3   : > { %1914 = vst.msk [vmem:[%s2849_s13 + $0x30] sm:$0xf] %vm1901_vm3, %v1897_v19  ;;  %v1846_v4 = vadd.f32 %v1825_v17, %v1624_v10 }
 0x1a5   : > { %v1866_v26 = vadd.f32 %v2841_v6, %v1846_v4 }
 0x1a6   : > { %v1456_v24 = vpop.f32.mrf.mxu2 }
 0x1a7   : > { %v1882_v25 = vmax.f32 %v1866_v26, 0.0  ;;  %v1475_v55 = vadd.f32 %v1456_v24, %v1325_v42  ;;  %v1606_v20 = vpop.f32.mrf.mxu3 }
 0x1a8   : > { %v1308_v31 = vpop.f32.mrf.mxu1 }
 0x1a9   : > { %v1898_v57 = vpack.c.bf16 %v1882_v25, %v1882_v25  ;;  %v1625_v29 = vadd.f32 %v1606_v20, %v1475_v55  ;;  %v1326_v52 = vadd.f32 %v1308_v31, %v2835_v45  ;;  %v1830_v56 = vpop.f32.mrf.mxu0 }
 0x1ab   : > { %1915 = vst.msk [vmem:[%s2849_s13 + $0x34] sm:$0xf] %vm1901_vm3, %v1898_v57  ;;  %v1847_v36 = vadd.f32 %v1828_v27, %v1625_v29 }
 0x1ad   : > { %v1867_v30 = vadd.f32 %v2841_v6, %v1847_v36 }
 0x1ae   : > { %v1458_v21 = vpop.f32.mrf.mxu2 }
 0x1af   : > { %v1883_v37 = vmax.f32 %v1867_v30, 0.0  ;;  %v1476_v23 = vadd.f32 %v1458_v21, %v1326_v52  ;;  %v1608_v39 = vpop.f32.mrf.mxu3 }
 0x1b1   : > { %v1899_v43 = vpack.c.bf16 %v1883_v37, %v1883_v37  ;;  %v1626_v32 = vadd.f32 %v1608_v39, %v1476_v23 }
 0x1b3   : > { %1916 = vst.msk [vmem:[%s2849_s13 + $0x38] sm:$0xf] %vm1901_vm3, %v1899_v43  ;;  %v1848_v46 = vadd.f32 %v1830_v56, %v1626_v32 }
 0x1b5   : > { %v1868_v38 = vadd.f32 %v2841_v6, %v1848_v46 }
 0x1b7   : > { %v1884_v47 = vmax.f32 %v1868_v38, 0.0 }
 0x1b9   : > { %v1900_v48 = vpack.c.bf16 %v1884_v47, %v1884_v47 }
 0x1bb   : > { %1917 = vst.msk [vmem:[%s2849_s13 + $0x3c] sm:$0xf] %vm1901_vm3, %v1900_v48 }
 0x1bc PF: > { %s16_s21 = sadd.s32 1, %s2482_s21  }
 0x1bd   : > { %p13_p4 = scmp.ge.s32.totalorder %s16_s21, 4  }
 0x1bf   :  { %15 = sbr.rel (!%p13_p4) target bundleno = 1 (0x1), region = 91 }

// kernel: _lambda_.9
= control target key start
LH: loop header
LB: loop body
LE: loop exit
PB: predicated region body
PF: predicated region fallthrough
CT: control target
= control target key end

     0   :  { %s1782_s12 = smov 0   ;;  %s2369_s0 = inlined_call_operand.vmem [shape: bf16[2,168,64], index: 0, kind: input, shape index: {}]   ;;  %s2370_s1 = inlined_call_operand.vmem [shape: bf16[3,192,64], index: 1, kind: input, shape index: {}]   ;;  %s2371_s2 = inlined_call_operand.vmem [shape: f32[1,64], index: 2, kind: input, shape index: {}]   ;;  %s2372_s3 = inlined_call_operand.vmem [shape: bf16[2,128,64], index: 3, kind: output, shape index: {}]  }
   0x1 LB: > { %s1378_s13 = sadd.s32 4294967295, %s1759_s12   ;;  %p1382_p0 = scmp.ge.s32.totalorder %s1759_s12, 1  ;;  %s1759_s12 = sphi %s1782_s12, %s13_s12  }
   0x2   : > { %p137_p1 = scmp.lt.s32.totalorder %s1759_s12, 3 }
   0x4   : > { %p138_p2 = pnand %p1382_p0, %p137_p1 }
   0x5   : > { %p161_p3 = scmp.lt.s32.totalorder (!%p138_p2), %s1378_s13, 1  ;;  %s1761_s7 = smov (!%p138_p2), 64  }
   0x6   : > { %141 = sbr.rel (%p138_p2) target bundleno = 456 (0x1c8), region = 32 }
   0xb   : > { %v1793_v0 = vld [vmem:[%s2370_s1 + $0x58] sm:$0xff]  ;;  %s2374_s13 = smov (!%p161_p3, %s1378_s13), 1  ;;  %v1806_v2 = vld [vmem:[%s2370_s1 + $0x50] sm:$0xff]  ;;  %v1824_v4 = vld [vmem:[%s2370_s1 + $0x48] sm:$0xff]  ;;  %vm233_vm0 = vsmask.f32 7424 }
   0xc   : > { %v1798_v1 = vld [vmem:[%s2370_s1 + $0xb8] sm:$0xff]  ;;  %1738 = vmatpush.bf16.msra.mxu3 %v1793_v0  ;;  %v1812_v3 = vld [vmem:[%s2370_s1 + $0xb0] sm:$0xff]  ;;  %s1742_s22 = smul.u32 84, %s2374_s13  ;;  %v1829_v5 = vld [vmem:[%s2370_s1 + $0xa8] sm:$0xff]  ;;  %vm321_vm1 = vcmask 1046528   ;;  %vm339_vm2 = vcmask 523264  }
   0xd   : > { %1734 = vmatpush.bf16.msra.mxu1 %v1798_v1  ;;  %v1861_v21 = vld [vmem:[%s2370_s1 + $0x40] sm:$0xff]  ;;  %v1674_v61 = vld [vmem:[%s2370_s1 + $0x38] sm:$0xff]  ;;  %s1660_s20 = sshll.u32 %s2374_s13, 6  ;;  %vm1306_vm3 = vcmask 519168  }
   0xe   : > { %s1818_s25 = scalar_lea.vmem %s2369_s0, %s1742_s22  ;;  %v1870_v26 = vld [vmem:[%s2370_s1 + $0xa0] sm:$0xff]  ;;  %732 = vmatpush.bf16.msra.mxu2 %v1674_v61  ;;  %s2282_s23 = scalar_lea.vmem %s2372_s3, %s1660_s20 }
   0xf   : > { %v1832_v6 = vld [vmem:[%s1818_s25] sm:$0xff]   ;;  %v1835_v7 = vld [vmem:[%s1818_s25 + $0x8] sm:$0xff]   ;;  %v1838_v8 = vld [vmem:[%s1818_s25 + $0x10] sm:$0xff] }
  0x10   : > { %1739 = vmatpush.bf16.msra.mxu3 %v1806_v2  ;;  %v235_v9 = vshrl.u32 %v1832_v6, 16  ;;  %v237_v10 = vshll.u32 %v1832_v6, 16  ;;  %v242_v11 = vshll.u32 %v1835_v7, 16  ;;  %v1845_v12 = vld [vmem:[%s1818_s25 + $0x18] sm:$0xff]  ;;  %v1848_v13 = vld [vmem:[%s1818_s25 + $0x20] sm:$0xff]  ;;  %v250_v14 = vshll.u32 %v1838_v8, 16 }
  0x11   : > { %1735 = vmatpush.bf16.msra.mxu1 %v1812_v3  ;;  %v254_v15 = vshrl.u32 %v1838_v8, 16  ;;  %v1853_v16 = vld [vmem:[%s1818_s25 + $0x28] sm:$0xff]  ;;  %v246_v19 = vshrl.u32 %v1835_v7, 16  ;;  %v258_v20 = vshll.u32 %v1845_v12, 16  ;;  %v266_v23 = vshll.u32 %v1848_v13, 16  ;;  %v1874_v33 = vld [vmem:[%s1818_s25 + $0x18] sm:$0xff] }
  0x12   : > { %v239_v17 = vrot.slane %v237_v10, 1  ;;  %v244_v18 = vrot.slane %v242_v11, 1  ;;  %v252_v22 = vrot.slane %v250_v14, 1  ;;  %v270_v24 = vshrl.u32 %v1848_v13, 16  ;;  %v1877_v34 = vld [vmem:[%s1818_s25 + $0x10] sm:$0xff]   ;;  %v1892_v44 = vld [vmem:[%s1818_s25 + $0x20] sm:$0xff] }
  0x13   : > { %v274_v25 = vshll.u32 %v1853_v16, 16  ;;  %v260_v28 = vrot.slane %v258_v20, 1  ;;  %v262_v30 = vshrl.u32 %v1845_v12, 16  ;;  %v268_v31 = vrot.slane %v266_v23, 1  ;;  %v1888_v41 = vld [vmem:[%s1818_s25 + $0x30] sm:$0xff]  ;;  %v1914_v60 = vld [vmem:[%s1818_s25 + $0x38] sm:$0xff] }
  0x14   : > { %1740 = vmatpush.bf16.msra.mxu3 %v1824_v4  ;;  %v240_v27 = vor.u32 %v239_v17, %v235_v9  ;;  %v256_v29 = vor.u32 %v254_v15, %v252_v22  ;;  %v248_v36 = vor.u32 %v246_v19, %v244_v18  ;;  %v892_v39 = vshrl.u32 %v1877_v34, 16  ;;  %v1926_v14 = vld [vmem:[%s1818_s25 + $0x28] sm:$0xff]  ;;  %v1673_v15 = vld [vmem:[%s2370_s1 + $0x30] sm:$0xff]  ;;  %v188_v19 = vld [vmem:[%s1818_s25 + $0x40] sm:$0x1] }
  0x15   : > { %1736 = vmatpush.bf16.msra.mxu1 %v1829_v5  ;;  %v276_v32 = vrot.slane %v274_v25, 1  ;;  %v272_v38 = vor.u32 %v270_v24, %v268_v31  ;;  %v894_v40 = vshll.u32 %v1877_v34, 16  ;;  %v264_v42 = vor.u32 %v262_v30, %v260_v28  ;;  %v1934_v23 = vld [vmem:[%s1818_s25 + $0x30] sm:$0xff]  ;;  %733 = vmatpush.bf16.msra.mxu2 %v1673_v15  ;;  %v1983_v61 = vld [vmem:[%s1818_s25 + $0x40] sm:$0xff] }
  0x16   : > { %v245_v35 = vsel %vm233_vm0, %v240_v27, %v244_v18  ;;  %v261_v37 = vsel %vm233_vm0, %v256_v29, %v260_v28  ;;  %v899_v45 = vshll.u32 %v1874_v33, 16  ;;  %v327_v46 = vrot.slane %v1845_v12, 1 }
  0x17   : > { %302 = vrot.lane.b32.xlu0 %v245_v35, %s1761_s7  ;;  %306 = vrot.lane.b32.xlu1 %v261_v37, %s1761_s7  ;;  %v277_v43 = vsel %vm233_vm0, %v272_v38, %v276_v32  ;;  %v896_v47 = vrot.slane %v894_v40, 1  ;;  %v329_v48 = vrot.slane %v1848_v13, 1  ;;  %v253_v49 = vsel %vm233_vm0, %v248_v36, %v252_v22 }
  0x18   : > { %1741 = vmatpush.bf16.msra.mxu3 %v1861_v21  ;;  %310 = vrot.lane.b32.xlu2 %v277_v43, %s1761_s7  ;;  %v903_v50 = vshrl.u32 %v1874_v33, 16  ;;  %v331_v51 = vrot.slane %v1853_v16, 1  ;;  %v278_v53 = vshrl.u32 %v1853_v16, 16  ;;  %v282_v54 = vshll.u32 %v1888_v41, 16 }
  0x19   : > { %1737 = vmatpush.bf16.msra.mxu1 %v1870_v26  ;;  %v897_v52 = vor.u32 %v896_v47, %v892_v39  ;;  %v1906_v55 = vsel %vm321_vm1, %v327_v46, %v329_v48  ;;  %v269_v56 = vsel %vm233_vm0, %v264_v42, %v268_v31  ;;  %v901_v57 = vrot.slane %v899_v45, 1 }
  0x1a   : > { %v907_v58 = vshll.u32 %v1892_v44, 16  ;;  %v332_v59 = vsel %vm321_vm1, %v329_v48, %v331_v51  ;;  %v286_v63 = vshrl.u32 %v1888_v41, 16  ;;  %v290_v9 = vshll.u32 %v1914_v60, 16  ;;  %v1710_v48 = vld [vmem:[%s2370_s1 + $0x118] sm:$0xff] }
  0x1b   : > { %1545 = vmatmul.msk.bf16.vlgmr.msra.gmra.mxu3 %vm339_vm2, %v1906_v55  ;;  %v902_v62 = vsel %vm233_vm0, %v897_v52, %v901_v57  ;;  %v280_v10 = vor.u32 %v278_v53, %v276_v32  ;;  %v284_v11 = vrot.slane %v282_v54, 1  ;;  %v905_v17 = vor.u32 %v903_v50, %v901_v57  ;;  %v1965_v50 = vld [vmem:[%s1818_s25 + $0x38] sm:$0xff]  ;;  %v1672_v52 = vld [vmem:[%s2370_s1 + $0x28] sm:$0xff] }
  0x1c   : > { %1489 = vmatmul.msk.bf16.vlgmr.msra.gmra.mxu1 %vm339_vm2, %v332_v59  ;;  %v909_v18 = vrot.slane %v907_v58, 1  ;;  %v292_v22 = vrot.slane %v290_v9, 1  ;;  %v911_v25 = vshrl.u32 %v1892_v44, 16  ;;  %v915_v27 = vshll.u32 %v1926_v14, 16  ;;  %1193 = vmatpush.bf16.msrb.mxu3 %v1710_v48  ;;  %v390_v9 = vld [vmem:[%s1818_s25 + $0x48] sm:$0x1] }
  0x1d   : > { %v288_v20 = vor.u32 %v286_v63, %v284_v11  ;;  %v285_v24 = vsel %vm233_vm0, %v280_v10, %v284_v11  ;;  %v231_v28 = vunpack.c.l.b16 %v188_v19  ;;  %v333_v30 = vrot.slane %v1888_v41, 1  ;;  %734 = vmatpush.bf16.msra.mxu2 %v1672_v52  ;;  %v1686_v63 = vld [vmem:[%s2370_s1 + $0x90] sm:$0xff]  ;;  %v1671_v11 = vld [vmem:[%s2370_s1 + $0x20] sm:$0xff] }
  0x1e   : > { %v910_v29 = vsel %vm233_vm0, %v905_v17, %v909_v18  ;;  %v919_v32 = vshrl.u32 %v1926_v14, 16  ;;  %v923_v35 = vshll.u32 %v1934_v23, 16  ;;  %v913_v36 = vor.u32 %v911_v25, %v909_v18  ;;  %v1705_v18 = vld [vmem:[%s2370_s1 + $0xf0] sm:$0xff] }
  0x1f   : > { %304 = vrot.lane.b32.xlu0 %v253_v49, %s1761_s7  ;;  %308 = vrot.lane.b32.xlu1 %v269_v56, %s1761_s7  ;;  %v293_v31 = vsel %vm233_vm0, %v288_v20, %v292_v22  ;;  %v917_v37 = vrot.slane %v915_v27, 1  ;;  %v1946_v38 = vpack.c.b16 %v231_v28, %v231_v28  ;;  %v1952_v39 = vsel %vm321_vm1, %v331_v51, %v333_v30  ;;  %v1962_v49 = vld [vmem:[%s1818_s25 + $0x40] sm:$0xff]  ;;  %v1687_v51 = vld [vmem:[%s2370_s1 + $0x98] sm:$0xff] }
  0x20   : > { %959 = vrot.lane.b32.xlu2 %v902_v62, %s1761_s7  ;;  %v925_v42 = vrot.slane %v923_v35, 1  ;;  %v294_v45 = vshrl.u32 %v1914_v60, 16  ;;  %v401_v54 = vshll.u32 %v1962_v49, 16  ;;  %v1706_v56 = vld [vmem:[%s2370_s1 + $0xf8] sm:$0xff]  ;;  %v927_v57 = vshrl.u32 %v1934_v23, 16  ;;  %553 = vmatpush.bf16.msra.mxu0 %v1687_v51  ;;  %v1669_v51 = vld [vmem:[%s2370_s1 + $0x10] sm:$0xff] }
  0x21   : > { %v921_v40 = vor.u32 %v919_v32, %v917_v37  ;;  %v918_v43 = vsel %vm233_vm0, %v913_v36, %v917_v37  ;;  %v298_v47 = vshll.u32 %v1946_v38, 16  ;;  %v931_v62 = vshll.u32 %v1965_v50, 16  ;;  %1140 = vmatpush.bf16.msrb.mxu1 %v1706_v56  ;;  %735 = vmatpush.bf16.msra.mxu2 %v1671_v11  ;;  %v1670_v35 = vld [vmem:[%s2370_s1 + $0x18] sm:$0xff]  ;;  %v1704_v36 = vld [vmem:[%s2370_s1 + $0xe8] sm:$0xff] }
  0x22   : > { %v296_v58 = vor.u32 %v294_v45, %v292_v22  ;;  %v403_v10 = vrot.slane %v401_v54, 1  ;;  %v398_v15 = vunpack.c.l.b16 %v390_v9  ;;  %v405_v17 = vshrl.u32 %v1962_v49, 16  ;;  %v2034_v54 = vld [vmem:[%s1818_s25 + $0x48] sm:$0xff]  ;;  %v1702_v11 = vld [vmem:[%s2370_s1 + $0xd8] sm:$0xff] }
  0x23   : > { %v926_v53 = vsel %vm233_vm0, %v921_v40, %v925_v42  ;;  %v929_v20 = vor.u32 %v927_v57, %v925_v42  ;;  %v933_v25 = vrot.slane %v931_v62, 1  ;;  %v935_v27 = vshrl.u32 %v1965_v50, 16  ;;  %v1683_v57 = vld [vmem:[%s2370_s1 + $0x78] sm:$0xff] }
  0x24   : > { %v404_v19 = vsel %vm233_vm0, %v296_v58, %v403_v10  ;;  %v1999_v22 = vpack.c.b16 %v398_v15, %v398_v15  ;;  %v939_v28 = vshll.u32 %v1983_v61, 16  ;;  %554 = vmatpush.bf16.msra.mxu0 %v1686_v63  ;;  %v335_v37 = vrot.slane %v1914_v60, 1  ;;  %v1682_v63 = vld [vmem:[%s2370_s1 + $0x70] sm:$0xff] }
  0x25   : > { %1141 = vmatpush.bf16.msrb.mxu1 %v1705_v18  ;;  %v934_v40 = vsel %vm233_vm0, %v929_v20, %v933_v25  ;;  %736 = vmatpush.bf16.msra.mxu2 %v1670_v35  ;;  %v943_v56 = vshrl.u32 %v1983_v61, 16  ;;  %v947_v62 = vshll.u32 %v2034_v54, 16 }
  0x26   : > { %v409_v32 = vshll.u32 %v1999_v22, 16  ;;  %v941_v45 = vrot.slane %v939_v28, 1  ;;  %v336_v52 = vsel %vm321_vm1, %v333_v30, %v335_v37  ;;  %v1668_v30 = vld [vmem:[%s2370_s1 + $0x8] sm:$0xff]  ;;  %v1732_v28 = vld [vmem:[%s1818_s25 + $0x10] sm:$0xe] }
  0x27   : > { %312 = vrot.lane.b32.xlu0 %v285_v24, %s1761_s7  ;;  %961 = vrot.lane.b32.xlu1 %v910_v29, %s1761_s7  ;;  %v1685_v29 = vld [vmem:[%s2370_s1 + $0x88] sm:$0xff]  ;;  %v949_v9 = vrot.slane %v947_v62, 1 }
  0x28   : > { %314 = vrot.lane.b32.xlu2 %v293_v31, %s1761_s7  ;;  %v407_v31 = vor.u32 %v405_v17, %v403_v10  ;;  %v411_v42 = vrot.slane %v409_v32, 1  ;;  %555 = vmatpush.bf16.msra.mxu0 %v1685_v29  ;;  %v1667_v10 = vld [vmem:[%s2370_s1] sm:$0xff]  ;;  %v422_v17 = vrot.slane %v1962_v49, 1 }
  0x29   : > { %1142 = vmatpush.bf16.msrb.mxu1 %v1704_v36  ;;  %737 = vmatpush.bf16.msra.mxu2 %v1669_v51  ;;  %v1699_v36 = vld [vmem:[%s2370_s1 + $0xc0] sm:$0xff] }
  0x2a   : > { %v412_v48 = vsel %vm233_vm0, %v407_v31, %v411_v42  ;;  %v423_v18 = vsel %vm321_vm1, %v335_v37, %v422_v17  ;;  %v979_v31 = vrot.slane %v1874_v33, 1 }
  0x2b   : > { %1546 = vmatmul.msk.bf16.gmra.mxu3 %vm339_vm2, %v332_v59  ;;  %v300_v59 = vrot.slane %v298_v47, 1  ;;  %v1684_v47 = vld [vmem:[%s2370_s1 + $0x80] sm:$0xff] }
  0x2c   : > { %1490 = vmatmul.msk.bf16.gmra.mxu1 %vm339_vm2, %v1952_v39  ;;  %556 = vmatpush.bf16.msra.mxu0 %v1684_v47 }
  0x2d   : > { %v301_v24 = vsel %vm233_vm0, %v296_v58, %v300_v59  ;;  %v1703_v58 = vld [vmem:[%s2370_s1 + $0xe0] sm:$0xff]  ;;  %v945_v59 = vor.u32 %v943_v56, %v941_v45  ;;  %738 = vmatpush.bf16.msra.mxu2 %v1668_v30 }
  0x2e   : > { %1143 = vmatpush.bf16.msrb.mxu1 %v1703_v58 }
  0x2f   : > { %963 = vrot.lane.b32.xlu0 %v918_v43, %s1761_s7  ;;  %413 = vrot.lane.b32.xlu1 %v404_v19, %s1761_s7  ;;  %v937_v43 = vor.u32 %v935_v27, %v933_v25  ;;  %v950_v15 = vsel %vm233_vm0, %v945_v59, %v949_v9  ;;  %v337_v19 = vrot.slane %v1946_v38, 1  ;;  %v1701_v38 = vld [vmem:[%s2370_s1 + $0xd0] sm:$0xff]  ;;  %v1700_v25 = vld [vmem:[%s2370_s1 + $0xc8] sm:$0xff] }
  0x30   : > { %965 = vrot.lane.b32.xlu2 %v926_v53, %s1761_s7  ;;  %557 = vmatpush.bf16.msra.mxu0 %v1683_v57  ;;  %v1731_v27 = vld [vmem:[%s1818_s25 + $0x10] sm:$0xf0]  ;;  %v983_v57 = vrot.slane %v1926_v14, 1 }
  0x31   : > { %v942_v53 = vsel %vm233_vm0, %v937_v43, %v941_v45  ;;  %739 = vmatpush.bf16.msra.mxu2 %v1667_v10  ;;  %v338_v20 = vsel %vm321_vm1, %v335_v37, %v337_v19  ;;  %v1733_v29 = vor.u32 %v1732_v28, %v1731_v27  ;;  %v846_v45 = vld [vmem:[%s1818_s25 + $0x50] sm:$0x1]  ;;  %v989_v28 = vrot.slane %v1983_v61, 1 }
  0x32   : > { %1144 = vmatpush.bf16.msrb.mxu1 %v1702_v11  ;;  %v889_v47 = vunpack.c.l.b16 %v846_v45 }
  0x33   : > { %v978_v32 = vrot.slane %v1733_v29, 1 }
  0x34   : > { %558 = vmatpush.bf16.msra.mxu0 %v1682_v63  ;;  %v985_v63 = vrot.slane %v1934_v23, 1 }
  0x35   : > { %785 = vmatpush.bf16.msrb.mxu2 %v1793_v0  ;;  %v424_v0 = vrot.slane %v1999_v22, 1  ;;  %v1707_v22 = vld [vmem:[%s2370_s1 + $0x100] sm:$0xff]  ;;  %v980_v35 = vsel %vm321_vm1, %v978_v32, %v979_v31 }
  0x36   : > { %1145 = vmatpush.bf16.msrb.mxu1 %v1701_v38  ;;  %v986_v10 = vsel %vm321_vm1, %v983_v57, %v985_v63 }
  0x37   : > { %316 = vrot.lane.b32.xlu0 %v301_v24, %s1761_s7  ;;  %415 = vrot.lane.b32.xlu1 %v412_v48, %s1761_s7  ;;  %v1680_v24 = vld [vmem:[%s2370_s1 + $0x60] sm:$0xff]  ;;  %v951_v48 = vshrl.u32 %v2034_v54, 16 }
  0x38   : > { %967 = vrot.lane.b32.xlu2 %v934_v40, %s1761_s7  ;;  %v981_v40 = vrot.slane %v1892_v44, 1 }
  0x39   : > { %786 = vmatpush.bf16.msrb.mxu2 %v1806_v2  ;;  %v425_v2 = vsel %vm321_vm1, %v422_v17, %v424_v0 }
  0x3a   : > { %1146 = vmatpush.bf16.msrb.mxu1 %v1700_v25  ;;  %v984_v30 = vsel %vm321_vm1, %v981_v40, %v983_v57 }
  0x3b   : > { %1547 = vmatmul.msk.bf16.gmra.mxu3 %vm339_vm2, %v1952_v39  ;;  %v1709_v39 = vld [vmem:[%s2370_s1 + $0x110] sm:$0xff] }
  0x3c   : > { %1491 = vmatmul.msk.bf16.gmra.mxu1 %vm339_vm2, %v336_v52  ;;  %1194 = vmatpush.bf16.msrb.mxu3 %v1709_v39 }
  0x3d   : > { %787 = vmatpush.bf16.msrb.mxu2 %v1824_v4  ;;  %v1708_v4 = vld [vmem:[%s2370_s1 + $0x108] sm:$0xff] }
  0x3e   : > { %1147 = vmatpush.bf16.msrb.mxu1 %v1699_v36 }
  0x3f   : > { %969 = vrot.lane.b32.xlu0 %v942_v53, %s1761_s7  ;;  %971 = vrot.lane.b32.xlu1 %v950_v15, %s1761_s7 }
  0x40   : > { %1195 = vmatpush.bf16.msrb.mxu3 %v1708_v4 }
  0x41   : > { %788 = vmatpush.bf16.msrb.mxu2 %v1861_v21  ;;  %v1681_v21 = vld [vmem:[%s2370_s1 + $0x68] sm:$0xff] }
  0x42   : > { %559 = vmatpush.bf16.msra.mxu0 %v1681_v21 }
  0x44   : > { %1196 = vmatpush.bf16.msrb.mxu3 %v1707_v22 }
  0x46   : > { %560 = vmatpush.bf16.msra.mxu0 %v1680_v24 }
  0x4a   : > { %606 = vmatpush.bf16.msrb.mxu0 %v1798_v1  ;;  %v982_v1 = vsel %vm321_vm1, %v979_v31, %v981_v40 }
  0x4b   : > { %1548 = vmatmul.msk.bf16.gmra.mxu3 %vm339_vm2, %v336_v52 }
  0x4c   : > { %1492 = vmatmul.msk.bf16.gmra.mxu1 %vm339_vm2, %v423_v18 }
  0x4e   : > { %607 = vmatpush.bf16.msrb.mxu0 %v1812_v3  ;;  %v2116_v3 = vpack.c.b16 %v889_v47, %v889_v47 }
  0x50   : > { %v955_v51 = vshll.u32 %v2116_v3, 16 }
  0x52   : > { %608 = vmatpush.bf16.msrb.mxu0 %v1829_v5  ;;  %v953_v5 = vor.u32 %v951_v48, %v949_v9  ;;  %v957_v52 = vrot.slane %v955_v51, 1 }
  0x54   : > { %v958_v56 = vsel %vm233_vm0, %v953_v5, %v957_v52  ;;  %v993_v52 = vrot.slane %v2116_v3, 1 }
  0x55   : > { %973 = vrot.lane.b32.xlu2 %v958_v56, %s1761_s7 }
  0x56   : > { %609 = vmatpush.bf16.msrb.mxu0 %v1870_v26 }
  0x5b   : > { %1549 = vmatmul.msk.bf16.gmra.mxu3 %vm339_vm2, %v338_v20  ;;  %v987_v20 = vrot.slane %v1965_v50, 1 }
  0x5c   : > { %1493 = vmatmul.msk.bf16.gmra.mxu1 %vm339_vm2, %v425_v2 }
  0x5d   : > { %v988_v4 = vsel %vm321_vm1, %v985_v63, %v987_v20  ;;  %v990_v29 = vsel %vm321_vm1, %v987_v20, %v989_v28 }
  0x6b   : > { %1650 = vmatmul.msk.bf16.vlgmr.msrb.gmra.mxu3 %vm339_vm2, %v980_v35 }
  0x72   : > { %v2104_v37 = vpop.permute.xlu2 %310 }
  0x73   : > { %v353_v31 = vsel %vm339_vm2, %v1848_v13, %v2104_v37 }
  0x7a   : > { %v960_v42 = vpop.permute.xlu2 %959 }
  0x7b   : > { %v996_v43 = vsel %vm339_vm2, %v1877_v34, %v960_v42  ;;  %1651 = vmatmul.msk.bf16.gmra.mxu3 %vm339_vm2, %v982_v1 }
  0x7c   : > { %1148 = vmatmul.bf16.vlgmr.msrb.gmra.mxu1 %v996_v43  ;;  %v991_v43 = vrot.slane %v2034_v54, 1 }
  0x7e   : > { %v992_v37 = vsel %vm321_vm1, %v989_v28, %v991_v43 }
  0x82   : > { %v315_v2 = vpop.permute.xlu2 %314 }
  0x89   : > { %v303_v53 = vpop.permute.xlu0 %302  ;;  %v307_v26 = vpop.permute.xlu1 %306 }
  0x8a   : > { %v341_v34 = vsel %vm339_vm2, %v1832_v6, %v303_v53  ;;  %v347_v11 = vsel %vm339_vm2, %v1838_v8, %v307_v26  ;;  %v966_v22 = vpop.permute.xlu2 %965  ;;  %v359_v26 = vsel %vm339_vm2, %v1888_v41, %v315_v2  ;;  %v323_v2 = vrot.slane %v1835_v7, 1 }
  0x8b   : > { %740 = vmatmul.bf16.vlgmr.msra.gmra.mxu2 %v341_v34  ;;  %1652 = vmatmul.msk.bf16.gmra.mxu3 %vm339_vm2, %v984_v30  ;;  %v1005_v24 = vsel %vm339_vm2, %v1926_v14, %v966_v22  ;;  %v994_v34 = vsel %vm321_vm1, %v991_v43, %v993_v52 }
  0x91   : > { %v305_v58 = vpop.permute.xlu0 %304  ;;  %v309_v59 = vpop.permute.xlu1 %308 }
  0x92   : > { %v344_v39 = vsel %vm339_vm2, %v1835_v7, %v305_v58  ;;  %v350_v21 = vsel %vm339_vm2, %v1845_v12, %v309_v59  ;;  %v968_v35 = vpop.permute.xlu2 %967 }
  0x93   : > { %561 = vmatmul.bf16.vlgmr.msra.gmra.mxu0 %v344_v39  ;;  %v1008_v36 = vsel %vm339_vm2, %v1934_v23, %v968_v35 }
  0x99   : > { %v962_v62 = vpop.permute.xlu1 %961  ;;  %v313_v9 = vpop.permute.xlu0 %312 }
  0x9a   : > { %v999_v6 = vsel %vm339_vm2, %v1874_v33, %v962_v62  ;;  %v2135_v15 = vpop.f32.mrf.mxu1  ;;  %v356_v1 = vsel %vm339_vm2, %v1853_v16, %v313_v9  ;;  %v1724_v9 = vld [vmem:[%s1818_s25] sm:$0xf0] }
  0x9b   : > { %745 = vmatmul.bf16.gmra.mxu2 %v344_v39  ;;  %1153 = vmatmul.bf16.gmra.mxu1 %v999_v6 }
  0x9c   : > { %1653 = vmatmul.msk.bf16.gmra.mxu3 %vm339_vm2, %v986_v10  ;;  %v1725_v10 = vld [vmem:[%s1818_s25] sm:$0xe] }
  0x9e   : > { %v2137_v17 = vpop.f32.mrf.mxu3 }
  0xa1   : > { %v964_v18 = vpop.permute.xlu0 %963  ;;  %v414_v45 = vpop.permute.xlu1 %413 }
  0xa2   : > { %v1002_v33 = vsel %vm339_vm2, %v1892_v44, %v964_v18  ;;  %v2141_v19 = vpop.f32.mrf.mxu1  ;;  %v427_v41 = vsel %vm339_vm2, %v1914_v60, %v414_v45 }
  0xa3   : > { %566 = vmatmul.bf16.gmra.mxu0 %v347_v11 }
  0xa6   : > { %v2143_v0 = vpop.f32.mrf.mxu3 }
  0xa9   : > { %v317_v13 = vpop.permute.xlu0 %316  ;;  %v416_v53 = vpop.permute.xlu1 %415 }
  0xaa   : > { %v2150_v38 = vpop.f32.mrf.mxu1  ;;  %v362_v62 = vsel %vm339_vm2, %v1914_v60, %v317_v13  ;;  %v430_v18 = vsel %vm339_vm2, %v1962_v49, %v416_v53 }
  0xab   : > { %750 = vmatmul.bf16.gmra.mxu2 %v347_v11  ;;  %1158 = vmatmul.bf16.gmra.mxu1 %v1002_v33  ;;  %v1726_v33 = vor.u32 %v1725_v10, %v1724_v9 }
  0xac   : > { %1654 = vmatmul.msk.bf16.gmra.mxu3 %vm339_vm2, %v988_v4 }
  0xad   : > { %v322_v60 = vrot.slane %v1726_v33, 1 }
  0xae   : > { %v2152_v44 = vpop.f32.mrf.mxu3 }
  0xaf   : > { %v974_v59 = vpop.permute.xlu2 %973 }
  0xb1   : > { %v970_v48 = vpop.permute.xlu0 %969 }
  0xb2   : > { %v2156_v25 = vpop.f32.mrf.mxu1  ;;  %v1011_v5 = vsel %vm339_vm2, %v1965_v50, %v970_v48  ;;  %v972_v50 = vpop.permute.xlu1 %971 }
  0xb3   : > { %571 = vmatmul.bf16.gmra.mxu0 %v350_v21  ;;  %v1014_v3 = vsel %vm339_vm2, %v1983_v61, %v972_v50  ;;  %v1017_v61 = vsel %vm339_vm2, %v2034_v54, %v974_v59  ;;  %v1727_v54 = vld [vmem:[%s1818_s25 + $0x8] sm:$0xf0] }
  0xb6   : > { %v2158_v27 = vpop.f32.mrf.mxu3 }
  0xba   : > { %v2166_v32 = vpop.f32.mrf.mxu1 }
  0xbb   : > { %755 = vmatmul.bf16.gmra.mxu2 %v350_v21  ;;  %1163 = vmatmul.bf16.gmra.mxu1 %v1005_v24  ;;  %v1728_v21 = vld [vmem:[%s1818_s25 + $0x8] sm:$0xe]  ;;  %v324_v24 = vsel %vm321_vm1, %v322_v60, %v323_v2 }
  0xbc   : > { %1655 = vmatmul.msk.bf16.gmra.mxu3 %vm339_vm2, %v990_v29  ;;  %v1729_v28 = vor.u32 %v1728_v21, %v1727_v54  ;;  %v325_v29 = vrot.slane %v1838_v8, 1 }
  0xbe   : > { %v2168_v14 = vpop.f32.mrf.mxu3  ;;  %v328_v52 = vsel %vm321_vm1, %v325_v29, %v327_v46 }
  0xc2   : > { %v2172_v40 = vpop.f32.mrf.mxu1 }
  0xc3   : > { %576 = vmatmul.bf16.gmra.mxu0 %v353_v31 }
  0xc6   : > { %v2174_v42 = vpop.f32.mrf.mxu3 }
  0xca   : > { %v2181_v47 = vpop.f32.mrf.mxu1 }
  0xcb   : > { %760 = vmatmul.bf16.gmra.mxu2 %v353_v31  ;;  %1168 = vmatmul.bf16.gmra.mxu1 %v1008_v36  ;;  %v420_v31 = vrot.slane %v1729_v28, 1 }
  0xcc   : > { %1656 = vmatmul.msk.bf16.gmra.mxu3 %vm339_vm2, %v992_v37  ;;  %v326_v37 = vsel %vm321_vm1, %v323_v2, %v325_v29 }
  0xcd   : > { %v421_v7 = vsel %vm321_vm1, %v420_v31, %v325_v29 }
  0xce   : > { %v2183_v23 = vpop.f32.mrf.mxu3 }
  0xd2   : > { %v2190_v16 = vpop.f32.mrf.mxu1 }
  0xd3   : > { %581 = vmatmul.bf16.gmra.mxu0 %v356_v1 }
  0xd6   : > { %v2187_v51 = vpop.f32.mrf.mxu3 }
  0xda   : > { %v2198_v57 = vpop.f32.mrf.mxu1 }
  0xdb   : > { %765 = vmatmul.bf16.gmra.mxu2 %v356_v1  ;;  %1173 = vmatmul.bf16.gmra.mxu1 %v1011_v5 }
  0xdc   : > { %1657 = vmatmul.msk.bf16.gmra.mxu3 %vm339_vm2, %v994_v34 }
  0xde   : > { %v2196_v56 = vpop.f32.mrf.mxu3 }
  0xe2   : > { %v2206_v58 = vpop.f32.mrf.mxu1 }
  0xe3   : > { %586 = vmatmul.bf16.gmra.mxu0 %v359_v26 }
  0xe6   : > { %v2202_v30 = vpop.f32.mrf.mxu3 }
  0xeb   : > { %770 = vmatmul.bf16.gmra.mxu2 %v359_v26  ;;  %1178 = vmatmul.bf16.gmra.mxu1 %v1014_v3 }
  0xee   : > { %v1198_v39 = vpop.f32.mrf.mxu3 }
  0xf3   : > { %591 = vmatmul.bf16.gmra.mxu0 %v427_v41 }
  0xf6   : > { %v1200_v11 = vpop.f32.mrf.mxu3 }
  0xf9   : > { %v1149_v6 = vpop.f32.mrf.mxu1 }
  0xfa   : > { %v2212_v63 = vadd.f32 %v1198_v39, %v1149_v6 }
  0xfb   : > { %775 = vmatmul.bf16.gmra.mxu2 %v362_v62  ;;  %1183 = vmatmul.bf16.gmra.mxu1 %v1017_v61 }
  0xfe   : > { %v1203_v22 = vpop.f32.mrf.mxu3 }
 0x101   : > { %v1151_v20 = vpop.f32.mrf.mxu1 }
 0x102   : > { %v2219_v4 = vadd.f32 %v1200_v11, %v1151_v20 }
 0x103   : > { %596 = vmatmul.bf16.gmra.mxu0 %v430_v18 }
 0x106   : > { %v1205_v35 = vpop.f32.mrf.mxu3 }
 0x10b   : > { %1542 = vmatmul.msk.bf16.vlgmr.msrb.gmra.mxu2 %vm339_vm2, %v324_v24 }
 0x10e   : > { %v2226_v49 = vpop.f32.mrf.mxu2  ;;  %v1208_v45 = vpop.f32.mrf.mxu3 }
 0x110   : > { %v2228_v36 = vpop.f32.mrf.mxu0 }
 0x113   : > { %1486 = vmatmul.msk.bf16.vlgmr.msrb.gmra.mxu0 %vm339_vm2, %v421_v7 }
 0x116   : > { %v2232_v43 = vpop.f32.mrf.mxu2  ;;  %v1210_v26 = vpop.f32.mrf.mxu3 }
 0x118   : > { %v2234_v13 = vpop.f32.mrf.mxu0  ;;  %v1154_v1 = vpop.f32.mrf.mxu1 }
 0x119   : > { %v2237_v48 = vadd.f32 %v1203_v22, %v1154_v1 }
 0x11b   : > { %1543 = vmatmul.msk.bf16.gmra.mxu2 %vm339_vm2, %v326_v37 }
 0x11e   : > { %v2240_v8 = vpop.f32.mrf.mxu2 }
 0x11f   : > { %v1213_v59 = vpop.f32.mrf.mxu3 }
 0x120   : > { %v2242_v5 = vpop.f32.mrf.mxu0  ;;  %v1156_v53 = vpop.f32.mrf.mxu1 }
 0x121   : > { %v2247_v34 = vadd.f32 %v1205_v35, %v1156_v53 }
 0x123   : > { %1487 = vmatmul.msk.bf16.gmra.mxu0 %vm339_vm2, %v328_v52 }
 0x126   : > { %v2250_v50 = vpop.f32.mrf.mxu2 }
 0x127   : > { %v1215_v9 = vpop.f32.mrf.mxu3 }
 0x128   : > { %v2252_v3 = vpop.f32.mrf.mxu0  ;;  %v1159_v41 = vpop.f32.mrf.mxu1 }
 0x129   : > { %v2254_v39 = vadd.f32 %v1208_v45, %v1159_v41 }
 0x12b   : > { %1544 = vmatmul.msk.bf16.gmra.mxu2 %vm339_vm2, %v328_v52 }
 0x12e   : > { %v2257_v62 = vpop.f32.mrf.mxu2 }
 0x12f   : > { %v1218_v2 = vpop.f32.mrf.mxu3 }
 0x130   : > { %v2259_v12 = vpop.f32.mrf.mxu0  ;;  %v1161_v46 = vpop.f32.mrf.mxu1 }
 0x131   : > { %v2261_v61 = vadd.f32 %v1210_v26, %v1161_v46 }
 0x133   : > { %1488 = vmatmul.msk.bf16.gmra.mxu0 %vm339_vm2, %v1906_v55  ;;  %v2274_v55 = vld [vmem:[%s2371_s2] ss:$0 sm:$0xff] }
 0x136   : > { %v2265_v6 = vpop.f32.mrf.mxu2 }
 0x137   : > { %v1220_v45 = vpop.f32.mrf.mxu3 }
 0x138   : > { %v2267_v10 = vpop.f32.mrf.mxu0  ;;  %v1164_v11 = vpop.f32.mrf.mxu1 }
 0x139   : > { %v1214_v21 = vadd.f32 %v1213_v59, %v1164_v11 }
 0x13e   : > { %v756_v18 = vpop.f32.mrf.mxu2 }
 0x140   : > { %v577_v33 = vpop.f32.mrf.mxu0  ;;  %v1166_v60 = vpop.f32.mrf.mxu1 }
 0x141   : > { %v627_v20 = vadd.f32 %v2135_v15, %v577_v33  ;;  %v1216_v1 = vadd.f32 %v1215_v9, %v1166_v60  ;;  %v1223_v60 = vpop.f32.mrf.mxu3 }
 0x143   : > { %v757_v54 = vadd.f32 %v756_v18, %v627_v20 }
 0x145   : > { %v806_v22 = vadd.f32 %v2137_v17, %v757_v54 }
 0x146   : > { %v758_v24 = vpop.f32.mrf.mxu2 }
 0x147   : > { %v1244_v28 = vadd.f32 %v1214_v21, %v806_v22 }
 0x148   : > { %v579_v29 = vpop.f32.mrf.mxu0  ;;  %v1169_v15 = vpop.f32.mrf.mxu1 }
 0x149   : > { %v1264_v31 = vadd.f32 %v2274_v55, %v1244_v28  ;;  %v629_v35 = vadd.f32 %v2141_v19, %v579_v29  ;;  %v1219_v18 = vadd.f32 %v1218_v2, %v1169_v15 }
 0x14b   : > { %v1280_v7 = vmax.f32 %v1264_v31, 0.0  ;;  %v759_v37 = vadd.f32 %v758_v24, %v629_v35 }
 0x14d   : > { %v1296_v17 = vpack.c.bf16 %v1280_v7, %v1280_v7  ;;  %v808_v52 = vadd.f32 %v2143_v0, %v759_v37  ;;  %v1225_v7 = vpop.f32.mrf.mxu3 }
 0x14e   : > { %v761_v53 = vpop.f32.mrf.mxu2 }
 0x14f   : > { %1313 = vst.msk [vmem:[%s2282_s23 + $0x18] sm:$0xf] %vm1306_vm3, %v1296_v17  ;;  %v1245_v19 = vadd.f32 %v1216_v1, %v808_v52 }
 0x150   : > { %v582_v26 = vpop.f32.mrf.mxu0  ;;  %v1171_v46 = vpop.f32.mrf.mxu1 }
 0x151   : > { %v1265_v41 = vadd.f32 %v2274_v55, %v1245_v19  ;;  %v632_v59 = vadd.f32 %v2150_v38, %v582_v26  ;;  %v1221_v31 = vadd.f32 %v1220_v45, %v1171_v46 }
 0x153   : > { %v1281_v9 = vmax.f32 %v1265_v41, 0.0  ;;  %v762_v11 = vadd.f32 %v761_v53, %v632_v59 }
 0x155   : > { %v1297_v33 = vpack.c.bf16 %v1281_v9, %v1281_v9  ;;  %v811_v20 = vadd.f32 %v2152_v44, %v762_v11  ;;  %v1228_v11 = vpop.f32.mrf.mxu3 }
 0x156   : > { %v763_v54 = vpop.f32.mrf.mxu2 }
 0x157   : > { %1314 = vst.msk [vmem:[%s2282_s23 + $0x1c] sm:$0xf] %vm1306_vm3, %v1297_v33  ;;  %v1246_v0 = vadd.f32 %v1219_v18, %v811_v20 }
 0x158   : > { %v584_v21 = vpop.f32.mrf.mxu0  ;;  %v1174_v28 = vpop.f32.mrf.mxu1 }
 0x159   : > { %v1266_v22 = vadd.f32 %v2274_v55, %v1246_v0  ;;  %v634_v24 = vadd.f32 %v2156_v25, %v584_v21  ;;  %v1224_v19 = vadd.f32 %v1223_v60, %v1174_v28 }
 0x15b   : > { %v1282_v38 = vmax.f32 %v1266_v22, 0.0  ;;  %v764_v29 = vadd.f32 %v763_v54, %v634_v24 }
 0x15d   : > { %v1298_v35 = vpack.c.bf16 %v1282_v38, %v1282_v38  ;;  %v813_v2 = vadd.f32 %v2158_v27, %v764_v29  ;;  %v1230_v29 = vpop.f32.mrf.mxu3 }
 0x15e   : > { %v766_v15 = vpop.f32.mrf.mxu2 }
 0x15f   : > { %1315 = vst.msk [vmem:[%s2282_s23 + $0x20] sm:$0xf] %vm1306_vm3, %v1298_v35  ;;  %v1247_v44 = vadd.f32 %v1221_v31, %v813_v2 }
 0x160   : > { %v587_v37 = vpop.f32.mrf.mxu0  ;;  %v1176_v52 = vpop.f32.mrf.mxu1 }
 0x161   : > { %v1267_v1 = vadd.f32 %v2274_v55, %v1247_v44  ;;  %v637_v17 = vadd.f32 %v2166_v32, %v587_v37  ;;  %v1226_v20 = vadd.f32 %v1225_v7, %v1176_v52 }
 0x163   : > { %v1283_v25 = vmax.f32 %v1267_v1, 0.0  ;;  %v767_v53 = vadd.f32 %v766_v15, %v637_v17 }
 0x165   : > { %v1299_v26 = vpack.c.bf16 %v1283_v25, %v1283_v25  ;;  %v816_v45 = vadd.f32 %v2168_v14, %v767_v53  ;;  %v1233_v53 = vpop.f32.mrf.mxu3 }
 0x166   : > { %v768_v41 = vpop.f32.mrf.mxu2 }
 0x167   : > { %1316 = vst.msk [vmem:[%s2282_s23 + $0x24] sm:$0xf] %vm1306_vm3, %v1299_v26  ;;  %v1248_v27 = vadd.f32 %v1224_v19, %v816_v45 }
 0x168   : > { %v589_v59 = vpop.f32.mrf.mxu0  ;;  %v1179_v18 = vpop.f32.mrf.mxu1 }
 0x169   : > { %v1268_v46 = vadd.f32 %v2274_v55, %v1248_v27  ;;  %v639_v9 = vadd.f32 %v2172_v40, %v589_v59  ;;  %v1229_v38 = vadd.f32 %v1228_v11, %v1179_v18 }
 0x16b   : > { %v1284_v32 = vmax.f32 %v1268_v46, 0.0  ;;  %v769_v33 = vadd.f32 %v768_v41, %v639_v9 }
 0x16d   : > { %v1300_v54 = vpack.c.bf16 %v1284_v32, %v1284_v32  ;;  %v818_v60 = vadd.f32 %v2174_v42, %v769_v33  ;;  %v1235_v32 = vpop.f32.mrf.mxu3 }
 0x16e   : > { %v771_v0 = vpop.f32.mrf.mxu2 }
 0x16f   : > { %1317 = vst.msk [vmem:[%s2282_s23 + $0x28] sm:$0xf] %vm1306_vm3, %v1300_v54  ;;  %v1249_v14 = vadd.f32 %v1226_v20, %v818_v60 }
 0x170   : > { %v592_v21 = vpop.f32.mrf.mxu0  ;;  %v1181_v31 = vpop.f32.mrf.mxu1 }
 0x171   : > { %v1269_v22 = vadd.f32 %v2274_v55, %v1249_v14  ;;  %v642_v24 = vadd.f32 %v2181_v47, %v592_v21  ;;  %v1231_v17 = vadd.f32 %v1230_v29, %v1181_v31 }
 0x173   : > { %v1285_v28 = vmax.f32 %v1269_v22, 0.0  ;;  %v772_v40 = vadd.f32 %v771_v0, %v642_v24 }
 0x175   : > { %v1301_v35 = vpack.c.bf16 %v1285_v28, %v1285_v28  ;;  %v821_v2 = vadd.f32 %v2183_v23, %v772_v40 }
 0x176   : > { %v773_v15 = vpop.f32.mrf.mxu2 }
 0x177   : > { %1318 = vst.msk [vmem:[%s2282_s23 + $0x2c] sm:$0xf] %vm1306_vm3, %v1301_v35  ;;  %v1250_v42 = vadd.f32 %v1229_v38, %v821_v2 }
 0x178   : > { %v594_v44 = vpop.f32.mrf.mxu0  ;;  %v1184_v26 = vpop.f32.mrf.mxu1 }
 0x179   : > { %v1270_v7 = vadd.f32 %v2274_v55, %v1250_v42  ;;  %v644_v37 = vadd.f32 %v2190_v16, %v594_v44  ;;  %v1234_v46 = vadd.f32 %v1233_v53, %v1184_v26 }
 0x17b   : > { %v1286_v1 = vmax.f32 %v1270_v7, 0.0  ;;  %v774_v47 = vadd.f32 %v773_v15, %v644_v37 }
 0x17d   : > { %v1302_v52 = vpack.c.bf16 %v1286_v1, %v1286_v1  ;;  %v823_v25 = vadd.f32 %v2187_v51, %v774_v47 }
 0x17e   : > { %v776_v19 = vpop.f32.mrf.mxu2 }
 0x17f   : > { %1319 = vst.msk [vmem:[%s2282_s23 + $0x30] sm:$0xf] %vm1306_vm3, %v1302_v52  ;;  %v1251_v23 = vadd.f32 %v1231_v17, %v823_v25 }
 0x180   : > { %v597_v45 = vpop.f32.mrf.mxu0  ;;  %v1186_v20 = vpop.f32.mrf.mxu1 }
 0x181   : > { %v1271_v41 = vadd.f32 %v2274_v55, %v1251_v23  ;;  %v647_v27 = vadd.f32 %v2198_v57, %v597_v45  ;;  %v1236_v14 = vadd.f32 %v1235_v32, %v1186_v20 }
 0x183   : > { %v1287_v59 = vmax.f32 %v1271_v41, 0.0  ;;  %v777_v16 = vadd.f32 %v776_v19, %v647_v27 }
 0x185   : > { %v1303_v9 = vpack.c.bf16 %v1287_v59, %v1287_v59  ;;  %v826_v11 = vadd.f32 %v2196_v56, %v777_v16 }
 0x186   : > { %v778_v18 = vpop.f32.mrf.mxu2 }
 0x187   : > { %1320 = vst.msk [vmem:[%s2282_s23 + $0x34] sm:$0xf] %vm1306_vm3, %v1303_v9  ;;  %v1252_v51 = vadd.f32 %v1234_v46, %v826_v11 }
 0x188   : > { %v599_v33 = vpop.f32.mrf.mxu0 }
 0x189   : > { %v1272_v54 = vadd.f32 %v2274_v55, %v1252_v51  ;;  %v649_v60 = vadd.f32 %v2206_v58, %v599_v33 }
 0x18b   : > { %v1288_v0 = vmax.f32 %v1272_v54, 0.0  ;;  %v779_v57 = vadd.f32 %v778_v18, %v649_v60 }
 0x18d   : > { %v1304_v21 = vpack.c.bf16 %v1288_v0, %v1288_v0  ;;  %v828_v22 = vadd.f32 %v2202_v30, %v779_v57 }
 0x18e   : > { %v790_v24 = vpop.f32.mrf.mxu2 }
 0x18f   : > { %1321 = vst.msk [vmem:[%s2282_s23 + $0x38] sm:$0xf] %vm1306_vm3, %v1304_v21  ;;  %v1253_v56 = vadd.f32 %v1236_v14, %v828_v22 }
 0x190   : > { %v611_v28 = vpop.f32.mrf.mxu0 }
 0x191   : > { %v1273_v40 = vadd.f32 %v2274_v55, %v1253_v56  ;;  %v612_v38 = vadd.f32 %v611_v28, %v2228_v36 }
 0x193   : > { %v1289_v29 = vmax.f32 %v1273_v40, 0.0  ;;  %v742_v58 = vadd.f32 %v2226_v49, %v612_v38 }
 0x195   : > { %v1305_v31 = vpack.c.bf16 %v1289_v29, %v1289_v29  ;;  %v791_v35 = vadd.f32 %v790_v24, %v742_v58 }
 0x196   : > { %v792_v2 = vpop.f32.mrf.mxu2 }
 0x197   : > { %1322 = vst.msk [vmem:[%s2282_s23 + $0x3c] sm:$0xf] %vm1306_vm3, %v1305_v31  ;;  %v1238_v30 = vadd.f32 %v2212_v63, %v791_v35 }
 0x198   : > { %v613_v15 = vpop.f32.mrf.mxu0 }
 0x199   : > { %v1258_v42 = vadd.f32 %v2274_v55, %v1238_v30  ;;  %v614_v44 = vadd.f32 %v613_v15, %v2234_v13 }
 0x19b   : > { %v1274_v7 = vmax.f32 %v1258_v42, 0.0  ;;  %v744_v36 = vadd.f32 %v2232_v43, %v614_v44 }
 0x19d   : > { %v1290_v37 = vpack.c.bf16 %v1274_v7, %v1274_v7  ;;  %v793_v1 = vadd.f32 %v792_v2, %v744_v36 }
 0x19e   : > { %v795_v47 = vpop.f32.mrf.mxu2 }
 0x19f   : > { %1307 = vst.msk [vmem:[%s2282_s23] sm:$0xf] %vm1306_vm3, %v1290_v37  ;;  %v1239_v49 = vadd.f32 %v2219_v4, %v793_v1 }
 0x1a0   : > { %v616_v17 = vpop.f32.mrf.mxu0 }
 0x1a1   : > { %v1259_v52 = vadd.f32 %v2274_v55, %v1239_v49  ;;  %v617_v63 = vadd.f32 %v616_v17, %v2242_v5 }
 0x1a3   : > { %v1275_v25 = vmax.f32 %v1259_v52, 0.0  ;;  %v747_v53 = vadd.f32 %v2240_v8, %v617_v63 }
 0x1a5   : > { %v1291_v13 = vpack.c.bf16 %v1275_v25, %v1275_v25  ;;  %v796_v19 = vadd.f32 %v795_v47, %v747_v53 }
 0x1a6   : > { %v797_v26 = vpop.f32.mrf.mxu2 }
 0x1a7   : > { %1308 = vst.msk [vmem:[%s2282_s23 + $0x4] sm:$0xf] %vm1306_vm3, %v1291_v13  ;;  %v1240_v43 = vadd.f32 %v2237_v48, %v796_v19 }
 0x1a8   : > { %v618_v23 = vpop.f32.mrf.mxu0 }
 0x1a9   : > { %v1260_v45 = vadd.f32 %v2274_v55, %v1240_v43  ;;  %v619_v4 = vadd.f32 %v618_v23, %v2252_v3 }
 0x1ab   : > { %v1276_v41 = vmax.f32 %v1260_v45, 0.0  ;;  %v749_v27 = vadd.f32 %v2250_v50, %v619_v4 }
 0x1ad   : > { %v1292_v5 = vpack.c.bf16 %v1276_v41, %v1276_v41  ;;  %v798_v59 = vadd.f32 %v797_v26, %v749_v27 }
 0x1ae   : > { %v800_v9 = vpop.f32.mrf.mxu2 }
 0x1af   : > { %1309 = vst.msk [vmem:[%s2282_s23 + $0x8] sm:$0xf] %vm1306_vm3, %v1292_v5  ;;  %v1241_v8 = vadd.f32 %v2247_v34, %v798_v59 }
 0x1b0   : > { %v621_v16 = vpop.f32.mrf.mxu0 }
 0x1b1   : > { %v1261_v46 = vadd.f32 %v2274_v55, %v1241_v8  ;;  %v622_v48 = vadd.f32 %v621_v16, %v2259_v12 }
 0x1b3   : > { %v1277_v11 = vmax.f32 %v1261_v46, 0.0  ;;  %v752_v18 = vadd.f32 %v2257_v62, %v622_v48 }
 0x1b5   : > { %v1293_v3 = vpack.c.bf16 %v1277_v11, %v1277_v11  ;;  %v801_v51 = vadd.f32 %v800_v9, %v752_v18 }
 0x1b6   : > { %v802_v54 = vpop.f32.mrf.mxu2 }
 0x1b7   : > { %1310 = vst.msk [vmem:[%s2282_s23 + $0xc] sm:$0xf] %vm1306_vm3, %v1293_v3  ;;  %v1242_v50 = vadd.f32 %v2254_v39, %v801_v51 }
 0x1b8   : > { %v623_v32 = vpop.f32.mrf.mxu0 }
 0x1b9   : > { %v1262_v34 = vadd.f32 %v2274_v55, %v1242_v50  ;;  %v624_v33 = vadd.f32 %v623_v32, %v2267_v10 }
 0x1bb   : > { %v1278_v20 = vmax.f32 %v1262_v34, 0.0  ;;  %v754_v12 = vadd.f32 %v2265_v6, %v624_v33 }
 0x1bd   : > { %v1294_v60 = vpack.c.bf16 %v1278_v20, %v1278_v20  ;;  %v803_v0 = vadd.f32 %v802_v54, %v754_v12 }
 0x1bf   : > { %1311 = vst.msk [vmem:[%s2282_s23 + $0x10] sm:$0xf] %vm1306_vm3, %v1294_v60  ;;  %v1243_v62 = vadd.f32 %v2261_v61, %v803_v0 }
 0x1c1   : > { %v1263_v57 = vadd.f32 %v2274_v55, %v1243_v62 }
 0x1c3   : > { %v1279_v14 = vmax.f32 %v1263_v57, 0.0 }
 0x1c5   : > { %v1295_v21 = vpack.c.bf16 %v1279_v14, %v1279_v14 }
 0x1c7   : > { %1312 = vst.msk [vmem:[%s2282_s23 + $0x14] sm:$0xf] %vm1306_vm3, %v1295_v21 }
 0x1c8 PF: > { %s13_s12 = sadd.s32 1, %s1759_s12  }
 0x1c9   : > { %p10_p4 = scmp.ge.s32.totalorder %s13_s12, 4  }
 0x1cb   :  { %12 = sbr.rel (!%p10_p4) target bundleno = 1 (0x1), region = 64 }

// kernel: _lambda_.10
= control target key start
LH: loop header
LB: loop body
LE: loop exit
PB: predicated region body
PF: predicated region fallthrough
CT: control target
= control target key end

     0   :  { %s1412_s21 = smov 0   ;;  %s1636_s0 = inlined_call_operand.vmem [shape: bf16[2,48,64], index: 0, kind: input, shape index: {}]   ;;  %s1637_s1 = inlined_call_operand.vmem [shape: bf16[2,48,64], index: 1, kind: input, shape index: {}]   ;;  %s1638_s2 = inlined_call_operand.vmem [shape: bf16[2,48,64], index: 2, kind: input, shape index: {}]   ;;  %s1639_s3 = inlined_call_operand.vmem [shape: bf16[2,48,64], index: 3, kind: input, shape index: {}]   ;;  %s1640_s4 = inlined_call_operand.vmem [shape: bf16[3,192,64], index: 4, kind: input, shape index: {}]   ;;  %s1641_s5 = inlined_call_operand.vmem [shape: f32[1,64], index: 5, kind: input, shape index: {}]   ;;  %s1642_s6 = inlined_call_operand.vmem [shape: bf16[2,32,64], index: 6, kind: output, shape index: {}]  }
   0x1 LB: > { %s1043_s22 = sadd.s32 4294967295, %s1374_s21   ;;  %p1047_p0 = scmp.ge.s32.totalorder %s1374_s21, 1  ;;  %s1374_s21 = sphi %s1412_s21, %s16_s21  }
   0x2   : > { %p242_p1 = scmp.lt.s32.totalorder %s1374_s21, 3 }
   0x4   : > { %p243_p2 = pnand %p1047_p0, %p242_p1 }
   0x5   : > { %p287_p3 = scmp.lt.s32.totalorder (!%p243_p2), %s1043_s22, 1  ;;  %s1376_s15 = smov (!%p243_p2), 64  }
   0x6   : > { %246 = sbr.rel (%p243_p2) target bundleno = 305 (0x131), region = 44 }
   0xb   : > { %v1304_v0 = vld [vmem:[%s1640_s4 + $0x58] sm:$0xff]  ;;  %s1644_s22 = smov (!%p287_p3, %s1043_s22), 1  ;;  %v1303_v2 = vld [vmem:[%s1640_s4 + $0x50] sm:$0xff]  ;;  %v1302_v7 = vld [vmem:[%s1640_s4 + $0x48] sm:$0xff]  ;;  %vm349_vm0 = vsmask.f32 7424 }
   0xc   : > { %v1320_v1 = vld [vmem:[%s1640_s4 + $0xb8] sm:$0xff]  ;;  %705 = vmatpush.bf16.msra.mxu3 %v1304_v0  ;;  %v1319_v3 = vld [vmem:[%s1640_s4 + $0xb0] sm:$0xff]  ;;  %s1352_s9 = smul.u32 24, %s1644_s22  ;;  %v1318_v8 = vld [vmem:[%s1640_s4 + $0xa8] sm:$0xff]  ;;  %vm370_vm1 = vcmask 523264   ;;  %s1290_s26 = sshll.u32 %s1644_s22, 4 }
   0xd   : > { %589 = vmatpush.bf16.msra.mxu1 %v1320_v1  ;;  %v1300_v4 = vld [vmem:[%s1640_s4 + $0x38] sm:$0xff]  ;;  %v1299_v5 = vld [vmem:[%s1640_s4 + $0x30] sm:$0xff]  ;;  %v1301_v13 = vld [vmem:[%s1640_s4 + $0x40] sm:$0xff]  ;;  %vm947_vm2 = vcmask 519168  }
   0xe   : > { %682 = vmatpush.bf16.msra.mxu2 %v1300_v4  ;;  %v1316_v6 = vld [vmem:[%s1640_s4 + $0x98] sm:$0xff]  ;;  %s1447_s16 = scalar_lea.vmem %s1637_s1, %s1352_s9  ;;  %s1452_s19 = scalar_lea.vmem %s1636_s0, %s1352_s9  ;;  %v1315_v11 = vld [vmem:[%s1640_s4 + $0x90] sm:$0xff]  ;;  %v1298_v14 = vld [vmem:[%s1640_s4 + $0x28] sm:$0xff] }
   0xf   : > { %v1291_v9 = vld [vmem:[%s1447_s16] sm:$0xff]  ;;  %s1465_s28 = scalar_lea.vmem %s1639_s3, %s1352_s9  ;;  %s1470_s7 = scalar_lea.vmem %s1638_s2, %s1352_s9  ;;  %566 = vmatpush.bf16.msra.mxu0 %v1316_v6  ;;  %v1488_v16 = vld [vmem:[%s1452_s19 + $0x8] sm:$0xff]   ;;  %v1331_v24 = vld [vmem:[%s1640_s4 + $0xf8] sm:$0xff] }
  0x10   : > { %706 = vmatpush.bf16.msra.mxu3 %v1303_v2  ;;  %v1321_v10 = vld [vmem:[%s1447_s16 + $0x4] sm:$0xff]  ;;  %342 = vrot.lane.b32.xlu0 %v1291_v9, %s1376_s15  ;;  %v1491_v17 = vld [vmem:[%s1452_s19 + $0xc] sm:$0xf]  ;;  %v358_v20 = vshll.u32 %v1488_v16, 16  ;;  %v1335_v25 = vld [vmem:[%s1640_s4 + $0x118] sm:$0xff]  ;;  %v362_v55 = vshrl.u32 %v1488_v16, 16 }
  0x11   : > { %590 = vmatpush.bf16.msra.mxu1 %v1319_v3  ;;  %v1308_v12 = vld [vmem:[%s1465_s28 + $0x8] sm:$0xff]  ;;  %743 = vrot.lane.b32.xlu1 %v1321_v10, %s1376_s15  ;;  %v1485_v15 = vld [vmem:[%s1452_s19] sm:$0xff]   ;;  %v321_v31 = vld [vmem:[%s1452_s19 + $0x10] sm:$0x1] }
  0x12   : > { %683 = vmatpush.bf16.msra.mxu2 %v1299_v5  ;;  %432 = vrot.lane.b32.xlu2 %v1308_v12, %s1376_s15  ;;  %v351_v18 = vshrl.u32 %v1485_v15, 16  ;;  %v353_v19 = vshll.u32 %v1485_v15, 16  ;;  %v1317_v21 = vld [vmem:[%s1640_s4 + $0xa0] sm:$0xff]  ;;  %v1504_v23 = vld [vmem:[%s1470_s7 + $0x8] sm:$0xff]  ;;  %v360_v28 = vrot.slane %v358_v20, 1  ;;  %v347_v40 = vunpack.c.l.b16 %v321_v31  ;;  %v1334_v41 = vld [vmem:[%s1640_s4 + $0x110] sm:$0xff] }
  0x13   : > { %v1501_v22 = vld [vmem:[%s1470_s7] sm:$0xff]  ;;  %567 = vmatpush.bf16.msra.mxu0 %v1315_v11  ;;  %v1292_v33 = vld [vmem:[%s1447_s16 + $0x8] sm:$0xff]  ;;  %v445_v34 = vshll.u32 %v1504_v23, 16  ;;  %v409_v35 = vld [vmem:[%s1470_s7 + $0x10] sm:$0x1]  ;;  %v449_v59 = vshrl.u32 %v1504_v23, 16 }
  0x14   : > { %707 = vmatpush.bf16.msra.mxu3 %v1302_v7  ;;  %v1297_v26 = vld [vmem:[%s1640_s4 + $0x20] sm:$0xff]  ;;  %v355_v27 = vrot.slane %v353_v19, 1  ;;  %v438_v29 = vshrl.u32 %v1501_v22, 16  ;;  %v440_v30 = vshll.u32 %v1501_v22, 16  ;;  %v1322_v36 = vld [vmem:[%s1447_s16 + $0xc] sm:$0xff]  ;;  %v435_v46 = vunpack.c.l.b16 %v409_v35  ;;  %v1296_v47 = vld [vmem:[%s1640_s4 + $0x18] sm:$0xff] }
  0x15   : > { %591 = vmatpush.bf16.msra.mxu1 %v1318_v8  ;;  %v1307_v32 = vld [vmem:[%s1465_s28] sm:$0xff]  ;;  %v447_v39 = vrot.slane %v445_v34, 1  ;;  %v1330_v44 = vld [vmem:[%s1640_s4 + $0xf0] sm:$0xff]  ;;  %v1314_v45 = vld [vmem:[%s1640_s4 + $0x88] sm:$0xff]  ;;  %v348_v49 = vpack.c.b16 %v347_v40, %v347_v40  ;;  %v364_v63 = vor.u32 %v362_v55, %v360_v28  ;;  %s1623_s28 = scalar_lea.vmem %s1642_s6, %s1290_s26 }
  0x16   : > { %684 = vmatpush.bf16.msra.mxu2 %v1298_v14  ;;  %v356_v37 = vor.u32 %v355_v27, %v351_v18  ;;  %v442_v38 = vrot.slane %v440_v30, 1  ;;  %v1333_v50 = vld [vmem:[%s1640_s4 + $0x108] sm:$0xff]  ;;  %v436_v52 = vpack.c.b16 %v435_v46, %v435_v46  ;;  %v1313_v53 = vld [vmem:[%s1640_s4 + $0x80] sm:$0xff]  ;;  %v1295_v54 = vld [vmem:[%s1640_s4 + $0x10] sm:$0xff] }
  0x17   : > { %v1329_v51 = vld [vmem:[%s1640_s4 + $0xe8] sm:$0xff]  ;;  %568 = vmatpush.bf16.msra.mxu0 %v1314_v45  ;;  %v366_v56 = vshll.u32 %v348_v49, 16  ;;  %v1332_v57 = vld [vmem:[%s1640_s4 + $0x100] sm:$0xff]  ;;  %v1312_v61 = vld [vmem:[%s1640_s4 + $0x78] sm:$0xff]  ;;  %v451_v1 = vor.u32 %v449_v59, %v447_v39 }
  0x18   : > { %708 = vmatpush.bf16.msra.mxu3 %v1301_v13  ;;  %v361_v42 = vsel %vm349_vm0, %v356_v37, %v360_v28  ;;  %v443_v43 = vor.u32 %v442_v38, %v438_v29  ;;  %430 = vrot.lane.b32.xlu0 %v1307_v32, %s1376_s15  ;;  %v1328_v58 = vld [vmem:[%s1640_s4 + $0xe0] sm:$0xff]  ;;  %v453_v60 = vshll.u32 %v436_v52, 16  ;;  %v1294_v62 = vld [vmem:[%s1640_s4 + $0x8] sm:$0xff]  ;;  %v1327_v3 = vld [vmem:[%s1640_s4 + $0xd8] sm:$0xff] }
  0x19   : > { %592 = vmatpush.bf16.msra.mxu1 %v1317_v21  ;;  %344 = vrot.lane.b32.xlu1 %v1292_v33, %s1376_s15  ;;  %v368_v0 = vrot.slane %v366_v56, 1  ;;  %v1311_v4 = vld [vmem:[%s1640_s4 + $0x70] sm:$0xff]  ;;  %v1293_v5 = vld [vmem:[%s1640_s4] sm:$0xff]  ;;  %v1325_v9 = vld [vmem:[%s1640_s4 + $0xc8] sm:$0xff] }
  0x1a   : > { %685 = vmatpush.bf16.msra.mxu2 %v1297_v26  ;;  %745 = vrot.lane.b32.xlu2 %v1322_v36, %s1376_s15  ;;  %v448_v48 = vsel %vm349_vm0, %v443_v43, %v447_v39  ;;  %v455_v2 = vrot.slane %v453_v60, 1  ;;  %v1326_v8 = vld [vmem:[%s1640_s4 + $0xd0] sm:$0xff]  ;;  %v1323_v12 = vld [vmem:[%s1452_s19 + $0x4] sm:$0xff] }
  0x1b   : > { %1200 = vmatmul.msk.bf16.vlgmr.msra.gmra.mxu3 %vm370_vm1, %v361_v42  ;;  %569 = vmatpush.bf16.msra.mxu0 %v1313_v53  ;;  %v369_v6 = vsel %vm349_vm0, %v364_v63, %v368_v0  ;;  %v720_v10 = vld [vmem:[%s1452_s19 + $0xc] sm:$0xff]   ;;  %v761_v13 = vshll.u32 %v1323_v12, 16  ;;  %v759_v14 = vshrl.u32 %v1323_v12, 16  ;;  %v1324_v26 = vld [vmem:[%s1640_s4 + $0xc0] sm:$0xff]  ;;  %v728_v28 = vld [vmem:[%s1452_s19 + $0x14] sm:$0x1] }
  0x1c   : > { %912 = vmatpush.bf16.msrb.mxu3 %v1335_v25  ;;  %1150 = vmatmul.msk.bf16.vlgmr.msra.gmra.mxu1 %vm370_vm1, %v448_v48  ;;  %v456_v7 = vsel %vm349_vm0, %v451_v1, %v455_v2  ;;  %v1363_v11 = vld [vmem:[%s1452_s19 + $0xc] sm:$0xf0]  ;;  %v766_v19 = vshll.u32 %v720_v10, 16  ;;  %v1310_v25 = vld [vmem:[%s1640_s4 + $0x68] sm:$0xff]  ;;  %v1309_v27 = vld [vmem:[%s1640_s4 + $0x60] sm:$0xff]  ;;  %v754_v29 = vunpack.c.l.b16 %v728_v28  ;;  %v770_v31 = vshrl.u32 %v720_v10, 16 }
  0x1d   : > { %889 = vmatpush.bf16.msrb.mxu1 %v1331_v24  ;;  %v763_v18 = vrot.slane %v761_v13, 1  ;;  %v1351_v36 = vld [vmem:[%s1452_s19 + $0x4] sm:$0xff]  }
  0x1e   : > { %686 = vmatpush.bf16.msra.mxu2 %v1296_v47  ;;  %v768_v21 = vrot.slane %v766_v19, 1  ;;  %v757_v30 = vpack.c.b16 %v754_v29, %v754_v29 }
  0x1f   : > { %570 = vmatpush.bf16.msra.mxu0 %v1312_v61  ;;  %v764_v20 = vor.u32 %v763_v18, %v759_v14 }
  0x20   : > { %913 = vmatpush.bf16.msrb.mxu3 %v1334_v41  ;;  %v774_v32 = vshll.u32 %v757_v30, 16  ;;  %v772_v33 = vor.u32 %v770_v31, %v768_v21 }
  0x21   : > { %890 = vmatpush.bf16.msrb.mxu1 %v1330_v44  ;;  %v769_v24 = vsel %vm349_vm0, %v764_v20, %v768_v21  ;;  %v1366_v44 = vor.u32 %v1491_v17, %v1363_v11 }
  0x22   : > { %687 = vmatpush.bf16.msra.mxu2 %v1295_v54  ;;  %v776_v34 = vrot.slane %v774_v32, 1 }
  0x23   : > { %571 = vmatpush.bf16.msra.mxu0 %v1311_v4 }
  0x24   : > { %914 = vmatpush.bf16.msrb.mxu3 %v1333_v50  ;;  %v777_v35 = vsel %vm349_vm0, %v772_v33, %v776_v34 }
  0x25   : > { %891 = vmatpush.bf16.msrb.mxu1 %v1329_v51 }
  0x26   : > { %688 = vmatpush.bf16.msra.mxu2 %v1294_v62 }
  0x27   : > { %572 = vmatpush.bf16.msra.mxu0 %v1310_v25 }
  0x28   : > { %915 = vmatpush.bf16.msrb.mxu3 %v1332_v57 }
  0x29   : > { %892 = vmatpush.bf16.msrb.mxu1 %v1328_v58 }
  0x2a   : > { %689 = vmatpush.bf16.msra.mxu2 %v1293_v5 }
  0x2b   : > { %1201 = vmatmul.msk.bf16.gmra.mxu3 %vm370_vm1, %v369_v6  ;;  %573 = vmatpush.bf16.msra.mxu0 %v1309_v27 }
  0x2c   : > { %1151 = vmatmul.msk.bf16.gmra.mxu1 %vm370_vm1, %v456_v7 }
  0x2d   : > { %893 = vmatpush.bf16.msrb.mxu1 %v1327_v3 }
  0x31   : > { %894 = vmatpush.bf16.msrb.mxu1 %v1326_v8 }
  0x35   : > { %895 = vmatpush.bf16.msrb.mxu1 %v1325_v9 }
  0x39   : > { %896 = vmatpush.bf16.msrb.mxu1 %v1324_v26 }
  0x3b   : > { %1286 = vmatmul.msk.bf16.vlgmr.msrb.gmra.mxu3 %vm370_vm1, %v769_v24 }
  0x4b   : > { %1287 = vmatmul.msk.bf16.gmra.mxu3 %vm370_vm1, %v777_v35 }
  0x6c   : > { %v433_v41 = vpop.permute.xlu2 %432 }
  0x74   : > { %v746_v46 = vpop.permute.xlu2 %745 }
  0x75   : > { %v784_v48 = vsel %vm370_vm1, %v1366_v44, %v746_v46 }
  0x82   : > { %v343_v37 = vpop.permute.xlu0 %342 }
  0x83   : > { %v744_v38 = vpop.permute.xlu1 %743  ;;  %v372_v39 = vsel %vm370_vm1, %v1485_v15, %v343_v37  ;;  %v461_v15 = vsel %vm370_vm1, %v1504_v23, %v433_v41  ;;  %v1362_v23 = vld [vmem:[%s1641_s5] ss:$0 sm:$0xff] }
  0x84   : > { %v780_v40 = vsel %vm370_vm1, %v1351_v36, %v744_v38  ;;  %690 = vmatmul.bf16.vlgmr.msra.gmra.mxu2 %v372_v39 }
  0x85   : > { %897 = vmatmul.bf16.vlgmr.msrb.gmra.mxu1 %v780_v40 }
  0x8a   : > { %v431_v42 = vpop.permute.xlu0 %430 }
  0x8b   : > { %v458_v43 = vsel %vm370_vm1, %v1501_v22, %v431_v42  ;;  %v345_v45 = vpop.permute.xlu1 %344 }
  0x8c   : > { %574 = vmatmul.bf16.vlgmr.msra.gmra.mxu0 %v458_v43  ;;  %v375_v47 = vsel %vm370_vm1, %v1488_v16, %v345_v45 }
  0x94   : > { %695 = vmatmul.bf16.gmra.mxu2 %v375_v47 }
  0x95   : > { %902 = vmatmul.bf16.gmra.mxu1 %v784_v48 }
  0x99   : > { %v594_v49 = vpop.f32.mrf.mxu1 }
  0x9c   : > { %579 = vmatmul.bf16.gmra.mxu0 %v461_v15 }
  0x9e   : > { %v710_v50 = vpop.f32.mrf.mxu3 }
  0xa1   : > { %v596_v51 = vpop.f32.mrf.mxu1 }
  0xa6   : > { %v712_v22 = vpop.f32.mrf.mxu3 }
  0xa9   : > { %v599_v52 = vpop.f32.mrf.mxu1 }
  0xae   : > { %v715_v53 = vpop.f32.mrf.mxu3 }
  0xb1   : > { %v601_v17 = vpop.f32.mrf.mxu1 }
  0xb6   : > { %v717_v54 = vpop.f32.mrf.mxu3 }
  0xbe   : > { %v917_v56 = vpop.f32.mrf.mxu3 }
  0xc6   : > { %v919_v63 = vpop.f32.mrf.mxu3 }
  0xce   : > { %v922_v12 = vpop.f32.mrf.mxu3 }
  0xd6   : > { %v924_v30 = vpop.f32.mrf.mxu3 }
 0x102   : > { %v898_v55 = vpop.f32.mrf.mxu1 }
 0x103   : > { %v918_v59 = vadd.f32 %v917_v56, %v898_v55 }
 0x107   : > { %v691_v16 = vpop.f32.mrf.mxu2 }
 0x109   : > { %v575_v57 = vpop.f32.mrf.mxu0 }
 0x10a   : > { %v595_v58 = vadd.f32 %v594_v49, %v575_v57  ;;  %v900_v62 = vpop.f32.mrf.mxu1 }
 0x10b   : > { %v920_v8 = vadd.f32 %v919_v63, %v900_v62 }
 0x10c   : > { %v692_v60 = vadd.f32 %v691_v16, %v595_v58 }
 0x10e   : > { %v711_v61 = vadd.f32 %v710_v50, %v692_v60 }
 0x10f   : > { %v693_v0 = vpop.f32.mrf.mxu2 }
 0x110   : > { %v927_v1 = vadd.f32 %v918_v59, %v711_v61 }
 0x111   : > { %v577_v2 = vpop.f32.mrf.mxu0 }
 0x112   : > { %v935_v3 = vadd.f32 %v1362_v23, %v927_v1  ;;  %v597_v4 = vadd.f32 %v596_v51, %v577_v2  ;;  %v903_v11 = vpop.f32.mrf.mxu1 }
 0x113   : > { %v923_v21 = vadd.f32 %v922_v12, %v903_v11 }
 0x114   : > { %v939_v5 = vmax.f32 %v935_v3, 0.0  ;;  %v694_v6 = vadd.f32 %v693_v0, %v597_v4 }
 0x116   : > { %v943_v7 = vpack.c.bf16 %v939_v5, %v939_v5  ;;  %v713_v9 = vadd.f32 %v712_v22, %v694_v6 }
 0x117   : > { %v696_v13 = vpop.f32.mrf.mxu2 }
 0x118   : > { %948 = vst.msk [vmem:[%s1623_s28] sm:$0xf] %vm947_vm2, %v943_v7  ;;  %v928_v10 = vadd.f32 %v920_v8, %v713_v9 }
 0x119   : > { %v580_v14 = vpop.f32.mrf.mxu0 }
 0x11a   : > { %v936_v18 = vadd.f32 %v1362_v23, %v928_v10  ;;  %v600_v19 = vadd.f32 %v599_v52, %v580_v14  ;;  %v905_v32 = vpop.f32.mrf.mxu1 }
 0x11b   : > { %v925_v37 = vadd.f32 %v924_v30, %v905_v32 }
 0x11c   : > { %v940_v20 = vmax.f32 %v936_v18, 0.0  ;;  %v697_v24 = vadd.f32 %v696_v13, %v600_v19 }
 0x11e   : > { %v944_v25 = vpack.c.bf16 %v940_v20, %v940_v20  ;;  %v716_v26 = vadd.f32 %v715_v53, %v697_v24 }
 0x11f   : > { %v698_v33 = vpop.f32.mrf.mxu2 }
 0x120   : > { %949 = vst.msk [vmem:[%s1623_s28 + $0x4] sm:$0xf] %vm947_vm2, %v944_v25  ;;  %v929_v27 = vadd.f32 %v923_v21, %v716_v26 }
 0x121   : > { %v582_v28 = vpop.f32.mrf.mxu0 }
 0x122   : > { %v937_v29 = vadd.f32 %v1362_v23, %v929_v27  ;;  %v602_v31 = vadd.f32 %v601_v17, %v582_v28 }
 0x124   : > { %v941_v34 = vmax.f32 %v937_v29, 0.0  ;;  %v699_v35 = vadd.f32 %v698_v33, %v602_v31 }
 0x126   : > { %v945_v36 = vpack.c.bf16 %v941_v34, %v941_v34  ;;  %v718_v38 = vadd.f32 %v717_v54, %v699_v35 }
 0x128   : > { %950 = vst.msk [vmem:[%s1623_s28 + $0x8] sm:$0xf] %vm947_vm2, %v945_v36  ;;  %v930_v39 = vadd.f32 %v925_v37, %v718_v38 }
 0x12a   : > { %v938_v40 = vadd.f32 %v1362_v23, %v930_v39 }
 0x12c   : > { %v942_v41 = vmax.f32 %v938_v40, 0.0 }
 0x12e   : > { %v946_v42 = vpack.c.bf16 %v942_v41, %v942_v41 }
 0x130   : > { %951 = vst.msk [vmem:[%s1623_s28 + $0xc] sm:$0xf] %vm947_vm2, %v946_v42 }
 0x131 PF: > { %s16_s21 = sadd.s32 1, %s1374_s21  }
 0x132   : > { %p13_p4 = scmp.ge.s32.totalorder %s16_s21, 4  }
 0x134   :  { %15 = sbr.rel (!%p13_p4) target bundleno = 1 (0x1), region = 85 }

// kernel: _lambda_.11
= control target key start
LH: loop header
LB: loop body
LE: loop exit
PB: predicated region body
PF: predicated region fallthrough
CT: control target
= control target key end

     0   :  { %s1148_s12 = smov 0   ;;  %s1396_s0 = inlined_call_operand.vmem [shape: bf16[2,56,64], index: 0, kind: input, shape index: {}]   ;;  %s1397_s1 = inlined_call_operand.vmem [shape: bf16[3,192,64], index: 1, kind: input, shape index: {}]   ;;  %s1398_s2 = inlined_call_operand.vmem [shape: f32[1,64], index: 2, kind: input, shape index: {}]   ;;  %s1399_s3 = inlined_call_operand.vmem [shape: bf16[2,32,64], index: 3, kind: output, shape index: {}]  }
   0x1 LB: > { %s841_s13 = sadd.s32 4294967295, %s1125_s12   ;;  %p845_p0 = scmp.ge.s32.totalorder %s1125_s12, 1  ;;  %s1125_s12 = sphi %s1148_s12, %s13_s12  }
   0x2   : > { %p137_p1 = scmp.lt.s32.totalorder %s1125_s12, 3 }
   0x4   : > { %p138_p2 = pnand %p845_p0, %p137_p1 }
   0x5   : > { %p161_p3 = scmp.lt.s32.totalorder (!%p138_p2), %s841_s13, 1  ;;  %s1127_s29 = smov (!%p138_p2), 64  }
   0x6   : > { %141 = sbr.rel (%p138_p2) target bundleno = 312 (0x138), region = 32 }
   0xb   : > { %v1061_v0 = vld [vmem:[%s1397_s1 + $0x58] sm:$0xff]  ;;  %s1401_s13 = smov (!%p161_p3, %s841_s13), 1  ;;  %v1060_v2 = vld [vmem:[%s1397_s1 + $0x50] sm:$0xff]  ;;  %v1059_v6 = vld [vmem:[%s1397_s1 + $0x48] sm:$0xff]  ;;  %vm191_vm0 = vsmask.f32 7424 }
   0xc   : > { %v1073_v1 = vld [vmem:[%s1397_s1 + $0xb8] sm:$0xff]  ;;  %546 = vmatpush.bf16.msra.mxu3 %v1061_v0  ;;  %v1072_v3 = vld [vmem:[%s1397_s1 + $0xb0] sm:$0xff]  ;;  %s1108_s24 = smul.u32 28, %s1401_s13  ;;  %v1071_v8 = vld [vmem:[%s1397_s1 + $0xa8] sm:$0xff]  ;;  %vm219_vm1 = vcmask 1046528   ;;  %vm225_vm2 = vcmask 523264  }
   0xd   : > { %430 = vmatpush.bf16.msra.mxu1 %v1073_v1  ;;  %v1057_v4 = vld [vmem:[%s1397_s1 + $0x38] sm:$0xff]  ;;  %v1056_v7 = vld [vmem:[%s1397_s1 + $0x30] sm:$0xff]  ;;  %v1055_v24 = vld [vmem:[%s1397_s1 + $0x28] sm:$0xff]  ;;  %s1049_s19 = sshll.u32 %s1401_s13, 4  ;;  %vm781_vm3 = vcmask 519168  }
   0xe   : > { %v1069_v5 = vld [vmem:[%s1397_s1 + $0x98] sm:$0xff]  ;;  %523 = vmatpush.bf16.msra.mxu2 %v1057_v4  ;;  %s1186_s6 = scalar_lea.vmem %s1396_s0, %s1108_s24  ;;  %v1068_v9 = vld [vmem:[%s1397_s1 + $0x90] sm:$0xff]  ;;  %v1058_v30 = vld [vmem:[%s1397_s1 + $0x40] sm:$0xff]  ;;  %s1383_s22 = scalar_lea.vmem %s1399_s3, %s1049_s19 }
   0xf   : > { %407 = vmatpush.bf16.msra.mxu0 %v1069_v5  ;;  %v1195_v10 = vld [vmem:[%s1186_s6] sm:$0xff]   ;;  %v1198_v11 = vld [vmem:[%s1186_s6 + $0x8] sm:$0xff]   ;;  %v1201_v12 = vld [vmem:[%s1186_s6 + $0x10] sm:$0xff]  }
  0x10   : > { %547 = vmatpush.bf16.msra.mxu3 %v1060_v2  ;;  %v193_v13 = vshrl.u32 %v1195_v10, 16  ;;  %v195_v14 = vshll.u32 %v1195_v10, 16  ;;  %v200_v15 = vshll.u32 %v1198_v11, 16  ;;  %v582_v16 = vshrl.u32 %v1198_v11, 16  ;;  %v1208_v17 = vld [vmem:[%s1186_s6 + $0x10] sm:$0xf] }
  0x11   : > { %431 = vmatpush.bf16.msra.mxu1 %v1072_v3  ;;  %v589_v18 = vshll.u32 %v1201_v12, 16  ;;  %v1089_v19 = vunpack.c.h.b16 %v1195_v10  ;;  %v1092_v20 = vunpack.c.l.b16 %v1198_v11  ;;  %v1093_v21 = vunpack.c.h.b16 %v1198_v11  ;;  %v176_v22 = vld [vmem:[%s1186_s6 + $0x10] sm:$0x1]  ;;  %v257_v23 = vld [vmem:[%s1186_s6 + $0x14] sm:$0x1]  ;;  %v1067_v35 = vld [vmem:[%s1397_s1 + $0x88] sm:$0xff] }
  0x12   : > { %524 = vmatpush.bf16.msra.mxu2 %v1056_v7  ;;  %v197_v25 = vrot.slane %v195_v14, 1  ;;  %v202_v26 = vrot.slane %v200_v15, 1  ;;  %v260_v27 = vunpack.c.l.b16 %v1208_v17  ;;  %v189_v28 = vunpack.c.l.b16 %v176_v22  ;;  %v565_v29 = vld [vmem:[%s1186_s6 + $0x18] sm:$0x1]  ;;  %v1070_v40 = vld [vmem:[%s1397_s1 + $0xa0] sm:$0xff]  ;;  %v1084_v61 = vld [vmem:[%s1397_s1 + $0x110] sm:$0xff] }
  0x13   : > { %408 = vmatpush.bf16.msra.mxu0 %v1068_v9  ;;  %v1224_v31 = vrot.slane %v589_v18, 1  ;;  %v1230_v32 = vpack.c.b16 %v1092_v20, %v1089_v19  ;;  %v264_v33 = vunpack.c.l.b16 %v257_v23  ;;  %v577_v34 = vunpack.c.l.b16 %v565_v29  ;;  %v1085_v41 = vld [vmem:[%s1397_s1 + $0x118] sm:$0xff]  ;;  %v177_v45 = vld [vmem:[%s1186_s6] sm:$0xe]  ;;  %v258_v60 = vld [vmem:[%s1186_s6 + $0x4] sm:$0xe] }
  0x14   : > { %548 = vmatpush.bf16.msra.mxu3 %v1059_v6  ;;  %v198_v36 = vor.u32 %v197_v25, %v193_v13  ;;  %v587_v37 = vor.u32 %v582_v16, %v202_v26  ;;  %v1237_v38 = vpack.c.b16 %v260_v27, %v1093_v21  ;;  %v1239_v39 = vpack.c.b16 %v189_v28, %v189_v28  ;;  %v1081_v46 = vld [vmem:[%s1397_s1 + $0xf8] sm:$0xff]  ;;  %v1054_v47 = vld [vmem:[%s1397_s1 + $0x20] sm:$0xff]  ;;  %v1080_v1 = vld [vmem:[%s1397_s1 + $0xf0] sm:$0xff] }
  0x15   : > { %432 = vmatpush.bf16.msra.mxu1 %v1071_v8  ;;  %v267_v42 = vshrl.u32 %v1230_v32, 16  ;;  %v269_v43 = vshll.u32 %v1230_v32, 16  ;;  %v1249_v44 = vpack.c.b16 %v264_v33, %v264_v33  ;;  %v1066_v52 = vld [vmem:[%s1397_s1 + $0x80] sm:$0xff]  ;;  %v1270_v56 = vpack.c.b16 %v577_v34, %v577_v34  ;;  %v1053_v6 = vld [vmem:[%s1397_s1 + $0x18] sm:$0xff]  ;;  %v1083_v21 = vld [vmem:[%s1397_s1 + $0x108] sm:$0xff] }
  0x16   : > { %525 = vmatpush.bf16.msra.mxu2 %v1055_v24  ;;  %v203_v48 = vsel %vm191_vm0, %v198_v36, %v202_v26  ;;  %v592_v49 = vsel %vm191_vm0, %v587_v37, %v1224_v31  ;;  %v274_v50 = vshll.u32 %v1237_v38, 16  ;;  %v208_v51 = vshll.u32 %v1239_v39, 16  ;;  %v1065_v7 = vld [vmem:[%s1397_s1 + $0x78] sm:$0xff]  ;;  %v1064_v26 = vld [vmem:[%s1397_s1 + $0x70] sm:$0xff]  ;;  %v1078_v29 = vld [vmem:[%s1397_s1 + $0xe0] sm:$0xff] }
  0x17   : > { %409 = vmatpush.bf16.msra.mxu0 %v1067_v35  ;;  %212 = vrot.lane.b32.xlu0 %v203_v48, %s1127_s29  ;;  %v271_v53 = vrot.slane %v269_v43, 1  ;;  %v278_v54 = vshrl.u32 %v1237_v38, 16  ;;  %v282_v55 = vshll.u32 %v1249_v44, 16  ;;  %v217_v59 = vunpack.c.l.b16 %v177_v45  ;;  %v1082_v33 = vld [vmem:[%s1397_s1 + $0x100] sm:$0xff]  ;;  %v1077_v34 = vld [vmem:[%s1397_s1 + $0xd8] sm:$0xff] }
  0x18   : > { %549 = vmatpush.bf16.msra.mxu3 %v1058_v30  ;;  %601 = vrot.lane.b32.xlu1 %v592_v49, %s1127_s29  ;;  %v276_v57 = vrot.slane %v274_v50, 1  ;;  %v210_v58 = vrot.slane %v208_v51, 1  ;;  %v593_v0 = vshrl.u32 %v1201_v12, 16  ;;  %v597_v3 = vshll.u32 %v1270_v56, 16  ;;  %v1050_v35 = vld [vmem:[%s1397_s1] sm:$0xff]  ;;  %v1063_v49 = vld [vmem:[%s1397_s1 + $0x68] sm:$0xff] }
  0x19   : > { %433 = vmatpush.bf16.msra.mxu1 %v1070_v40  ;;  %v272_v62 = vor.u32 %v271_v53, %v267_v42  ;;  %v284_v63 = vrot.slane %v282_v55, 1  ;;  %v218_v4 = vpack.c.b16 %v1089_v19, %v217_v59  ;;  %v221_v5 = vrot.slane %v1198_v11, 1  ;;  %v1079_v19 = vld [vmem:[%s1397_s1 + $0xe8] sm:$0xff]  ;;  %v1074_v50 = vld [vmem:[%s1397_s1 + $0xc0] sm:$0xff] }
  0x1a   : > { %526 = vmatpush.bf16.msra.mxu2 %v1054_v47  ;;  %v280_v2 = vor.u32 %v278_v54, %v276_v57  ;;  %v291_v8 = vunpack.c.l.b16 %v258_v60  ;;  %v211_v13 = vsel %vm191_vm0, %v587_v37, %v210_v58  ;;  %v294_v18 = vrot.slane %v1237_v38, 1  ;;  %v1076_v37 = vld [vmem:[%s1397_s1 + $0xd0] sm:$0xff]  ;;  %v1075_v42 = vld [vmem:[%s1397_s1 + $0xc8] sm:$0xff]  ;;  %v1062_v51 = vld [vmem:[%s1397_s1 + $0x60] sm:$0xff] }
  0x1b   : > { %410 = vmatpush.bf16.msra.mxu0 %v1066_v52  ;;  %v277_v9 = vsel %vm191_vm0, %v272_v62, %v276_v57  ;;  %v220_v15 = vrot.slane %v218_v4, 1  ;;  %v595_v22 = vor.u32 %v593_v0, %v1224_v31  ;;  %v599_v23 = vrot.slane %v597_v3, 1  ;;  %v1051_v31 = vld [vmem:[%s1397_s1 + $0x8] sm:$0xff] }
  0x1c   : > { %746 = vmatpush.bf16.msrb.mxu3 %v1085_v41  ;;  %v285_v14 = vsel %vm191_vm0, %v280_v2, %v284_v63  ;;  %v292_v16 = vpack.c.b16 %v1092_v20, %v291_v8  ;;  %v1052_v20 = vld [vmem:[%s1397_s1 + $0x10] sm:$0xff]  ;;  %v223_v36 = vrot.slane %v1239_v39, 1  ;;  %v296_v40 = vrot.slane %v1249_v44, 1  ;;  %v1105_v39 = vld [vmem:[%s1186_s6 + $0x8] sm:$0xf0] }
  0x1d   : > { %723 = vmatpush.bf16.msrb.mxu1 %v1081_v46  ;;  %288 = vrot.lane.b32.xlu2 %v285_v14, %s1127_s29  ;;  %v222_v24 = vsel %vm219_vm1, %v220_v15, %v221_v5  ;;  %v600_v30 = vsel %vm191_vm0, %v595_v22, %v599_v23  ;;  %v1106_v45 = vld [vmem:[%s1186_s6 + $0x8] sm:$0xe]  ;;  %v609_v44 = vrot.slane %v1201_v12, 1  ;;  %v611_v52 = vrot.slane %v1270_v56, 1 }
  0x1e   : > { %527 = vmatpush.bf16.msra.mxu2 %v1053_v6  ;;  %v293_v25 = vrot.slane %v292_v16, 1  ;;  %971 = vmatmul.msk.bf16.vlgmr.msra.gmra.mxu3 %vm225_vm2, %v222_v24  ;;  %v224_v41 = vsel %vm219_vm1, %v221_v5, %v223_v36  ;;  %v297_v43 = vsel %vm219_vm1, %v294_v18, %v296_v40  ;;  %v1107_v46 = vor.u32 %v1106_v45, %v1105_v39 }
  0x1f   : > { %411 = vmatpush.bf16.msra.mxu0 %v1065_v7  ;;  %286 = vrot.lane.b32.xlu0 %v277_v9, %s1127_s29  ;;  %v612_v53 = vsel %vm219_vm1, %v609_v44, %v611_v52  ;;  %v1101_v60 = vunpack.c.h.b16 %v1201_v12 }
  0x20   : > { %747 = vmatpush.bf16.msrb.mxu3 %v1084_v61  ;;  %214 = vrot.lane.b32.xlu1 %v211_v13, %s1127_s29  ;;  %v295_v28 = vsel %vm219_vm1, %v293_v25, %v294_v18  ;;  %v608_v47 = vrot.slane %v1107_v46, 1 }
  0x21   : > { %724 = vmatpush.bf16.msrb.mxu1 %v1080_v1  ;;  %v569_v62 = vpack.c.b16 %v1101_v60, %v260_v27 }
  0x22   : > { %921 = vmatmul.msk.bf16.vlgmr.msra.gmra.mxu1 %vm225_vm2, %v295_v28  ;;  %528 = vmatpush.bf16.msra.mxu2 %v1052_v20  ;;  %v610_v48 = vsel %vm219_vm1, %v608_v47, %v609_v44 }
  0x23   : > { %412 = vmatpush.bf16.msra.mxu0 %v1064_v26 }
  0x24   : > { %748 = vmatpush.bf16.msrb.mxu3 %v1083_v21 }
  0x25   : > { %725 = vmatpush.bf16.msrb.mxu1 %v1079_v19  ;;  %603 = vrot.lane.b32.xlu2 %v600_v30, %s1127_s29 }
  0x26   : > { %529 = vmatpush.bf16.msra.mxu2 %v1051_v31 }
  0x27   : > { %413 = vmatpush.bf16.msra.mxu0 %v1063_v49 }
  0x28   : > { %749 = vmatpush.bf16.msrb.mxu3 %v1082_v33 }
  0x29   : > { %726 = vmatpush.bf16.msrb.mxu1 %v1078_v29 }
  0x2a   : > { %530 = vmatpush.bf16.msra.mxu2 %v1050_v35 }
  0x2b   : > { %414 = vmatpush.bf16.msra.mxu0 %v1062_v51 }
  0x2d   : > { %727 = vmatpush.bf16.msrb.mxu1 %v1077_v34 }
  0x2e   : > { %972 = vmatmul.msk.bf16.gmra.mxu3 %vm225_vm2, %v224_v41 }
  0x31   : > { %728 = vmatpush.bf16.msrb.mxu1 %v1076_v37 }
  0x32   : > { %922 = vmatmul.msk.bf16.gmra.mxu1 %vm225_vm2, %v297_v43 }
  0x35   : > { %729 = vmatpush.bf16.msrb.mxu1 %v1075_v42 }
  0x39   : > { %730 = vmatpush.bf16.msrb.mxu1 %v1074_v50 }
  0x3e   : > { %1045 = vmatmul.msk.bf16.vlgmr.msrb.gmra.mxu3 %vm225_vm2, %v610_v48 }
  0x4e   : > { %1046 = vmatmul.msk.bf16.gmra.mxu3 %vm225_vm2, %v612_v53 }
  0x77   : > { %v289_v59 = vpop.permute.xlu2 %288 }
  0x78   : > { %v302_v12 = vsel %vm225_vm2, %v1237_v38, %v289_v59  ;;  %v1118_v38 = vld [vmem:[%s1398_s2] ss:$0 sm:$0xff] }
  0x7f   : > { %v604_v0 = vpop.permute.xlu2 %603 }
  0x80   : > { %v618_v1 = vsel %vm225_vm2, %v569_v62, %v604_v0 }
  0x89   : > { %v213_v54 = vpop.permute.xlu0 %212 }
  0x8a   : > { %v602_v55 = vpop.permute.xlu1 %601  ;;  %v227_v57 = vsel %vm225_vm2, %v1195_v10, %v213_v54 }
  0x8b   : > { %v614_v58 = vsel %vm225_vm2, %v1198_v11, %v602_v55  ;;  %531 = vmatmul.bf16.vlgmr.msra.gmra.mxu2 %v227_v57 }
  0x8c   : > { %731 = vmatmul.bf16.vlgmr.msrb.gmra.mxu1 %v614_v58 }
  0x91   : > { %v287_v61 = vpop.permute.xlu0 %286 }
  0x92   : > { %v299_v56 = vsel %vm225_vm2, %v1230_v32, %v287_v61  ;;  %v215_v63 = vpop.permute.xlu1 %214 }
  0x93   : > { %415 = vmatmul.bf16.vlgmr.msra.gmra.mxu0 %v299_v56  ;;  %v230_v10 = vsel %vm225_vm2, %v1198_v11, %v215_v63 }
  0x9b   : > { %536 = vmatmul.bf16.gmra.mxu2 %v230_v10 }
  0x9c   : > { %736 = vmatmul.bf16.gmra.mxu1 %v618_v1 }
  0x9f   : > { %v435_v2 = vpop.f32.mrf.mxu1 }
  0xa1   : > { %v551_v3 = vpop.f32.mrf.mxu3 }
  0xa3   : > { %420 = vmatmul.bf16.gmra.mxu0 %v302_v12 }
  0xa7   : > { %v437_v32 = vpop.f32.mrf.mxu1 }
  0xa9   : > { %v553_v4 = vpop.f32.mrf.mxu3 }
  0xaf   : > { %v440_v5 = vpop.f32.mrf.mxu1 }
  0xb1   : > { %v556_v17 = vpop.f32.mrf.mxu3 }
  0xb7   : > { %v442_v27 = vpop.f32.mrf.mxu1 }
  0xb9   : > { %v558_v6 = vpop.f32.mrf.mxu3 }
  0xc1   : > { %v751_v8 = vpop.f32.mrf.mxu3 }
  0xc9   : > { %v753_v19 = vpop.f32.mrf.mxu3 }
  0xd1   : > { %v756_v34 = vpop.f32.mrf.mxu3 }
  0xd9   : > { %v758_v48 = vpop.f32.mrf.mxu3 }
 0x109   : > { %v732_v7 = vpop.f32.mrf.mxu1 }
 0x10a   : > { %v752_v14 = vadd.f32 %v751_v8, %v732_v7 }
 0x10e   : > { %v532_v11 = vpop.f32.mrf.mxu2 }
 0x110   : > { %v416_v9 = vpop.f32.mrf.mxu0 }
 0x111   : > { %v436_v13 = vadd.f32 %v435_v2, %v416_v9  ;;  %v734_v18 = vpop.f32.mrf.mxu1 }
 0x112   : > { %v754_v29 = vadd.f32 %v753_v19, %v734_v18 }
 0x113   : > { %v533_v15 = vadd.f32 %v532_v11, %v436_v13 }
 0x115   : > { %v552_v16 = vadd.f32 %v551_v3, %v533_v15 }
 0x116   : > { %v534_v21 = vpop.f32.mrf.mxu2 }
 0x117   : > { %v761_v22 = vadd.f32 %v752_v14, %v552_v16 }
 0x118   : > { %v418_v23 = vpop.f32.mrf.mxu0 }
 0x119   : > { %v769_v24 = vadd.f32 %v1118_v38, %v761_v22  ;;  %v438_v20 = vadd.f32 %v437_v32, %v418_v23  ;;  %v737_v33 = vpop.f32.mrf.mxu1 }
 0x11a   : > { %v757_v42 = vadd.f32 %v756_v34, %v737_v33 }
 0x11b   : > { %v773_v25 = vmax.f32 %v769_v24, 0.0  ;;  %v535_v26 = vadd.f32 %v534_v21, %v438_v20 }
 0x11d   : > { %v777_v28 = vpack.c.bf16 %v773_v25, %v773_v25  ;;  %v554_v30 = vadd.f32 %v553_v4, %v535_v26 }
 0x11e   : > { %v537_v35 = vpop.f32.mrf.mxu2 }
 0x11f   : > { %782 = vst.msk [vmem:[%s1383_s22] sm:$0xf] %vm781_vm3, %v777_v28  ;;  %v762_v31 = vadd.f32 %v754_v29, %v554_v30 }
 0x120   : > { %v421_v36 = vpop.f32.mrf.mxu0 }
 0x121   : > { %v770_v37 = vadd.f32 %v1118_v38, %v762_v31  ;;  %v441_v40 = vadd.f32 %v440_v5, %v421_v36  ;;  %v739_v50 = vpop.f32.mrf.mxu1 }
 0x122   : > { %v759_v55 = vadd.f32 %v758_v48, %v739_v50 }
 0x123   : > { %v774_v41 = vmax.f32 %v770_v37, 0.0  ;;  %v538_v43 = vadd.f32 %v537_v35, %v441_v40 }
 0x125   : > { %v778_v39 = vpack.c.bf16 %v774_v41, %v774_v41  ;;  %v557_v45 = vadd.f32 %v556_v17, %v538_v43 }
 0x126   : > { %v539_v51 = vpop.f32.mrf.mxu2 }
 0x127   : > { %783 = vst.msk [vmem:[%s1383_s22 + $0x4] sm:$0xf] %vm781_vm3, %v778_v39  ;;  %v763_v46 = vadd.f32 %v757_v42, %v557_v45 }
 0x128   : > { %v423_v47 = vpop.f32.mrf.mxu0 }
 0x129   : > { %v771_v44 = vadd.f32 %v1118_v38, %v763_v46  ;;  %v443_v49 = vadd.f32 %v442_v27, %v423_v47 }
 0x12b   : > { %v775_v52 = vmax.f32 %v771_v44, 0.0  ;;  %v540_v53 = vadd.f32 %v539_v51, %v443_v49 }
 0x12d   : > { %v779_v54 = vpack.c.bf16 %v775_v52, %v775_v52  ;;  %v559_v57 = vadd.f32 %v558_v6, %v540_v53 }
 0x12f   : > { %784 = vst.msk [vmem:[%s1383_s22 + $0x8] sm:$0xf] %vm781_vm3, %v779_v54  ;;  %v764_v58 = vadd.f32 %v759_v55, %v559_v57 }
 0x131   : > { %v772_v59 = vadd.f32 %v1118_v38, %v764_v58 }
 0x133   : > { %v776_v60 = vmax.f32 %v772_v59, 0.0 }
 0x135   : > { %v780_v61 = vpack.c.bf16 %v776_v60, %v776_v60 }
 0x137   : > { %785 = vst.msk [vmem:[%s1383_s22 + $0xc] sm:$0xf] %vm781_vm3, %v780_v61 }
 0x138 PF: > { %s13_s12 = sadd.s32 1, %s1125_s12  }
 0x139   : > { %p10_p4 = scmp.ge.s32.totalorder %s13_s12, 4  }
 0x13b   :  { %12 = sbr.rel (!%p10_p4) target bundleno = 1 (0x1), region = 64 }

// kernel: _lambda_.13
= control target key start
LH: loop header
LB: loop body
LE: loop exit
PB: predicated region body
PF: predicated region fallthrough
CT: control target
= control target key end

     0   :  { %s1251_s21 = smov 0   ;;  %s1431_s0 = inlined_call_operand.vmem [shape: bf16[2,32,64], index: 0, kind: input, shape index: {}]   ;;  %s1432_s1 = inlined_call_operand.vmem [shape: bf16[2,32,64], index: 1, kind: input, shape index: {}]   ;;  %s1433_s2 = inlined_call_operand.vmem [shape: bf16[2,32,64], index: 2, kind: input, shape index: {}]   ;;  %s1434_s3 = inlined_call_operand.vmem [shape: bf16[2,32,64], index: 3, kind: input, shape index: {}]   ;;  %s1435_s4 = inlined_call_operand.vmem [shape: bf16[3,192,128], index: 4, kind: input, shape index: {}]   ;;  %s1436_s5 = inlined_call_operand.vmem [shape: f32[1,128], index: 5, kind: input, shape index: {}]   ;;  %s1437_s6 = inlined_call_operand.vmem [shape: bf16[2,16,128], index: 6, kind: output, shape index: {}]  }
   0x1 LB: > { %s910_s22 = sadd.s32 4294967295, %s1213_s21   ;;  %p914_p0 = scmp.ge.s32.totalorder %s1213_s21, 1  ;;  %s1213_s21 = sphi %s1251_s21, %s16_s21  }
   0x2   : > { %p242_p1 = scmp.lt.s32.totalorder %s1213_s21, 3 }
   0x4   : > { %p243_p2 = pnand %p914_p0, %p242_p1 }
   0x5   : > { %p287_p3 = scmp.lt.s32.totalorder (!%p243_p2), %s910_s22, 1  ;;  %s1215_s9 = smov (!%p243_p2), 64  }
   0x6   : > { %246 = sbr.rel (%p243_p2) target bundleno = 288 (0x120), region = 44 }
   0xb   : > { %v1169_v0 = vld [vmem:[%s1435_s4 + $0xb8] sm:$0xff]  ;;  %s1439_s22 = smov (!%p287_p3, %s910_s22), 1  ;;  %v1168_v3 = vld [vmem:[%s1435_s4 + $0xb0] sm:$0xff]  ;;  %v1167_v7 = vld [vmem:[%s1435_s4 + $0xa8] sm:$0xff]  ;;  %vm333_vm0 = vsmask.f32 7424 }
   0xc   : > { %v1155_v1 = vld [vmem:[%s1435_s4 + $0x58] sm:$0xff]  ;;  %527 = vmatpush.bf16.msra.mxu1 %v1169_v0  ;;  %v1154_v4 = vld [vmem:[%s1435_s4 + $0x50] sm:$0xff]  ;;  %s1283_s13 = sshll.u32 %s1439_s22, 4  ;;  %v1153_v11 = vld [vmem:[%s1435_s4 + $0x48] sm:$0xff]  ;;  %vm346_vm1 = vcmask 523264   ;;  %s1142_s24 = sshll.u32 %s1439_s22, 3 }
   0xd   : > { %v1151_v2 = vld [vmem:[%s1435_s4 + $0x38] sm:$0xff]  ;;  %630 = vmatpush.bf16.msra.mxu3 %v1155_v1  ;;  %v1150_v5 = vld [vmem:[%s1435_s4 + $0x30] sm:$0xff]  ;;  %s296_s16 = scalar_lea.vmem %s1432_s1, %s1283_s13  ;;  %s1302_s27 = scalar_lea.vmem %s1431_s0, %s1283_s13  ;;  %v1149_v12 = vld [vmem:[%s1435_s4 + $0x28] sm:$0xff] }
   0xe   : > { %612 = vmatpush.bf16.msra.mxu2 %v1151_v2  ;;  %v1165_v6 = vld [vmem:[%s1435_s4 + $0x98] sm:$0xff]  ;;  %v1164_v8 = vld [vmem:[%s1435_s4 + $0x90] sm:$0xff]  ;;  %v1143_v9 = vld [vmem:[%s296_s16] sm:$0xff]  ;;  %s301_s30 = scalar_lea.vmem %s1433_s2, %s1283_s13  ;;  %s306_s12 = scalar_lea.vmem %s1434_s3, %s1283_s13 }
   0xf   : > { %509 = vmatpush.bf16.msra.mxu0 %v1165_v6  ;;  %v1170_v10 = vld [vmem:[%s296_s16 + $0x4] sm:$0xff]  ;;  %328 = vrot.lane.b32.xlu0 %v1143_v9, %s1215_s9  ;;  %v1178_v27 = vld [vmem:[%s1435_s4 + $0xf8] sm:$0xff]  ;;  %v1177_v40 = vld [vmem:[%s1435_s4 + $0xf0] sm:$0xff]  ;;  %s311_s28 = scalar_lea.vmem %s1437_s6, %s1142_s24 }
  0x10   : > { %528 = vmatpush.bf16.msra.mxu1 %v1168_v3  ;;  %v1312_v13 = vld [vmem:[%s1302_s27] sm:$0xff]   ;;  %v317_v15 = vld [vmem:[%s1302_s27 + $0x8] sm:$0x1]  ;;  %653 = vrot.lane.b32.xlu1 %v1170_v10, %s1215_s9  ;;  %v1182_v34 = vld [vmem:[%s1435_s4 + $0x118] sm:$0xff] }
  0x11   : > { %631 = vmatpush.bf16.msra.mxu3 %v1154_v4  ;;  %v1315_v14 = vld [vmem:[%s1302_s27 + $0x4] sm:$0xf]  ;;  %v331_v16 = vunpack.c.l.b16 %v317_v15  ;;  %v335_v17 = vshrl.u32 %v1312_v13, 16  ;;  %v337_v18 = vshll.u32 %v1312_v13, 16  ;;  %v1163_v19 = vld [vmem:[%s1435_s4 + $0x88] sm:$0xff]  ;;  %v1147_v41 = vld [vmem:[%s1435_s4 + $0x18] sm:$0xff] }
  0x12   : > { %613 = vmatpush.bf16.msra.mxu2 %v1150_v5  ;;  %v1329_v20 = vld [vmem:[%s301_s30] sm:$0xff]  ;;  %v378_v21 = vld [vmem:[%s301_s30 + $0x8] sm:$0x1]  ;;  %v1181_v44 = vld [vmem:[%s1435_s4 + $0x110] sm:$0xff] }
  0x13   : > { %510 = vmatpush.bf16.msra.mxu0 %v1164_v8  ;;  %v1166_v22 = vld [vmem:[%s1435_s4 + $0xa0] sm:$0xff]  ;;  %v332_v24 = vpack.c.b16 %v331_v16, %v331_v16  ;;  %v339_v25 = vrot.slane %v337_v18, 1  ;;  %v392_v26 = vunpack.c.l.b16 %v378_v21  ;;  %v395_v29 = vshrl.u32 %v1329_v20, 16  ;;  %v1161_v46 = vld [vmem:[%s1435_s4 + $0x78] sm:$0xff]  ;;  %v1176_v48 = vld [vmem:[%s1435_s4 + $0xe8] sm:$0xff] }
  0x14   : > { %529 = vmatpush.bf16.msra.mxu1 %v1167_v7  ;;  %v1152_v23 = vld [vmem:[%s1435_s4 + $0x40] sm:$0xff]  ;;  %v397_v30 = vshll.u32 %v1329_v20, 16  ;;  %v1146_v49 = vld [vmem:[%s1435_s4 + $0x10] sm:$0xff]  ;;  %v1180_v50 = vld [vmem:[%s1435_s4 + $0x108] sm:$0xff] }
  0x15   : > { %632 = vmatpush.bf16.msra.mxu3 %v1153_v11  ;;  %v1148_v28 = vld [vmem:[%s1435_s4 + $0x20] sm:$0xff]  ;;  %v340_v32 = vor.u32 %v339_v25, %v335_v17  ;;  %v342_v33 = vshll.u32 %v332_v24, 16  ;;  %v393_v35 = vpack.c.b16 %v392_v26, %v392_v26  ;;  %v1160_v51 = vld [vmem:[%s1435_s4 + $0x70] sm:$0xff]  ;;  %v1145_v53 = vld [vmem:[%s1435_s4 + $0x8] sm:$0xff] }
  0x16   : > { %614 = vmatpush.bf16.msra.mxu2 %v1149_v12  ;;  %v1157_v31 = vld [vmem:[%s306_s12] sm:$0xff]  ;;  %v399_v36 = vrot.slane %v397_v30, 1  ;;  %v1174_v55 = vld [vmem:[%s1435_s4 + $0xd8] sm:$0xff]  ;;  %v1173_v57 = vld [vmem:[%s1435_s4 + $0xd0] sm:$0xff] }
  0x17   : > { %511 = vmatpush.bf16.msra.mxu0 %v1163_v19  ;;  %v1162_v37 = vld [vmem:[%s1435_s4 + $0x80] sm:$0xff]  ;;  %v344_v38 = vrot.slane %v342_v33, 1  ;;  %v402_v39 = vshll.u32 %v393_v35, 16  ;;  %389 = vrot.lane.b32.xlu0 %v1157_v31, %s1215_s9  ;;  %v1172_v58 = vld [vmem:[%s1435_s4 + $0xc8] sm:$0xff] }
  0x18   : > { %530 = vmatpush.bf16.msra.mxu1 %v1166_v22  ;;  %v400_v42 = vor.u32 %v399_v36, %v395_v29  ;;  %v1175_v52 = vld [vmem:[%s1435_s4 + $0xe0] sm:$0xff]  ;;  %v1202_v60 = vld [vmem:[%s1302_s27 + $0x4] sm:$0xf0]  ;;  %v644_v61 = vld [vmem:[%s1302_s27 + $0xc] sm:$0x1] }
  0x19   : > { %633 = vmatpush.bf16.msra.mxu3 %v1152_v23  ;;  %v345_v43 = vsel %vm333_vm0, %v340_v32, %v344_v38  ;;  %v404_v45 = vrot.slane %v402_v39, 1  ;;  %v1179_v54 = vld [vmem:[%s1435_s4 + $0x100] sm:$0xff]  ;;  %v658_v62 = vunpack.c.l.b16 %v644_v61  ;;  %v1159_v7 = vld [vmem:[%s1435_s4 + $0x68] sm:$0xff]  ;;  %v1205_v10 = vor.u32 %v1315_v14, %v1202_v60 }
  0x1a   : > { %615 = vmatpush.bf16.msra.mxu2 %v1148_v28  ;;  %v1144_v56 = vld [vmem:[%s1435_s4] sm:$0xff] }
  0x1b   : > { %512 = vmatpush.bf16.msra.mxu0 %v1162_v37  ;;  %v405_v47 = vsel %vm333_vm0, %v400_v42, %v404_v45  ;;  %v640_v59 = vld [vmem:[%s1302_s27 + $0x4] sm:$0xff]   ;;  %v660_v63 = vpack.c.b16 %v658_v62, %v658_v62  ;;  %v1201_v35 = vld [vmem:[%s1436_s5] ss:$0 sm:$0xff] }
  0x1c   : > { %777 = vmatpush.bf16.msrb.mxu1 %v1178_v27  ;;  %1058 = vmatmul.msk.bf16.vlgmr.msra.gmra.mxu3 %vm346_vm1, %v345_v43  ;;  %v664_v0 = vshll.u32 %v640_v59, 16  ;;  %v662_v1 = vshrl.u32 %v640_v59, 16  ;;  %v1171_v8 = vld [vmem:[%s1435_s4 + $0xc0] sm:$0xff] }
  0x1d   : > { %795 = vmatpush.bf16.msrb.mxu3 %v1182_v34  ;;  %1009 = vmatmul.msk.bf16.vlgmr.msra.gmra.mxu1 %vm346_vm1, %v405_v47  ;;  %v669_v3 = vshll.u32 %v660_v63, 16  ;;  %v1158_v9 = vld [vmem:[%s1435_s4 + $0x60] sm:$0xff] }
  0x1e   : > { %616 = vmatpush.bf16.msra.mxu2 %v1147_v41  ;;  %v666_v2 = vrot.slane %v664_v0, 1 }
  0x1f   : > { %513 = vmatpush.bf16.msra.mxu0 %v1161_v46  ;;  %v671_v5 = vrot.slane %v669_v3, 1 }
  0x20   : > { %778 = vmatpush.bf16.msrb.mxu1 %v1177_v40  ;;  %v667_v4 = vor.u32 %v666_v2, %v662_v1 }
  0x21   : > { %796 = vmatpush.bf16.msrb.mxu3 %v1181_v44 }
  0x22   : > { %617 = vmatpush.bf16.msra.mxu2 %v1146_v49  ;;  %v672_v6 = vsel %vm333_vm0, %v667_v4, %v671_v5 }
  0x23   : > { %514 = vmatpush.bf16.msra.mxu0 %v1160_v51 }
  0x24   : > { %779 = vmatpush.bf16.msrb.mxu1 %v1176_v48 }
  0x25   : > { %797 = vmatpush.bf16.msrb.mxu3 %v1180_v50 }
  0x26   : > { %618 = vmatpush.bf16.msra.mxu2 %v1145_v53 }
  0x27   : > { %515 = vmatpush.bf16.msra.mxu0 %v1159_v7 }
  0x28   : > { %780 = vmatpush.bf16.msrb.mxu1 %v1175_v52 }
  0x29   : > { %798 = vmatpush.bf16.msrb.mxu3 %v1179_v54 }
  0x2a   : > { %619 = vmatpush.bf16.msra.mxu2 %v1144_v56 }
  0x2b   : > { %516 = vmatpush.bf16.msra.mxu0 %v1158_v9 }
  0x2c   : > { %781 = vmatpush.bf16.msrb.mxu1 %v1174_v55  ;;  %1135 = vmatmul.msk.bf16.vlgmr.msrb.gmra.mxu3 %vm346_vm1, %v672_v6 }
  0x30   : > { %782 = vmatpush.bf16.msrb.mxu1 %v1173_v57 }
  0x34   : > { %783 = vmatpush.bf16.msrb.mxu1 %v1172_v58 }
  0x38   : > { %784 = vmatpush.bf16.msrb.mxu1 %v1171_v8 }
  0x81   : > { %v329_v11 = vpop.permute.xlu0 %328 }
  0x82   : > { %v654_v12 = vpop.permute.xlu1 %653  ;;  %v348_v15 = vsel %vm346_vm1, %v1312_v13, %v329_v11 }
  0x83   : > { %v675_v16 = vsel %vm346_vm1, %v1205_v10, %v654_v12  ;;  %620 = vmatmul.bf16.vlgmr.msra.gmra.mxu2 %v348_v15 }
  0x84   : > { %785 = vmatmul.bf16.vlgmr.msrb.gmra.mxu1 %v675_v16 }
  0x89   : > { %v390_v17 = vpop.permute.xlu0 %389 }
  0x8a   : > { %v407_v18 = vsel %vm346_vm1, %v1329_v20, %v390_v17 }
  0x8b   : > { %517 = vmatmul.bf16.vlgmr.msra.gmra.mxu0 %v407_v18 }
  0x9a   : > { %v532_v19 = vpop.f32.mrf.mxu1 }
  0x9f   : > { %v635_v21 = vpop.f32.mrf.mxu3 }
  0xa2   : > { %v534_v22 = vpop.f32.mrf.mxu1 }
  0xa7   : > { %v637_v23 = vpop.f32.mrf.mxu3 }
  0xaf   : > { %v800_v14 = vpop.f32.mrf.mxu3 }
  0xb7   : > { %v802_v31 = vpop.f32.mrf.mxu3 }
 0x101   : > { %v786_v24 = vpop.f32.mrf.mxu1 }
 0x102   : > { %v801_v28 = vadd.f32 %v800_v14, %v786_v24 }
 0x106   : > { %v621_v25 = vpop.f32.mrf.mxu2 }
 0x108   : > { %v518_v26 = vpop.f32.mrf.mxu0 }
 0x109   : > { %v533_v27 = vadd.f32 %v532_v19, %v518_v26  ;;  %v788_v33 = vpop.f32.mrf.mxu1 }
 0x10a   : > { %v803_v37 = vadd.f32 %v802_v31, %v788_v33 }
 0x10b   : > { %v622_v13 = vadd.f32 %v621_v25, %v533_v27 }
 0x10d   : > { %v636_v29 = vadd.f32 %v635_v21, %v622_v13 }
 0x10e   : > { %v623_v34 = vpop.f32.mrf.mxu2 }
 0x10f   : > { %v805_v20 = vadd.f32 %v801_v28, %v636_v29 }
 0x110   : > { %v520_v30 = vpop.f32.mrf.mxu0 }
 0x111   : > { %v535_v32 = vadd.f32 %v534_v22, %v520_v30  ;;  %v811_v39 = vadd.f32 %v1201_v35, %v805_v20 }
 0x113   : > { %v624_v36 = vadd.f32 %v623_v34, %v535_v32  ;;  %v813_v42 = vmax.f32 %v811_v39, 0.0 }
 0x115   : > { %v638_v38 = vadd.f32 %v637_v23, %v624_v36 }
 0x117   : > { %v806_v40 = vadd.f32 %v803_v37, %v638_v38 }
 0x119   : > { %v812_v41 = vadd.f32 %v1201_v35, %v806_v40 }
 0x11b   : > { %v814_v43 = vmax.f32 %v812_v41, 0.0 }
 0x11d   : > { %v1190_v44 = vpack.c.bf16 %v814_v43, %v813_v42 }
 0x11f   : > { %1191 = vst [vmem:[%s311_s28] sm:$0xff] %v1190_v44  }
 0x120 PF: > { %s16_s21 = sadd.s32 1, %s1213_s21  }
 0x121   : > { %p13_p4 = scmp.ge.s32.totalorder %s16_s21, 4  }
 0x123   :  { %15 = sbr.rel (!%p13_p4) target bundleno = 1 (0x1), region = 85 }

// kernel: _lambda_.15
= control target key start
LH: loop header
LB: loop body
LE: loop exit
PB: predicated region body
PF: predicated region fallthrough
CT: control target
= control target key end

     0   :  { %s1558_s12 = smov 0   ;;  %s1846_s0 = inlined_call_operand.vmem [shape: bf16[2,40,128], index: 0, kind: input, shape index: {}]   ;;  %s1847_s1 = inlined_call_operand.vmem [shape: bf16[3,384,128], index: 1, kind: input, shape index: {}]   ;;  %s1848_s2 = inlined_call_operand.vmem [shape: f32[1,128], index: 2, kind: input, shape index: {}]   ;;  %s1849_s3 = inlined_call_operand.vmem [shape: f32[2,16,128], index: 3, kind: output, shape index: {}]  }
   0x1 LB: > { %s1044_s13 = sadd.s32 4294967295, %s1536_s12   ;;  %p1048_p0 = scmp.ge.s32.totalorder %s1536_s12, 1  ;;  %s1536_s12 = sphi %s1558_s12, %s13_s12  }
   0x2   : > { %p137_p1 = scmp.lt.s32.totalorder %s1536_s12, 3 }
   0x4   : > { %p138_p2 = pnand %p1048_p0, %p137_p1 }
   0x5   : > { %p161_p3 = scmp.lt.s32.totalorder (!%p138_p2), %s1044_s13, 1 }
   0x6   : > { %141 = sbr.rel (%p138_p2) target bundleno = 250 (0xfa), region = 32 }
   0xb   : > { %v1470_v0 = vld [vmem:[%s1847_s1 + $0xf8] sm:$0xff]  ;;  %v1469_v2 = vld [vmem:[%s1847_s1 + $0xf0] sm:$0xff]  ;;  %s1851_s13 = smov (!%p161_p3, %s1044_s13), 1  ;;  %v1468_v8 = vld [vmem:[%s1847_s1 + $0xe8] sm:$0xff]  ;;  %vm184_vm0 = vsmask.f32 7424 }
   0xc   : > { %v1478_v1 = vld [vmem:[%s1847_s1 + $0x138] sm:$0xff]  ;;  %477 = vmatpush.bf16.msra.mxu0 %v1470_v0  ;;  %v1477_v3 = vld [vmem:[%s1847_s1 + $0x130] sm:$0xff]  ;;  %v1476_v9 = vld [vmem:[%s1847_s1 + $0x128] sm:$0xff]  ;;  %s1520_s7 = smul.u32 20, %s1851_s13  ;;  %vm201_vm1 = vcmask 1046528   ;;  %s1438_s17 = sshll.u32 %s1851_s13, 4 }
   0xd   : > { %491 = vmatpush.bf16.msra.mxu1 %v1478_v1  ;;  %v1486_v4 = vld [vmem:[%s1847_s1 + $0x178] sm:$0xff]  ;;  %v1485_v6 = vld [vmem:[%s1847_s1 + $0x170] sm:$0xff]  ;;  %v1484_v10 = vld [vmem:[%s1847_s1 + $0x168] sm:$0xff]  ;;  %s170_s21 = scalar_lea.vmem %s1849_s3, %s1438_s17 }
   0xe   : > { %v1446_v5 = vld [vmem:[%s1847_s1 + $0x38] sm:$0xff]  ;;  %505 = vmatpush.bf16.msra.mxu2 %v1486_v4  ;;  %v1445_v7 = vld [vmem:[%s1847_s1 + $0x30] sm:$0xff]  ;;  %v1444_v11 = vld [vmem:[%s1847_s1 + $0x28] sm:$0xff]  ;;  %s1614_s20 = scalar_lea.vmem %s1846_s0, %s1520_s7 }
   0xf   : > { %663 = vmatpush.bf16.msra.mxu3 %v1446_v5  ;;  %v1467_v12 = vld [vmem:[%s1847_s1 + $0xe0] sm:$0xff]  ;;  %v1466_v16 = vld [vmem:[%s1847_s1 + $0xd8] sm:$0xff]  ;;  %v1632_v19 = vld [vmem:[%s1614_s20 + $0x8] sm:$0xff]  }
  0x10   : > { %478 = vmatpush.bf16.msra.mxu0 %v1469_v2  ;;  %v1475_v13 = vld [vmem:[%s1847_s1 + $0x120] sm:$0xff]  ;;  %v1474_v17 = vld [vmem:[%s1847_s1 + $0x118] sm:$0xff]  ;;  %v255_v20 = vld [vmem:[%s1614_s20 + $0xc] sm:$0x1]  ;;  %v1637_v22 = vunpack.c.l.b16 %v1632_v19 }
  0x11   : > { %492 = vmatpush.bf16.msra.mxu1 %v1477_v3  ;;  %v1483_v14 = vld [vmem:[%s1847_s1 + $0x160] sm:$0xff]  ;;  %v262_v23 = vunpack.c.l.b16 %v255_v20  ;;  %v1482_v24 = vld [vmem:[%s1847_s1 + $0x158] sm:$0xff]  ;;  %v1465_v27 = vld [vmem:[%s1847_s1 + $0xd0] sm:$0xff] }
  0x12   : > { %506 = vmatpush.bf16.msra.mxu2 %v1485_v6  ;;  %v1443_v15 = vld [vmem:[%s1847_s1 + $0x20] sm:$0xff]  ;;  %v1442_v25 = vld [vmem:[%s1847_s1 + $0x18] sm:$0xff]  ;;  %v1473_v28 = vld [vmem:[%s1847_s1 + $0x110] sm:$0xff] }
  0x13   : > { %664 = vmatpush.bf16.msra.mxu3 %v1445_v7  ;;  %v1629_v18 = vld [vmem:[%s1614_s20] sm:$0xff]   ;;  %v263_v30 = vpack.c.b16 %v262_v23, %v262_v23  ;;  %v1481_v32 = vld [vmem:[%s1847_s1 + $0x150] sm:$0xff]  ;;  %v1464_v35 = vld [vmem:[%s1847_s1 + $0xc8] sm:$0xff] }
  0x14   : > { %479 = vmatpush.bf16.msra.mxu0 %v1468_v8  ;;  %v1514_v21 = vunpack.c.h.b16 %v1629_v18  ;;  %v256_v29 = vld [vmem:[%s1614_s20 + $0x4] sm:$0xe]  ;;  %v1441_v33 = vld [vmem:[%s1847_s1 + $0x10] sm:$0xff]  ;;  %v1472_v36 = vld [vmem:[%s1847_s1 + $0x108] sm:$0xff]  ;;  %v718_v8 = vunpack.c.h.b16 %v1632_v19 }
  0x15   : > { %493 = vmatpush.bf16.msra.mxu1 %v1476_v9  ;;  %v278_v34 = vunpack.c.l.b16 %v256_v29  ;;  %v272_v39 = vshll.u32 %v263_v30, 16  ;;  %v1480_v40 = vld [vmem:[%s1847_s1 + $0x148] sm:$0xff]  ;;  %v1463_v43 = vld [vmem:[%s1847_s1 + $0xc0] sm:$0xff]  ;;  %v1454_v45 = vld [vmem:[%s1847_s1 + $0x78] sm:$0xff]  ;;  %v281_v54 = vrot.slane %v263_v30, 1 }
  0x16   : > { %507 = vmatpush.bf16.msra.mxu2 %v1484_v10  ;;  %v259_v26 = vpack.c.b16 %v1637_v22, %v1514_v21  ;;  %v1440_v41 = vld [vmem:[%s1847_s1 + $0x8] sm:$0xff]  ;;  %v1471_v44 = vld [vmem:[%s1847_s1 + $0x100] sm:$0xff]  ;;  %v1462_v46 = vld [vmem:[%s1847_s1 + $0xb8] sm:$0xff] }
  0x17   : > { %665 = vmatpush.bf16.msra.mxu3 %v1444_v11  ;;  %v279_v42 = vpack.c.b16 %v1637_v22, %v278_v34  ;;  %v274_v48 = vrot.slane %v272_v39, 1  ;;  %v1479_v49 = vld [vmem:[%s1847_s1 + $0x140] sm:$0xff]  ;;  %v1494_v51 = vld [vmem:[%s1847_s1 + $0x1b8] sm:$0xff]  ;;  %v1453_v55 = vld [vmem:[%s1847_s1 + $0x70] sm:$0xff] }
  0x18   : > { %480 = vmatpush.bf16.msra.mxu0 %v1467_v12  ;;  %v267_v31 = vshll.u32 %v259_v26, 16  ;;  %v265_v37 = vshrl.u32 %v259_v26, 16  ;;  %v1439_v50 = vld [vmem:[%s1847_s1] sm:$0xff]  ;;  %v1502_v52 = vld [vmem:[%s1847_s1 + $0x1f8] sm:$0xff]  ;;  %v1461_v56 = vld [vmem:[%s1847_s1 + $0xb0] sm:$0xff] }
  0x19   : > { %494 = vmatpush.bf16.msra.mxu1 %v1475_v13  ;;  %v280_v53 = vrot.slane %v279_v42, 1  ;;  %v1493_v59 = vld [vmem:[%s1847_s1 + $0x1b0] sm:$0xff]  ;;  %v1452_v61 = vld [vmem:[%s1847_s1 + $0x68] sm:$0xff]  ;;  %v1451_v1 = vld [vmem:[%s1847_s1 + $0x60] sm:$0xff] }
  0x1a   : > { %508 = vmatpush.bf16.msra.mxu2 %v1483_v14  ;;  %v269_v38 = vrot.slane %v267_v31, 1  ;;  %v1501_v60 = vld [vmem:[%s1847_s1 + $0x1f0] sm:$0xff]  ;;  %v1460_v62 = vld [vmem:[%s1847_s1 + $0xa8] sm:$0xff]  ;;  %v1459_v2 = vld [vmem:[%s1847_s1 + $0xa0] sm:$0xff] }
  0x1b   : > { %666 = vmatpush.bf16.msra.mxu3 %v1443_v15  ;;  %v282_v58 = vsel %vm201_vm1, %v280_v53, %v281_v54  ;;  %v1492_v63 = vld [vmem:[%s1847_s1 + $0x1a8] sm:$0xff]  ;;  %v1491_v5 = vld [vmem:[%s1847_s1 + $0x1a0] sm:$0xff]  ;;  %v1450_v9 = vld [vmem:[%s1847_s1 + $0x58] sm:$0xff] }
  0x1c   : > { %481 = vmatpush.bf16.msra.mxu0 %v1466_v16  ;;  %v270_v47 = vor.u32 %v269_v38, %v265_v37  ;;  %v1500_v0 = vld [vmem:[%s1847_s1 + $0x1e8] sm:$0xff]  ;;  %v1499_v6 = vld [vmem:[%s1847_s1 + $0x1e0] sm:$0xff]  ;;  %v1458_v10 = vld [vmem:[%s1847_s1 + $0x98] sm:$0xff] }
  0x1d   : > { %495 = vmatpush.bf16.msra.mxu1 %v1474_v17  ;;  %v1732_v3 = vld [vmem:[%s1614_s20 + $0x8] sm:$0xff]   ;;  %v708_v12 = vld [vmem:[%s1614_s20 + $0x10] sm:$0x1]  ;;  %v174_v13 = vld [vmem:[%s1614_s20] sm:$0xe] }
  0x1e   : > { %509 = vmatpush.bf16.msra.mxu2 %v1482_v24  ;;  %v275_v57 = vsel %vm184_vm0, %v270_v47, %v274_v48  ;;  %v173_v4 = vld [vmem:[%s1614_s20 + $0x8] sm:$0x1]  ;;  %v1517_v7 = vunpack.c.l.b16 %v1732_v3  ;;  %v1490_v14 = vld [vmem:[%s1847_s1 + $0x198] sm:$0xff]  ;;  %v719_v17 = vunpack.c.l.b16 %v708_v12  ;;  %v1449_v20 = vld [vmem:[%s1847_s1 + $0x50] sm:$0xff]  ;;  %v1518_v47 = vunpack.c.h.b16 %v1732_v3 }
  0x1f   : > { %667 = vmatpush.bf16.msra.mxu3 %v1442_v25  ;;  %v182_v11 = vunpack.c.l.b16 %v173_v4  ;;  %v1498_v15 = vld [vmem:[%s1847_s1 + $0x1d8] sm:$0xff]  ;;  %v1457_v23 = vld [vmem:[%s1847_s1 + $0x90] sm:$0xff]  ;;  %v188_v25 = vshll.u32 %v1629_v18, 16  ;;  %v1448_v31 = vld [vmem:[%s1847_s1 + $0x48] sm:$0xff] }
  0x20   : > { %482 = vmatpush.bf16.msra.mxu0 %v1465_v27  ;;  %v720_v16 = vpack.c.b16 %v718_v8, %v1517_v7  ;;  %v1489_v27 = vld [vmem:[%s1847_s1 + $0x190] sm:$0xff]  ;;  %v1772_v29 = vpack.c.b16 %v719_v17, %v719_v17  ;;  %v1488_v37 = vld [vmem:[%s1847_s1 + $0x188] sm:$0xff]  ;;  %v1487_v48 = vld [vmem:[%s1847_s1 + $0x180] sm:$0xff] }
  0x21   : > { %496 = vmatpush.bf16.msra.mxu1 %v1473_v28  ;;  %v183_v24 = vpack.c.b16 %v182_v11, %v182_v11  ;;  %v1497_v28 = vld [vmem:[%s1847_s1 + $0x1d0] sm:$0xff]  ;;  %v190_v34 = vrot.slane %v188_v25, 1  ;;  %v1496_v38 = vld [vmem:[%s1847_s1 + $0x1c8] sm:$0xff] }
  0x22   : > { %510 = vmatpush.bf16.msra.mxu2 %v1481_v32  ;;  %v725_v30 = vshll.u32 %v720_v16, 16  ;;  %v1456_v32 = vld [vmem:[%s1847_s1 + $0x88] sm:$0xff]  ;;  %v723_v39 = vshrl.u32 %v720_v16, 16  ;;  %v1509_v54 = vld [vmem:[%s1847_s1 + $0x230] sm:$0xff] }
  0x23   : > { %668 = vmatpush.bf16.msra.mxu3 %v1441_v33  ;;  %v186_v33 = vshrl.u32 %v1629_v18, 16 }
  0x24   : > { %483 = vmatpush.bf16.msra.mxu0 %v1464_v35  ;;  %v193_v35 = vshll.u32 %v183_v24, 16 }
  0x25   : > { %497 = vmatpush.bf16.msra.mxu1 %v1472_v36  ;;  %v191_v42 = vor.u32 %v190_v34, %v186_v33 }
  0x26   : > { %511 = vmatpush.bf16.msra.mxu2 %v1480_v40  ;;  %v727_v40 = vrot.slane %v725_v30, 1  ;;  %v1529_v30 = vld [vmem:[%s1848_s2] ss:$0 sm:$0xff] }
  0x27   : > { %669 = vmatpush.bf16.msra.mxu3 %v1440_v41  ;;  %v730_v41 = vshll.u32 %v1772_v29, 16 }
  0x28   : > { %484 = vmatpush.bf16.msra.mxu0 %v1463_v43  ;;  %v195_v43 = vrot.slane %v193_v35, 1 }
  0x29   : > { %498 = vmatpush.bf16.msra.mxu1 %v1471_v44 }
  0x2a   : > { %512 = vmatpush.bf16.msra.mxu2 %v1479_v49  ;;  %v1495_v49 = vld [vmem:[%s1847_s1 + $0x1c0] sm:$0xff] }
  0x2b   : > { %670 = vmatpush.bf16.msra.mxu3 %v1439_v50  ;;  %485 = vmatmul.bf16.vlgmr.msra.gmra.mxu0 %v259_v26  ;;  %v199_v26 = vunpack.c.l.b16 %v174_v13  ;;  %v728_v50 = vor.u32 %v727_v40, %v723_v39 }
  0x2c   : > { %677 = vmatpush.bf16.msrb.mxu0 %v1454_v45  ;;  %499 = vmatmul.bf16.vlgmr.msra.gmra.mxu1 %v275_v57  ;;  %v203_v45 = vrot.slane %v183_v24, 1  ;;  %v1508_v57 = vld [vmem:[%s1847_s1 + $0x228] sm:$0xff] }
  0x2d   : > { %691 = vmatpush.bf16.msrb.mxu1 %v1462_v46  ;;  %513 = vmatmul.bf16.vlgmr.msra.gmra.mxu2 %v282_v58  ;;  %v200_v36 = vpack.c.b16 %v1514_v21, %v199_v26  ;;  %v1455_v21 = vld [vmem:[%s1847_s1 + $0x80] sm:$0xff]  ;;  %v1510_v46 = vld [vmem:[%s1847_s1 + $0x238] sm:$0xff] }
  0x2e   : > { %935 = vmatpush.bf16.msrb.mxu2 %v1494_v51  ;;  %671 = vmatmul.bf16.vlgmr.msra.gmra.mxu3 %v1629_v18  ;;  %v1447_v18 = vld [vmem:[%s1847_s1 + $0x40] sm:$0xff]  ;;  %v732_v51 = vrot.slane %v730_v41, 1 }
  0x2f   : > { %949 = vmatpush.bf16.msrb.mxu3 %v1502_v52  ;;  %v202_v44 = vrot.slane %v200_v36, 1  ;;  %v196_v52 = vsel %vm184_vm0, %v191_v42, %v195_v43  ;;  %v1507_v58 = vld [vmem:[%s1847_s1 + $0x220] sm:$0xff] }
  0x30   : > { %678 = vmatpush.bf16.msrb.mxu0 %v1453_v55  ;;  %v712_v55 = vpack.c.b16 %v1518_v47, %v1637_v22  ;;  %v1506_v22 = vld [vmem:[%s1847_s1 + $0x218] sm:$0xff] }
  0x31   : > { %692 = vmatpush.bf16.msrb.mxu1 %v1461_v56  ;;  %v204_v53 = vsel %vm201_vm1, %v202_v44, %v203_v45  ;;  %v733_v56 = vsel %vm184_vm0, %v728_v50, %v732_v51 }
  0x32   : > { %936 = vmatpush.bf16.msrb.mxu2 %v1493_v59  ;;  %v709_v59 = vld [vmem:[%s1614_s20 + $0x8] sm:$0xe] }
  0x33   : > { %950 = vmatpush.bf16.msrb.mxu3 %v1501_v60  ;;  %v1505_v60 = vld [vmem:[%s1847_s1 + $0x210] sm:$0xff] }
  0x34   : > { %679 = vmatpush.bf16.msrb.mxu0 %v1452_v61  ;;  %v736_v61 = vunpack.c.l.b16 %v709_v59 }
  0x35   : > { %693 = vmatpush.bf16.msrb.mxu1 %v1460_v62  ;;  %v1504_v62 = vld [vmem:[%s1847_s1 + $0x208] sm:$0xff] }
  0x36   : > { %937 = vmatpush.bf16.msrb.mxu2 %v1492_v63  ;;  %v737_v63 = vpack.c.b16 %v718_v8, %v736_v61 }
  0x37   : > { %951 = vmatpush.bf16.msrb.mxu3 %v1500_v0  ;;  %v1503_v0 = vld [vmem:[%s1847_s1 + $0x200] sm:$0xff] }
  0x38   : > { %680 = vmatpush.bf16.msrb.mxu0 %v1451_v1  ;;  %v738_v1 = vrot.slane %v737_v63, 1 }
  0x39   : > { %694 = vmatpush.bf16.msrb.mxu1 %v1459_v2  ;;  %v739_v2 = vrot.slane %v1772_v29, 1 }
  0x3a   : > { %938 = vmatpush.bf16.msrb.mxu2 %v1491_v5 }
  0x3b   : > { %952 = vmatpush.bf16.msrb.mxu3 %v1499_v6  ;;  %v740_v3 = vsel %vm201_vm1, %v738_v1, %v739_v2 }
  0x3c   : > { %681 = vmatpush.bf16.msrb.mxu0 %v1450_v9 }
  0x3d   : > { %695 = vmatpush.bf16.msrb.mxu1 %v1458_v10 }
  0x3e   : > { %939 = vmatpush.bf16.msrb.mxu2 %v1490_v14 }
  0x3f   : > { %953 = vmatpush.bf16.msrb.mxu3 %v1498_v15 }
  0x40   : > { %682 = vmatpush.bf16.msrb.mxu0 %v1449_v20 }
  0x41   : > { %696 = vmatpush.bf16.msrb.mxu1 %v1457_v23 }
  0x42   : > { %940 = vmatpush.bf16.msrb.mxu2 %v1489_v27 }
  0x43   : > { %954 = vmatpush.bf16.msrb.mxu3 %v1497_v28 }
  0x44   : > { %683 = vmatpush.bf16.msrb.mxu0 %v1448_v31 }
  0x45   : > { %697 = vmatpush.bf16.msrb.mxu1 %v1456_v32 }
  0x46   : > { %941 = vmatpush.bf16.msrb.mxu2 %v1488_v37 }
  0x47   : > { %955 = vmatpush.bf16.msrb.mxu3 %v1496_v38 }
  0x48   : > { %684 = vmatpush.bf16.msrb.mxu0 %v1447_v18 }
  0x49   : > { %698 = vmatpush.bf16.msrb.mxu1 %v1455_v21 }
  0x4a   : > { %942 = vmatpush.bf16.msrb.mxu2 %v1487_v48 }
  0x4b   : > { %956 = vmatpush.bf16.msrb.mxu3 %v1495_v49  ;;  %685 = vmatmul.bf16.vlgmr.msrb.gmra.mxu0 %v196_v52 }
  0x4c   : > { %963 = vmatpush.bf16.msra.mxu0 %v1510_v46  ;;  %699 = vmatmul.bf16.vlgmr.msrb.gmra.mxu1 %v204_v53 }
  0x4d   : > { %943 = vmatmul.bf16.vlgmr.msrb.gmra.mxu2 %v712_v55 }
  0x4e   : > { %957 = vmatmul.bf16.vlgmr.msrb.gmra.mxu3 %v733_v56 }
  0x50   : > { %964 = vmatpush.bf16.msra.mxu0 %v1509_v54 }
  0x54   : > { %965 = vmatpush.bf16.msra.mxu0 %v1508_v57 }
  0x58   : > { %966 = vmatpush.bf16.msra.mxu0 %v1507_v58 }
  0x5c   : > { %967 = vmatpush.bf16.msra.mxu0 %v1506_v22 }
  0x60   : > { %968 = vmatpush.bf16.msra.mxu0 %v1505_v60 }
  0x64   : > { %969 = vmatpush.bf16.msra.mxu0 %v1504_v62 }
  0x68   : > { %970 = vmatpush.bf16.msra.mxu0 %v1503_v0 }
  0x6b   : > { %971 = vmatmul.bf16.vlgmr.msra.gmra.mxu0 %v740_v3 }
  0xa8   : > { %v486_v4 = vpop.f32.mrf.mxu0 }
  0xa9   : > { %v500_v6 = vpop.f32.mrf.mxu1 }
  0xaa   : > { %v501_v19 = vadd.f32 %v500_v6, %v486_v4 }
  0xb0   : > { %v488_v5 = vpop.f32.mrf.mxu0  ;;  %v514_v7 = vpop.f32.mrf.mxu2 }
  0xb1   : > { %v672_v9 = vpop.f32.mrf.mxu3  ;;  %v502_v8 = vpop.f32.mrf.mxu1  ;;  %v515_v13 = vadd.f32 %v514_v7, %v501_v19 }
  0xb2   : > { %v503_v20 = vadd.f32 %v502_v8, %v488_v5 }
  0xb3   : > { %v673_v15 = vadd.f32 %v672_v9, %v515_v13 }
  0xb8   : > { %v516_v11 = vpop.f32.mrf.mxu2 }
  0xb9   : > { %v674_v12 = vpop.f32.mrf.mxu3  ;;  %v517_v26 = vadd.f32 %v516_v11, %v503_v20 }
  0xbb   : > { %v675_v31 = vadd.f32 %v674_v12, %v517_v26 }
  0xc8   : > { %v686_v10 = vpop.f32.mrf.mxu0 }
  0xc9   : > { %v700_v23 = vpop.f32.mrf.mxu1  ;;  %v687_v24 = vadd.f32 %v686_v10, %v673_v15 }
  0xcb   : > { %v701_v28 = vadd.f32 %v700_v23, %v687_v24 }
  0xd0   : > { %v688_v14 = vpop.f32.mrf.mxu0  ;;  %v944_v16 = vpop.f32.mrf.mxu2 }
  0xd1   : > { %v958_v17 = vpop.f32.mrf.mxu3  ;;  %v689_v35 = vadd.f32 %v688_v14, %v675_v31  ;;  %v702_v37 = vpop.f32.mrf.mxu1 }
  0xd2   : > { %v959_v25 = vadd.f32 %v958_v17, %v944_v16 }
  0xd3   : > { %v703_v41 = vadd.f32 %v702_v37, %v689_v35 }
  0xd8   : > { %v946_v33 = vpop.f32.mrf.mxu2 }
  0xd9   : > { %v960_v34 = vpop.f32.mrf.mxu3 }
  0xda   : > { %v961_v38 = vadd.f32 %v960_v34, %v946_v33 }
  0xe8   : > { %v972_v27 = vpop.f32.mrf.mxu0 }
  0xe9   : > { %v973_v29 = vadd.f32 %v972_v27, %v959_v25 }
  0xeb   : > { %v977_v32 = vadd.f32 %v973_v29, %v701_v28 }
  0xed   : > { %v983_v36 = vadd.f32 %v1529_v30, %v977_v32 }
  0xef   : > { %v985_v39 = vmax.f32 %v983_v36, 0.0 }
  0xf0   : > { %v974_v40 = vpop.f32.mrf.mxu0 }
  0xf1   : > { %987 = vst [vmem:[%s170_s21] sm:$0xff] %v985_v39  ;;  %v975_v18 = vadd.f32 %v974_v40, %v961_v38 }
  0xf3   : > { %v978_v21 = vadd.f32 %v975_v18, %v703_v41 }
  0xf5   : > { %v984_v42 = vadd.f32 %v1529_v30, %v978_v21 }
  0xf7   : > { %v986_v43 = vmax.f32 %v984_v42, 0.0 }
  0xf9   : > { %988 = vst [vmem:[%s170_s21 + $0x8] sm:$0xff] %v986_v43 }
  0xfa PF: > { %s13_s12 = sadd.s32 1, %s1536_s12  }
  0xfb   : > { %p10_p4 = scmp.ge.s32.totalorder %s13_s12, 4  }
  0xfd   :  { %12 = sbr.rel (!%p10_p4) target bundleno = 1 (0x1), region = 64 }

// kernel: _lambda_.14
= control target key start
LH: loop header
LB: loop body
LE: loop exit
PB: predicated region body
PF: predicated region fallthrough
CT: control target
= control target key end

     0   :  { %s1565_s12 = smov 0   ;;  %s1853_s0 = inlined_call_operand.vmem [shape: bf16[2,40,128], index: 0, kind: input, shape index: {}]   ;;  %s1854_s1 = inlined_call_operand.vmem [shape: bf16[3,384,128], index: 1, kind: input, shape index: {}]   ;;  %s1855_s2 = inlined_call_operand.vmem [shape: f32[1,128], index: 2, kind: input, shape index: {}]   ;;  %s1856_s3 = inlined_call_operand.vmem [shape: bf16[2,16,128], index: 3, kind: output, shape index: {}]  }
   0x1 LB: > { %s1046_s13 = sadd.s32 4294967295, %s1543_s12   ;;  %p1050_p0 = scmp.ge.s32.totalorder %s1543_s12, 1  ;;  %s1543_s12 = sphi %s1565_s12, %s13_s12  }
   0x2   : > { %p137_p1 = scmp.lt.s32.totalorder %s1543_s12, 3 }
   0x4   : > { %p138_p2 = pnand %p1050_p0, %p137_p1 }
   0x5   : > { %p161_p3 = scmp.lt.s32.totalorder (!%p138_p2), %s1046_s13, 1 }
   0x6   : > { %141 = sbr.rel (%p138_p2) target bundleno = 252 (0xfc), region = 32 }
   0xb   : > { %v1472_v0 = vld [vmem:[%s1854_s1 + $0xf8] sm:$0xff]  ;;  %v1471_v2 = vld [vmem:[%s1854_s1 + $0xf0] sm:$0xff]  ;;  %s1858_s13 = smov (!%p161_p3, %s1046_s13), 1  ;;  %v1470_v8 = vld [vmem:[%s1854_s1 + $0xe8] sm:$0xff]  ;;  %vm184_vm0 = vsmask.f32 7424 }
   0xc   : > { %v1480_v1 = vld [vmem:[%s1854_s1 + $0x138] sm:$0xff]  ;;  %477 = vmatpush.bf16.msra.mxu0 %v1472_v0  ;;  %v1479_v3 = vld [vmem:[%s1854_s1 + $0x130] sm:$0xff]  ;;  %v1478_v9 = vld [vmem:[%s1854_s1 + $0x128] sm:$0xff]  ;;  %s1527_s7 = smul.u32 20, %s1858_s13  ;;  %vm201_vm1 = vcmask 1046528   ;;  %s1440_s17 = sshll.u32 %s1858_s13, 3 }
   0xd   : > { %491 = vmatpush.bf16.msra.mxu1 %v1480_v1  ;;  %v1488_v4 = vld [vmem:[%s1854_s1 + $0x178] sm:$0xff]  ;;  %v1487_v6 = vld [vmem:[%s1854_s1 + $0x170] sm:$0xff]  ;;  %v1486_v10 = vld [vmem:[%s1854_s1 + $0x168] sm:$0xff]  ;;  %s170_s21 = scalar_lea.vmem %s1856_s3, %s1440_s17 }
   0xe   : > { %v1448_v5 = vld [vmem:[%s1854_s1 + $0x38] sm:$0xff]  ;;  %505 = vmatpush.bf16.msra.mxu2 %v1488_v4  ;;  %v1447_v7 = vld [vmem:[%s1854_s1 + $0x30] sm:$0xff]  ;;  %v1446_v11 = vld [vmem:[%s1854_s1 + $0x28] sm:$0xff]  ;;  %s1621_s20 = scalar_lea.vmem %s1853_s0, %s1527_s7 }
   0xf   : > { %663 = vmatpush.bf16.msra.mxu3 %v1448_v5  ;;  %v1469_v12 = vld [vmem:[%s1854_s1 + $0xe0] sm:$0xff]  ;;  %v1468_v16 = vld [vmem:[%s1854_s1 + $0xd8] sm:$0xff]  ;;  %v1639_v19 = vld [vmem:[%s1621_s20 + $0x8] sm:$0xff]  }
  0x10   : > { %478 = vmatpush.bf16.msra.mxu0 %v1471_v2  ;;  %v1477_v13 = vld [vmem:[%s1854_s1 + $0x120] sm:$0xff]  ;;  %v1476_v17 = vld [vmem:[%s1854_s1 + $0x118] sm:$0xff]  ;;  %v255_v20 = vld [vmem:[%s1621_s20 + $0xc] sm:$0x1]  ;;  %v1644_v22 = vunpack.c.l.b16 %v1639_v19 }
  0x11   : > { %492 = vmatpush.bf16.msra.mxu1 %v1479_v3  ;;  %v1485_v14 = vld [vmem:[%s1854_s1 + $0x160] sm:$0xff]  ;;  %v262_v23 = vunpack.c.l.b16 %v255_v20  ;;  %v1484_v24 = vld [vmem:[%s1854_s1 + $0x158] sm:$0xff]  ;;  %v1467_v27 = vld [vmem:[%s1854_s1 + $0xd0] sm:$0xff] }
  0x12   : > { %506 = vmatpush.bf16.msra.mxu2 %v1487_v6  ;;  %v1445_v15 = vld [vmem:[%s1854_s1 + $0x20] sm:$0xff]  ;;  %v1444_v25 = vld [vmem:[%s1854_s1 + $0x18] sm:$0xff]  ;;  %v1475_v28 = vld [vmem:[%s1854_s1 + $0x110] sm:$0xff] }
  0x13   : > { %664 = vmatpush.bf16.msra.mxu3 %v1447_v7  ;;  %v1636_v18 = vld [vmem:[%s1621_s20] sm:$0xff]   ;;  %v263_v30 = vpack.c.b16 %v262_v23, %v262_v23  ;;  %v1483_v32 = vld [vmem:[%s1854_s1 + $0x150] sm:$0xff]  ;;  %v1466_v35 = vld [vmem:[%s1854_s1 + $0xc8] sm:$0xff] }
  0x14   : > { %479 = vmatpush.bf16.msra.mxu0 %v1470_v8  ;;  %v1516_v21 = vunpack.c.h.b16 %v1636_v18  ;;  %v256_v29 = vld [vmem:[%s1621_s20 + $0x4] sm:$0xe]  ;;  %v1443_v33 = vld [vmem:[%s1854_s1 + $0x10] sm:$0xff]  ;;  %v1474_v36 = vld [vmem:[%s1854_s1 + $0x108] sm:$0xff]  ;;  %v718_v8 = vunpack.c.h.b16 %v1639_v19 }
  0x15   : > { %493 = vmatpush.bf16.msra.mxu1 %v1478_v9  ;;  %v278_v34 = vunpack.c.l.b16 %v256_v29  ;;  %v272_v39 = vshll.u32 %v263_v30, 16  ;;  %v1482_v40 = vld [vmem:[%s1854_s1 + $0x148] sm:$0xff]  ;;  %v1465_v43 = vld [vmem:[%s1854_s1 + $0xc0] sm:$0xff]  ;;  %v1456_v45 = vld [vmem:[%s1854_s1 + $0x78] sm:$0xff]  ;;  %v281_v54 = vrot.slane %v263_v30, 1 }
  0x16   : > { %507 = vmatpush.bf16.msra.mxu2 %v1486_v10  ;;  %v259_v26 = vpack.c.b16 %v1644_v22, %v1516_v21  ;;  %v1442_v41 = vld [vmem:[%s1854_s1 + $0x8] sm:$0xff]  ;;  %v1473_v44 = vld [vmem:[%s1854_s1 + $0x100] sm:$0xff]  ;;  %v1464_v46 = vld [vmem:[%s1854_s1 + $0xb8] sm:$0xff] }
  0x17   : > { %665 = vmatpush.bf16.msra.mxu3 %v1446_v11  ;;  %v279_v42 = vpack.c.b16 %v1644_v22, %v278_v34  ;;  %v274_v48 = vrot.slane %v272_v39, 1  ;;  %v1481_v49 = vld [vmem:[%s1854_s1 + $0x140] sm:$0xff]  ;;  %v1496_v51 = vld [vmem:[%s1854_s1 + $0x1b8] sm:$0xff]  ;;  %v1455_v55 = vld [vmem:[%s1854_s1 + $0x70] sm:$0xff] }
  0x18   : > { %480 = vmatpush.bf16.msra.mxu0 %v1469_v12  ;;  %v267_v31 = vshll.u32 %v259_v26, 16  ;;  %v265_v37 = vshrl.u32 %v259_v26, 16  ;;  %v1441_v50 = vld [vmem:[%s1854_s1] sm:$0xff]  ;;  %v1504_v52 = vld [vmem:[%s1854_s1 + $0x1f8] sm:$0xff]  ;;  %v1463_v56 = vld [vmem:[%s1854_s1 + $0xb0] sm:$0xff] }
  0x19   : > { %494 = vmatpush.bf16.msra.mxu1 %v1477_v13  ;;  %v280_v53 = vrot.slane %v279_v42, 1  ;;  %v1495_v59 = vld [vmem:[%s1854_s1 + $0x1b0] sm:$0xff]  ;;  %v1454_v61 = vld [vmem:[%s1854_s1 + $0x68] sm:$0xff]  ;;  %v1453_v1 = vld [vmem:[%s1854_s1 + $0x60] sm:$0xff] }
  0x1a   : > { %508 = vmatpush.bf16.msra.mxu2 %v1485_v14  ;;  %v269_v38 = vrot.slane %v267_v31, 1  ;;  %v1503_v60 = vld [vmem:[%s1854_s1 + $0x1f0] sm:$0xff]  ;;  %v1462_v62 = vld [vmem:[%s1854_s1 + $0xa8] sm:$0xff]  ;;  %v1461_v2 = vld [vmem:[%s1854_s1 + $0xa0] sm:$0xff] }
  0x1b   : > { %666 = vmatpush.bf16.msra.mxu3 %v1445_v15  ;;  %v282_v58 = vsel %vm201_vm1, %v280_v53, %v281_v54  ;;  %v1494_v63 = vld [vmem:[%s1854_s1 + $0x1a8] sm:$0xff]  ;;  %v1493_v5 = vld [vmem:[%s1854_s1 + $0x1a0] sm:$0xff]  ;;  %v1452_v9 = vld [vmem:[%s1854_s1 + $0x58] sm:$0xff] }
  0x1c   : > { %481 = vmatpush.bf16.msra.mxu0 %v1468_v16  ;;  %v270_v47 = vor.u32 %v269_v38, %v265_v37  ;;  %v1502_v0 = vld [vmem:[%s1854_s1 + $0x1e8] sm:$0xff]  ;;  %v1501_v6 = vld [vmem:[%s1854_s1 + $0x1e0] sm:$0xff]  ;;  %v1460_v10 = vld [vmem:[%s1854_s1 + $0x98] sm:$0xff] }
  0x1d   : > { %495 = vmatpush.bf16.msra.mxu1 %v1476_v17  ;;  %v1739_v3 = vld [vmem:[%s1621_s20 + $0x8] sm:$0xff]   ;;  %v708_v12 = vld [vmem:[%s1621_s20 + $0x10] sm:$0x1]  ;;  %v174_v13 = vld [vmem:[%s1621_s20] sm:$0xe] }
  0x1e   : > { %509 = vmatpush.bf16.msra.mxu2 %v1484_v24  ;;  %v275_v57 = vsel %vm184_vm0, %v270_v47, %v274_v48  ;;  %v173_v4 = vld [vmem:[%s1621_s20 + $0x8] sm:$0x1]  ;;  %v1519_v7 = vunpack.c.l.b16 %v1739_v3  ;;  %v1492_v14 = vld [vmem:[%s1854_s1 + $0x198] sm:$0xff]  ;;  %v719_v17 = vunpack.c.l.b16 %v708_v12  ;;  %v1451_v20 = vld [vmem:[%s1854_s1 + $0x50] sm:$0xff]  ;;  %v1520_v47 = vunpack.c.h.b16 %v1739_v3 }
  0x1f   : > { %667 = vmatpush.bf16.msra.mxu3 %v1444_v25  ;;  %v182_v11 = vunpack.c.l.b16 %v173_v4  ;;  %v1500_v15 = vld [vmem:[%s1854_s1 + $0x1d8] sm:$0xff]  ;;  %v1459_v23 = vld [vmem:[%s1854_s1 + $0x90] sm:$0xff]  ;;  %v188_v25 = vshll.u32 %v1636_v18, 16  ;;  %v1450_v31 = vld [vmem:[%s1854_s1 + $0x48] sm:$0xff] }
  0x20   : > { %482 = vmatpush.bf16.msra.mxu0 %v1467_v27  ;;  %v720_v16 = vpack.c.b16 %v718_v8, %v1519_v7  ;;  %v1491_v27 = vld [vmem:[%s1854_s1 + $0x190] sm:$0xff]  ;;  %v1779_v29 = vpack.c.b16 %v719_v17, %v719_v17  ;;  %v1490_v37 = vld [vmem:[%s1854_s1 + $0x188] sm:$0xff]  ;;  %v1489_v48 = vld [vmem:[%s1854_s1 + $0x180] sm:$0xff] }
  0x21   : > { %496 = vmatpush.bf16.msra.mxu1 %v1475_v28  ;;  %v183_v24 = vpack.c.b16 %v182_v11, %v182_v11  ;;  %v1499_v28 = vld [vmem:[%s1854_s1 + $0x1d0] sm:$0xff]  ;;  %v190_v34 = vrot.slane %v188_v25, 1  ;;  %v1498_v38 = vld [vmem:[%s1854_s1 + $0x1c8] sm:$0xff] }
  0x22   : > { %510 = vmatpush.bf16.msra.mxu2 %v1483_v32  ;;  %v725_v30 = vshll.u32 %v720_v16, 16  ;;  %v1458_v32 = vld [vmem:[%s1854_s1 + $0x88] sm:$0xff]  ;;  %v723_v39 = vshrl.u32 %v720_v16, 16  ;;  %v1511_v54 = vld [vmem:[%s1854_s1 + $0x230] sm:$0xff] }
  0x23   : > { %668 = vmatpush.bf16.msra.mxu3 %v1443_v33  ;;  %v186_v33 = vshrl.u32 %v1636_v18, 16 }
  0x24   : > { %483 = vmatpush.bf16.msra.mxu0 %v1466_v35  ;;  %v193_v35 = vshll.u32 %v183_v24, 16 }
  0x25   : > { %497 = vmatpush.bf16.msra.mxu1 %v1474_v36  ;;  %v191_v42 = vor.u32 %v190_v34, %v186_v33 }
  0x26   : > { %511 = vmatpush.bf16.msra.mxu2 %v1482_v40  ;;  %v727_v40 = vrot.slane %v725_v30, 1 }
  0x27   : > { %669 = vmatpush.bf16.msra.mxu3 %v1442_v41  ;;  %v730_v41 = vshll.u32 %v1779_v29, 16 }
  0x28   : > { %484 = vmatpush.bf16.msra.mxu0 %v1465_v43  ;;  %v195_v43 = vrot.slane %v193_v35, 1 }
  0x29   : > { %498 = vmatpush.bf16.msra.mxu1 %v1473_v44 }
  0x2a   : > { %512 = vmatpush.bf16.msra.mxu2 %v1481_v49  ;;  %v1497_v49 = vld [vmem:[%s1854_s1 + $0x1c0] sm:$0xff] }
  0x2b   : > { %670 = vmatpush.bf16.msra.mxu3 %v1441_v50  ;;  %485 = vmatmul.bf16.vlgmr.msra.gmra.mxu0 %v259_v26  ;;  %v199_v26 = vunpack.c.l.b16 %v174_v13  ;;  %v728_v50 = vor.u32 %v727_v40, %v723_v39 }
  0x2c   : > { %677 = vmatpush.bf16.msrb.mxu0 %v1456_v45  ;;  %499 = vmatmul.bf16.vlgmr.msra.gmra.mxu1 %v275_v57  ;;  %v203_v45 = vrot.slane %v183_v24, 1  ;;  %v1510_v57 = vld [vmem:[%s1854_s1 + $0x228] sm:$0xff] }
  0x2d   : > { %691 = vmatpush.bf16.msrb.mxu1 %v1464_v46  ;;  %513 = vmatmul.bf16.vlgmr.msra.gmra.mxu2 %v282_v58  ;;  %v200_v36 = vpack.c.b16 %v1516_v21, %v199_v26  ;;  %v1457_v21 = vld [vmem:[%s1854_s1 + $0x80] sm:$0xff]  ;;  %v1512_v46 = vld [vmem:[%s1854_s1 + $0x238] sm:$0xff] }
  0x2e   : > { %935 = vmatpush.bf16.msrb.mxu2 %v1496_v51  ;;  %671 = vmatmul.bf16.vlgmr.msra.gmra.mxu3 %v1636_v18  ;;  %v1449_v18 = vld [vmem:[%s1854_s1 + $0x40] sm:$0xff]  ;;  %v732_v51 = vrot.slane %v730_v41, 1 }
  0x2f   : > { %949 = vmatpush.bf16.msrb.mxu3 %v1504_v52  ;;  %v202_v44 = vrot.slane %v200_v36, 1  ;;  %v196_v52 = vsel %vm184_vm0, %v191_v42, %v195_v43  ;;  %v1509_v58 = vld [vmem:[%s1854_s1 + $0x220] sm:$0xff] }
  0x30   : > { %678 = vmatpush.bf16.msrb.mxu0 %v1455_v55  ;;  %v712_v55 = vpack.c.b16 %v1520_v47, %v1644_v22  ;;  %v1508_v22 = vld [vmem:[%s1854_s1 + $0x218] sm:$0xff] }
  0x31   : > { %692 = vmatpush.bf16.msrb.mxu1 %v1463_v56  ;;  %v204_v53 = vsel %vm201_vm1, %v202_v44, %v203_v45  ;;  %v733_v56 = vsel %vm184_vm0, %v728_v50, %v732_v51 }
  0x32   : > { %936 = vmatpush.bf16.msrb.mxu2 %v1495_v59  ;;  %v709_v59 = vld [vmem:[%s1621_s20 + $0x8] sm:$0xe] }
  0x33   : > { %950 = vmatpush.bf16.msrb.mxu3 %v1503_v60  ;;  %v1507_v60 = vld [vmem:[%s1854_s1 + $0x210] sm:$0xff] }
  0x34   : > { %679 = vmatpush.bf16.msrb.mxu0 %v1454_v61  ;;  %v736_v61 = vunpack.c.l.b16 %v709_v59 }
  0x35   : > { %693 = vmatpush.bf16.msrb.mxu1 %v1462_v62  ;;  %v1506_v62 = vld [vmem:[%s1854_s1 + $0x208] sm:$0xff] }
  0x36   : > { %937 = vmatpush.bf16.msrb.mxu2 %v1494_v63  ;;  %v737_v63 = vpack.c.b16 %v718_v8, %v736_v61 }
  0x37   : > { %951 = vmatpush.bf16.msrb.mxu3 %v1502_v0  ;;  %v1505_v0 = vld [vmem:[%s1854_s1 + $0x200] sm:$0xff] }
  0x38   : > { %680 = vmatpush.bf16.msrb.mxu0 %v1453_v1  ;;  %v738_v1 = vrot.slane %v737_v63, 1 }
  0x39   : > { %694 = vmatpush.bf16.msrb.mxu1 %v1461_v2  ;;  %v739_v2 = vrot.slane %v1779_v29, 1 }
  0x3a   : > { %938 = vmatpush.bf16.msrb.mxu2 %v1493_v5 }
  0x3b   : > { %952 = vmatpush.bf16.msrb.mxu3 %v1501_v6  ;;  %v740_v3 = vsel %vm201_vm1, %v738_v1, %v739_v2 }
  0x3c   : > { %681 = vmatpush.bf16.msrb.mxu0 %v1452_v9 }
  0x3d   : > { %695 = vmatpush.bf16.msrb.mxu1 %v1460_v10 }
  0x3e   : > { %939 = vmatpush.bf16.msrb.mxu2 %v1492_v14 }
  0x3f   : > { %953 = vmatpush.bf16.msrb.mxu3 %v1500_v15 }
  0x40   : > { %682 = vmatpush.bf16.msrb.mxu0 %v1451_v20 }
  0x41   : > { %696 = vmatpush.bf16.msrb.mxu1 %v1459_v23 }
  0x42   : > { %940 = vmatpush.bf16.msrb.mxu2 %v1491_v27 }
  0x43   : > { %954 = vmatpush.bf16.msrb.mxu3 %v1499_v28 }
  0x44   : > { %683 = vmatpush.bf16.msrb.mxu0 %v1450_v31 }
  0x45   : > { %697 = vmatpush.bf16.msrb.mxu1 %v1458_v32 }
  0x46   : > { %941 = vmatpush.bf16.msrb.mxu2 %v1490_v37  ;;  %v1536_v37 = vld [vmem:[%s1855_s2] ss:$0 sm:$0xff] }
  0x47   : > { %955 = vmatpush.bf16.msrb.mxu3 %v1498_v38 }
  0x48   : > { %684 = vmatpush.bf16.msrb.mxu0 %v1449_v18 }
  0x49   : > { %698 = vmatpush.bf16.msrb.mxu1 %v1457_v21 }
  0x4a   : > { %942 = vmatpush.bf16.msrb.mxu2 %v1489_v48 }
  0x4b   : > { %956 = vmatpush.bf16.msrb.mxu3 %v1497_v49  ;;  %685 = vmatmul.bf16.vlgmr.msrb.gmra.mxu0 %v196_v52 }
  0x4c   : > { %963 = vmatpush.bf16.msra.mxu0 %v1512_v46  ;;  %699 = vmatmul.bf16.vlgmr.msrb.gmra.mxu1 %v204_v53 }
  0x4d   : > { %943 = vmatmul.bf16.vlgmr.msrb.gmra.mxu2 %v712_v55 }
  0x4e   : > { %957 = vmatmul.bf16.vlgmr.msrb.gmra.mxu3 %v733_v56 }
  0x50   : > { %964 = vmatpush.bf16.msra.mxu0 %v1511_v54 }
  0x54   : > { %965 = vmatpush.bf16.msra.mxu0 %v1510_v57 }
  0x58   : > { %966 = vmatpush.bf16.msra.mxu0 %v1509_v58 }
  0x5c   : > { %967 = vmatpush.bf16.msra.mxu0 %v1508_v22 }
  0x60   : > { %968 = vmatpush.bf16.msra.mxu0 %v1507_v60 }
  0x64   : > { %969 = vmatpush.bf16.msra.mxu0 %v1506_v62 }
  0x68   : > { %970 = vmatpush.bf16.msra.mxu0 %v1505_v0 }
  0x6b   : > { %971 = vmatmul.bf16.vlgmr.msra.gmra.mxu0 %v740_v3 }
  0xa8   : > { %v486_v4 = vpop.f32.mrf.mxu0 }
  0xa9   : > { %v500_v6 = vpop.f32.mrf.mxu1 }
  0xaa   : > { %v501_v12 = vadd.f32 %v500_v6, %v486_v4 }
  0xb0   : > { %v488_v5 = vpop.f32.mrf.mxu0  ;;  %v514_v7 = vpop.f32.mrf.mxu2 }
  0xb1   : > { %v672_v9 = vpop.f32.mrf.mxu3  ;;  %v502_v19 = vpop.f32.mrf.mxu1  ;;  %v515_v14 = vadd.f32 %v514_v7, %v501_v12 }
  0xb2   : > { %v503_v17 = vadd.f32 %v502_v19, %v488_v5 }
  0xb3   : > { %v673_v23 = vadd.f32 %v672_v9, %v515_v14 }
  0xb8   : > { %v516_v8 = vpop.f32.mrf.mxu2 }
  0xb9   : > { %v674_v11 = vpop.f32.mrf.mxu3  ;;  %v517_v24 = vadd.f32 %v516_v8, %v503_v17 }
  0xbb   : > { %v675_v28 = vadd.f32 %v674_v11, %v517_v24 }
  0xc8   : > { %v686_v10 = vpop.f32.mrf.mxu0 }
  0xc9   : > { %v700_v20 = vpop.f32.mrf.mxu1  ;;  %v687_v27 = vadd.f32 %v686_v10, %v673_v23 }
  0xcb   : > { %v701_v32 = vadd.f32 %v700_v20, %v687_v27 }
  0xd0   : > { %v688_v13 = vpop.f32.mrf.mxu0  ;;  %v944_v15 = vpop.f32.mrf.mxu2 }
  0xd1   : > { %v958_v16 = vpop.f32.mrf.mxu3  ;;  %v689_v33 = vadd.f32 %v688_v13, %v675_v28  ;;  %v702_v34 = vpop.f32.mrf.mxu1 }
  0xd2   : > { %v959_v25 = vadd.f32 %v958_v16, %v944_v15 }
  0xd3   : > { %v703_v39 = vadd.f32 %v702_v34, %v689_v33 }
  0xd8   : > { %v946_v30 = vpop.f32.mrf.mxu2 }
  0xd9   : > { %v960_v31 = vpop.f32.mrf.mxu3 }
  0xda   : > { %v961_v35 = vadd.f32 %v960_v31, %v946_v30 }
  0xe8   : > { %v972_v26 = vpop.f32.mrf.mxu0 }
  0xe9   : > { %v973_v29 = vadd.f32 %v972_v26, %v959_v25 }
  0xeb   : > { %v977_v36 = vadd.f32 %v973_v29, %v701_v32 }
  0xed   : > { %v983_v41 = vadd.f32 %v1536_v37, %v977_v36 }
  0xef   : > { %v985_v42 = vmax.f32 %v983_v41, 0.0 }
  0xf0   : > { %v974_v38 = vpop.f32.mrf.mxu0 }
  0xf1   : > { %v975_v40 = vadd.f32 %v974_v38, %v961_v35 }
  0xf3   : > { %v978_v18 = vadd.f32 %v975_v40, %v703_v39 }
  0xf5   : > { %v984_v21 = vadd.f32 %v1536_v37, %v978_v18 }
  0xf7   : > { %v986_v43 = vmax.f32 %v984_v21, 0.0 }
  0xf9   : > { %v1524_v44 = vpack.c.bf16 %v986_v43, %v985_v42 }
  0xfb   : > { %1525 = vst [vmem:[%s170_s21] sm:$0xff] %v1524_v44  }
  0xfc PF: > { %s13_s12 = sadd.s32 1, %s1543_s12  }
  0xfd   : > { %p10_p4 = scmp.ge.s32.totalorder %s13_s12, 4  }
  0xff   :  { %12 = sbr.rel (!%p10_p4) target bundleno = 1 (0x1), region = 64 }

</bundles_post_ra>
